<compile_context>
chip_gen: v7x
topology: tpu7x:2x2x1
jax: 0.10.0
libtpu: 0.0.40
codegen_flags: <defaults>
</compile_context>

<pallas_src>
import jax
import jax.numpy as jnp
from jax.experimental import pallas as pl
from jax.experimental.pallas import tpu as pltpu


def _round_up(n, m):
    return ((n + m - 1) // m) * m


def _attn_kernel_c1(x_ref, w1_ref, b1_ref, w2t_ref, b2_ref, a_ref):
    """n_classes == 1: second projection as VPU multiply + lane reduce."""
    # First Linear: bf16 (tm, L) @ (L, D) -> f32 accumulate, bias + tanh in f32.
    h = jnp.dot(x_ref[...], w1_ref[...], preferred_element_type=jnp.float32)
    h = jnp.tanh(h + b1_ref[...])
    # Second Linear (D -> 1): w2t_ref is (1, D); multiply-reduce over the lane axis.
    a = jnp.sum(h * w2t_ref[...], axis=-1, keepdims=True) + b2_ref[...]
    a_ref[...] = a.astype(a_ref.dtype)


def _attn_kernel_general(x_ref, w1_ref, b1_ref, w2_ref, b2_ref, a_ref):
    """General n_classes: second projection on the MXU (f32)."""
    h = jnp.dot(x_ref[...], w1_ref[...], preferred_element_type=jnp.float32)
    h = jnp.tanh(h + b1_ref[...])
    a = jnp.dot(h, w2_ref[...], preferred_element_type=jnp.float32) + b2_ref[...]
    a_ref[...] = a.astype(a_ref.dtype)


def attn_net_forward(x, w1, b1, w2, b2, *, tm=1024, compute_dtype=jnp.bfloat16):
    """Pallas implementation of Attn_Net.forward.

    x: (N, L); w1: (L, D) (= Linear(L,D).weight.T); b1: (D,) or (1, D);
    w2: (D, C) (= Linear(D,C).weight.T); b2: (C,) or (1, C).
    Returns (A, x) with A: (N, C) in x.dtype.
    """
    N, L = x.shape
    D = w1.shape[1]
    C = w2.shape[1]
    out_dtype = x.dtype

    # Row tile: large to amortize per-step overhead, clamped so tiny inputs
    # don't over-pad. Always a multiple of 8 (sublane granule).
    tm = max(8, min(tm, _round_up(N, 256)))
    n_pad = _round_up(N, tm)

    # Stream the big operands (x, w1) in a compact dtype; accumulate in f32.
    xs = x if compute_dtype is None else x.astype(compute_dtype)
    w1s = w1 if compute_dtype is None else w1.astype(compute_dtype)
    if n_pad != N:
        xs = jnp.pad(xs, ((0, n_pad - N), (0, 0)))

    b1f = jnp.asarray(b1, jnp.float32).reshape(1, D)
    b2f = jnp.asarray(b2, jnp.float32).reshape(1, C)
    w2f = jnp.asarray(w2, jnp.float32)

    if C == 1:
        kernel = _attn_kernel_c1
        w2_arg = w2f.T                                    # (1, D) broadcast row
        w2_spec = pl.BlockSpec((1, D), lambda i: (0, 0))
    else:
        kernel = _attn_kernel_general
        w2_arg = w2f                                      # (D, C)
        w2_spec = pl.BlockSpec((D, C), lambda i: (0, 0))

    a = pl.pallas_call(
        kernel,
        out_shape=jax.ShapeDtypeStruct((n_pad, C), out_dtype),
        grid_spec=pltpu.PrefetchScalarGridSpec(
            num_scalar_prefetch=0,
            grid=(n_pad // tm,),
            in_specs=[
                pl.BlockSpec((tm, L), lambda i: (i, 0)),   # x tile (streamed)
                pl.BlockSpec((L, D), lambda i: (0, 0)),    # w1 (VMEM resident)
                pl.BlockSpec((1, D), lambda i: (0, 0)),    # b1
                w2_spec,                                   # w2 (resident)
                pl.BlockSpec((1, C), lambda i: (0, 0)),    # b2
            ],
            out_specs=pl.BlockSpec((tm, C), lambda i: (i, 0)),
        ),
        compiler_params=pltpu.CompilerParams(
            dimension_semantics=("parallel",)),            # megacore-shardable
    )(xs, w1s, b1f, w2_arg, b2f)

    if n_pad != N:
        a = a[:N]
    # Module returns (attention logits, original input)
    return a, x


def init_params(key, L, D, n_classes, dtype=jnp.float32):
    """Deterministic init matching nn.Linear shapes (weights pre-transposed)."""
    k1, k2, k3, k4 = jax.random.split(key, 4)
    s1 = 1.0 / jnp.sqrt(L)
    s2 = 1.0 / jnp.sqrt(D)
    w1 = jax.random.uniform(k1, (L, D), dtype, -s1, s1)          # Linear(L, D).weight.T
    b1 = jax.random.uniform(k2, (D,), dtype, -s1, s1)            # Linear(L, D).bias
    w2 = jax.random.uniform(k3, (D, n_classes), dtype, -s2, s2)  # Linear(D, C).weight.T
    b2 = jax.random.uniform(k4, (n_classes,), dtype, -s2, s2)    # Linear(D, C).bias
    return w1, b1, w2, b2


if __name__ == "__main__":
    # Module defaults L=1024, D=256, n_classes=1; N chosen non-multiple of the
    # tile to exercise the padding path (grid length 2 with tm=512).
    N, L, D, n_classes = 777, 1024, 256, 1
    key = jax.random.PRNGKey(0)
    kx, kp = jax.random.split(key)

    x = jax.random.normal(kx, (N, L), dtype=jnp.float32)
    w1, b1, w2, b2 = init_params(kp, L, D, n_classes)

    a, x_out = attn_net_forward(x, w1, b1, w2, b2, tm=512)
    jax.block_until_ready((a, x_out))

    # Reference in plain f32 JAX. The kernel streams x/w1 in bf16 (f32 accum),
    # so compare with a bf16-appropriate tolerance.
    a_ref = jnp.tanh(x @ w1 + b1[None, :]) @ w2 + b2[None, :]
    assert a.shape == (N, n_classes)
    assert x_out.shape == (N, L)
    assert jnp.allclose(a, a_ref, atol=2e-2, rtol=2e-2), float(
        jnp.max(jnp.abs(a - a_ref)))
    assert jnp.array_equal(x_out, x)

    print("KERNEL_OK")
</pallas_src>

<mosaic_0001>
module attributes {stable_mosaic.version = 11 : i64} {
  func.func @_attn_kernel_c1(%arg0: i32, %arg1: memref<512x1024xbf16, #tpu.memory_space<vmem>>, %arg2: memref<1024x256xbf16, #tpu.memory_space<vmem>>, %arg3: memref<1x256xf32, #tpu.memory_space<vmem>>, %arg4: memref<1x256xf32, #tpu.memory_space<vmem>>, %arg5: memref<1x1xf32, #tpu.memory_space<vmem>>, %arg6: memref<512x1xf32, #tpu.memory_space<vmem>>) attributes {dimension_semantics = [#tpu.dimension_semantics<parallel>], iteration_bounds = array<i64: 2>, scalar_prefetch = 0 : i64, scratch_operands = 0 : i64, tpu.core_type = #tpu.core_type<tc>, window_params = [{transform_indices = @transform_0, window_bounds = array<i64: 512, 1024>}, {pipeline_mode = #tpu.pipeline_mode<synchronous>, transform_indices = @transform_1, window_bounds = array<i64: 1024, 256>}, {pipeline_mode = #tpu.pipeline_mode<synchronous>, transform_indices = @transform_2, window_bounds = array<i64: 1, 256>}, {pipeline_mode = #tpu.pipeline_mode<synchronous>, transform_indices = @transform_3, window_bounds = array<i64: 1, 256>}, {pipeline_mode = #tpu.pipeline_mode<synchronous>, transform_indices = @transform_4, window_bounds = array<i64: 1, 1>}, {transform_indices = @transform_5, window_bounds = array<i64: 512, 1>}]} {
    %c0 = arith.constant 0 : index
    %c0_0 = arith.constant 0 : index
    %0 = vector.load %arg1[%c0, %c0_0] : memref<512x1024xbf16, #tpu.memory_space<vmem>>, vector<512x1024xbf16>
    %c0_1 = arith.constant 0 : index
    %c0_2 = arith.constant 0 : index
    %1 = vector.load %arg2[%c0_1, %c0_2] : memref<1024x256xbf16, #tpu.memory_space<vmem>>, vector<1024x256xbf16>
    %cst = arith.constant dense<0.000000e+00> : vector<512x256xf32>
    %2 = tpu.matmul %0, %1, %cst {dimension_numbers = #tpu.dot_dimension_numbers<[1], [0], [0], [1], [0, 0, 1, 1], [], []>} : vector<512x1024xbf16>, vector<1024x256xbf16>, vector<512x256xf32> -> vector<512x256xf32>
    %c0_3 = arith.constant 0 : index
    %c0_4 = arith.constant 0 : index
    %3 = vector.load %arg3[%c0_3, %c0_4] : memref<1x256xf32, #tpu.memory_space<vmem>>, vector<1x256xf32>
    %4 = vector.broadcast %3 : vector<1x256xf32> to vector<512x256xf32>
    %5 = arith.addf %2, %4 : vector<512x256xf32>
    %6 = math.tanh %5 : vector<512x256xf32>
    %c0_5 = arith.constant 0 : index
    %c0_6 = arith.constant 0 : index
    %7 = vector.load %arg4[%c0_5, %c0_6] : memref<1x256xf32, #tpu.memory_space<vmem>>, vector<1x256xf32>
    %8 = vector.broadcast %7 : vector<1x256xf32> to vector<512x256xf32>
    %9 = arith.mulf %6, %8 : vector<512x256xf32>
    %cst_7 = arith.constant dense<0.000000e+00> : vector<512xf32>
    %10 = vector.multi_reduction <add>, %9, %cst_7 [1] : vector<512x256xf32> to vector<512xf32>
    %11 = vector.shape_cast %10 : vector<512xf32> to vector<512x1xf32>
    %c0_8 = arith.constant 0 : index
    %c0_9 = arith.constant 0 : index
    %12 = vector.load %arg5[%c0_8, %c0_9] : memref<1x1xf32, #tpu.memory_space<vmem>>, vector<1x1xf32>
    %13 = vector.broadcast %12 : vector<1x1xf32> to vector<512x1xf32>
    %14 = arith.addf %11, %13 : vector<512x1xf32>
    %c0_10 = arith.constant 0 : index
    %c0_11 = arith.constant 0 : index
    %15 = vector.load %arg6[%c0_10, %c0_11] : memref<512x1xf32, #tpu.memory_space<vmem>>, vector<512x1xf32>
    tpu.vector_store %arg6[%c0_10, %c0_11], %14 {strides = array<i32>} : memref<512x1xf32, #tpu.memory_space<vmem>>, vector<512x1xf32>,
    return
  }
  func.func @transform_0(%arg0: i32) -> (i32, i32) {
    %c0_i32 = arith.constant 0 : i32
    %c0_i32_0 = arith.constant 0 : i32
    return %arg0, %c0_i32 : i32, i32
  }
  func.func @transform_1(%arg0: i32) -> (i32, i32) {
    %c0_i32 = arith.constant 0 : i32
    %c0_i32_0 = arith.constant 0 : i32
    %c0_i32_1 = arith.constant 0 : i32
    return %c0_i32, %c0_i32_0 : i32, i32
  }
  func.func @transform_2(%arg0: i32) -> (i32, i32) {
    %c0_i32 = arith.constant 0 : i32
    %c0_i32_0 = arith.constant 0 : i32
    %c0_i32_1 = arith.constant 0 : i32
    return %c0_i32, %c0_i32_0 : i32, i32
  }
  func.func @transform_3(%arg0: i32) -> (i32, i32) {
    %c0_i32 = arith.constant 0 : i32
    %c0_i32_0 = arith.constant 0 : i32
    %c0_i32_1 = arith.constant 0 : i32
    return %c0_i32, %c0_i32_0 : i32, i32
  }
  func.func @transform_4(%arg0: i32) -> (i32, i32) {
    %c0_i32 = arith.constant 0 : i32
    %c0_i32_0 = arith.constant 0 : i32
    %c0_i32_1 = arith.constant 0 : i32
    return %c0_i32, %c0_i32_0 : i32, i32
  }
  func.func @transform_5(%arg0: i32) -> (i32, i32) {
    %c0_i32 = arith.constant 0 : i32
    %c0_i32_0 = arith.constant 0 : i32
    return %arg0, %c0_i32 : i32, i32
  }
}

</mosaic_0001>

<bundles_post_ra>
// kernel: tpu_custom_call.1
= control target key start
LH: loop header
LB: loop body
LE: loop exit
PB: predicated region body
PF: predicated region fallthrough
CT: control target
= control target key end

     0   :  { %s7350_s0 = inlined_call_operand.hbm [shape: bf16[1024,1024], index: 0, kind: input, shape index: {}]   ;;  %s7351_s1 = inlined_call_operand.hbm [shape: bf16[1024,256], index: 1, kind: input, shape index: {}]   ;;  %s7352_s2 = inlined_call_operand.hbm [shape: f32[1,256], index: 2, kind: input, shape index: {}]   ;;  %s7353_s3 = inlined_call_operand.hbm [shape: f32[1,256], index: 3, kind: input, shape index: {}]   ;;  %s7354_s4 = inlined_call_operand.<no memory space> [shape: f32[1,1], index: 4, kind: input, shape index: {}]   ;;  %s7355_s5 = inlined_call_operand.vmem [shape: f32[1024,1], index: 5, kind: output, shape index: {}]  }
   0x1   :  { %v10_v0 = vstv %s7354_s4 }
   0x2   :  { %11 = vst [vmem:[#allocation2] sm:$0x1] %v10_v0 }
   0x3   :  { %12 = vsyncpa [#allocation4], 0 }
   0x4   :  { %14 = vsyncpa [#allocation4 + $0x1], 0 }
   0x5   :  { %15 = vsyncpa [#allocation6], 0 }
   0x6   :  { %16 = vsyncpa [#allocation9], 0  ;;  %s6351_s20 = smov 0   ;;  %s6353_s21 = smov 0  }
   0x7   :  { %s6355_s22 = smov 0   ;;  %s6357_s23 = smov 0  }
   0x8 LB: > { %s4710_s4 = sadd.s32 4294967295, %s6308_s23   ;;  %p42_p0 = scmp.ne.s32.totalorder %s6300_s21, %s6296_s20  ;;  %s6308_s23 = sphi %s6357_s23, %s7372_s23   ;;  %s6304_s22 = sphi %s6355_s22, %s7371_s22   ;;  %s6300_s21 = sphi %s6353_s21, %s7370_s21   ;;  %s6296_s20 = sphi %s6351_s20, %s7369_s20  }
   0x9   : > { %p6373_p1 = scmp.eq.s32.totalorder %s4710_s4, 0  ;;  %p4712_p2 = scmp.ge.s32.totalorder %s6308_s23, 1 }
   0xa   : > { %p163_p3 = scmp.lt.s32.totalorder %s6308_s23, 3  ;;  %s6310_s27 = smov [#allocation5]  }
   0xb   : > { %s7360_s24 = scalar_select %p6373_p1, 1, 0 }
   0xc   : > { %p6381_p4 = por %p6373_p1, %p42_p0  ;;  %p6385_p5 = pnand %p4712_p2, %p163_p3 }
   0xd   : > { %s175_s28 = sshll.u32 %s6310_s27, 4  ;;  %s6311_s30 = smov [#allocation7]   ;;  %s6389_s28 = int_to_ptr.vmem [resolvable:$true] %s175_s28 }
   0xe   : > { %s7361_s25 = scalar_select %p6381_p4, 1, 0 }
   0xf   : > { %s7362_s26 = scalar_select %p6385_p5, 1, 0 }
  0x10   : > { %p5643_p6 = pneg %p6385_p5  ;;  %s189_s6 = sshll.u32 %s6311_s30, 4  ;;  %s6399_s6 = int_to_ptr.vmem [resolvable:$true] %s189_s6 }
  0x11   : > { %s6312_s7 = smov [#allocation8]   ;;  %s6152_s11 = scalar_lea.hbm %s7351_s1, 16384 }
  0x12   : > { %p6395_p7 = pnand %p5643_p6, %p6373_p1  ;;  %s6401_s8 = sshll.u32 %s6312_s7, 4  ;;  %s201_s8 = int_to_ptr.vmem [resolvable:$true] %s6401_s8 }
  0x13   : > { %p6153_p8 = scmp.ne.s32.totalorder %s7351_s1, %s6152_s11  ;;  %p6159_p12 = scmp.lt.u32.totalorder %s6152_s11, %s7351_s1 }
  0x14   : > { %p6411_p9 = pneg %p6395_p7 }
  0x16   : > { %p6155_p10 = pnand %p6411_p9, %p6153_p8 }
  0x18   : > { %p6156_p11 = pneg %p6155_p10 }
  0x1a   : > { %p6161_p13 = pnand %p6159_p12, %p6156_p11 }
  0x1c   : > { %6164 = shalt.err (!%p6161_p13)
}
  0x1d   : > { %s6165_s17 = scalar_lea.vmem %s6389_s28, 16384  ;;  %p6173_p6 = scmp.lt.s32.totalorder %s6389_s28, %s6389_s28 }
  0x1e   : > { %p6166_p0 = scmp.ne.s32.totalorder %s6389_s28, %s6165_s17  ;;  %p6174_p1 = scmp.lt.s32.totalorder %s6165_s17, %s6165_s17 }
  0x20   : > { %p6168_p2 = pnand %p6166_p0, %p6411_p9  ;;  %p6175_p8 = por %p6174_p1, %p6173_p6 }
  0x22   : > { %p6169_p3 = pneg %p6168_p2 }
  0x24   : > { %p6176_p10 = pnand %p6175_p8, %p6169_p3 }
  0x26   : > { %6179 = shalt.err (!%p6176_p10)
}
  0x27   : > { %s6313_s18 = smov 128   ;;  %s6314_s19 = smov 8  }
  0x28   : > { %5646 = dma.hbm_to_vmem [thread:$0]  (!%p6395_p7), %s7351_s1, 16384, %s6389_s28, [#allocation6], %s6313_s18, %s6313_s18, %s6314_s19  }
  0x29   : > { %s6180_s9 = scalar_lea.hbm %s7352_s2, 32 }
  0x2a   : > { %p6181_p1 = scmp.ne.s32.totalorder %s7352_s2, %s6180_s9  ;;  %p6187_p13 = scmp.lt.u32.totalorder %s6180_s9, %s7352_s2 }
  0x2c   : > { %p6183_p11 = pnand %p6181_p1, %p6411_p9 }
  0x2e   : > { %p6184_p12 = pneg %p6183_p11 }
  0x30   : > { %p6189_p0 = pnand %p6187_p13, %p6184_p12 }
  0x32   : > { %6192 = shalt.err (!%p6189_p0)
}
  0x33   : > { %s6193_s28 = scalar_lea.vmem %s6399_s6, 32  ;;  %p6201_p8 = scmp.lt.s32.totalorder %s6399_s6, %s6399_s6 }
  0x34   : > { %p6194_p2 = scmp.ne.s32.totalorder %s6399_s6, %s6193_s28  ;;  %p6202_p10 = scmp.lt.s32.totalorder %s6193_s28, %s6193_s28 }
  0x36   : > { %p6196_p3 = pnand %p6194_p2, %p6411_p9  ;;  %p6203_p1 = por %p6202_p10, %p6201_p8 }
  0x38   : > { %p6197_p6 = pneg %p6196_p3 }
  0x3a   : > { %p6204_p11 = pnand %p6203_p1, %p6197_p6 }
  0x3c   : > { %6207 = shalt.err (!%p6204_p11)
}
  0x3d   : > { %5649 = dma.hbm_to_vmem [thread:$0]  (!%p6395_p7), %s7352_s2, 32, %s6399_s6, [#allocation6]  }
  0x3e   : > { %s6208_s19 = scalar_lea.hbm %s7353_s3, 32 }
  0x3f   : > { %p6209_p12 = scmp.ne.s32.totalorder %s7353_s3, %s6208_s19  ;;  %p6215_p2 = scmp.lt.u32.totalorder %s6208_s19, %s7353_s3 }
  0x41   : > { %p6211_p13 = pnand %p6209_p12, %p6411_p9 }
  0x43   : > { %p6212_p0 = pneg %p6211_p13 }
  0x45   : > { %p6217_p3 = pnand %p6215_p2, %p6212_p0 }
  0x47   : > { %6220 = shalt.err (!%p6217_p3)
}
  0x48   : > { %s6221_s9 = scalar_lea.vmem %s201_s8, 32  ;;  %p6229_p1 = scmp.lt.s32.totalorder %s201_s8, %s201_s8 }
  0x49   : > { %p6222_p6 = scmp.ne.s32.totalorder %s201_s8, %s6221_s9  ;;  %p6230_p11 = scmp.lt.s32.totalorder %s6221_s9, %s6221_s9 }
  0x4b   : > { %p6224_p8 = pnand %p6222_p6, %p6411_p9  ;;  %p6231_p4 = por %p6230_p11, %p6229_p1 }
  0x4d   : > { %p6225_p10 = pneg %p6224_p8 }
  0x4f   : > { %p6232_p5 = pnand %p6231_p4, %p6225_p10 }
  0x51   : > { %6235 = shalt.err (!%p6232_p5)
}
  0x52   : > { %5652 = dma.hbm_to_vmem [thread:$0]  (!%p6395_p7), %s7353_s3, 32, %s201_s8, [#allocation9]  }
  0x53   : > { %s6475_s14 = sadd.s32 1, %s6308_s23   ;;  %s29_s12 = sadd.s32 1, %s6304_s22 }
  0x54   : > { %s26_s11 = ssub.s32 %s6308_s23, %s6475_s14  ;;  %p36_p5 = scmp.ne.s32.totalorder %s6304_s22, %s6300_s21 }
  0x55   : > { %p27_p4 = scmp.eq.s32.totalorder %s26_s11, 0  ;;  %p37_p9 = scmp.eq.s32.totalorder %s6308_s23, 0 }
  0x56   : > { %p5660_p12 = scmp.lt.s32.totalorder %s6308_s23, 2  ;;  %s214_s13 = sand.u32 1, %s6304_s22  }
  0x57   : > { %s6485_s29 = scalar_select %p27_p4, %s6304_s22, %s29_s12  }
  0x58   : > { %p38_p13 = por %p37_p9, %p36_p5  ;;  %s4717_s28 = sshll.u32 %s214_s13, 11 }
  0x59   : > { %s5116_s15 = sshll.u32 %s6308_s23, 15  ;;  %s218_s8 = scalar_lea.vmem [#allocation3], %s4717_s28 }
  0x5a   : > { %s6492_s18 = scalar_lea.hbm %s7350_s0, %s5116_s15  ;;  %s226_s19 = sshll.u32 %s218_s8, 4  ;;  %s6494_s19 = int_to_ptr.vmem [resolvable:$true] %s226_s19 }
  0x5b   : > { %p6496_p7 = pnand %p5660_p12, %p38_p13  ;;  %s6500_s27 = scalar_lea.sflag [#allocation4], %s214_s13 }
  0x5c   : > { %s6236_s30 = scalar_lea.hbm %s6492_s18, 32768  ;;  %s6241_s6 = scalar_lea.hbm %s7350_s0, 65536 }
  0x5d   : > { %p6237_p0 = scmp.ne.s32.totalorder %s6492_s18, %s6236_s30  ;;  %p6238_p2 = pneg %p6496_p7 }
  0x5e   : > { %p6242_p8 = scmp.lt.u32.totalorder %s6492_s18, %s7350_s0  ;;  %p6243_p10 = scmp.lt.u32.totalorder %s6241_s6, %s6236_s30 }
  0x5f   : > { %p6239_p3 = pnand %p6238_p2, %p6237_p0  ;;  %p6245_p11 = scmp.lt.u32.totalorder %s6236_s30, %s6492_s18 }
  0x60   : > { %p6244_p1 = por %p6243_p10, %p6242_p8 }
  0x61   : > { %p6240_p6 = pneg %p6239_p3 }
  0x62   : > { %p6246_p4 = por %p6245_p11, %p6244_p1 }
  0x64   : > { %p6247_p5 = pnand %p6246_p4, %p6240_p6 }
  0x66   : > { %6250 = shalt.err (!%p6247_p5)
}
  0x67   : > { %s6251_s12 = scalar_lea.vmem %s6494_s19, 32768  ;;  %s6315_s13 = smov [#allocation3]  }
  0x68   : > { %p6252_p9 = scmp.ne.s32.totalorder %s6494_s19, %s6251_s12  ;;  %s6256_s28 = sshll.u32 %s6315_s13, 4  ;;  %s6257_s28 = int_to_ptr.vmem [resolvable:$false] %s6256_s28 }
  0x69   : > { %s6258_s15 = scalar_lea.vmem %s6257_s28, 65536  ;;  %p6259_p0 = scmp.lt.s32.totalorder %s6494_s19, %s6257_s28 }
  0x6a   : > { %p6254_p12 = pnand %p6252_p9, %p6238_p2  ;;  %p6260_p3 = scmp.lt.s32.totalorder %s6258_s15, %s6251_s12 }
  0x6c   : > { %p6255_p13 = pneg %p6254_p12  ;;  %p6261_p8 = por %p6260_p3, %p6259_p0 }
  0x6e   : > { %p6262_p10 = pnand %p6261_p8, %p6255_p13 }
  0x70   : > { %6265 = shalt.err (!%p6262_p10)
}
  0x71   : > { %s6316_s16 = smov 512   ;;  %s6317_s17 = smov 32  }
  0x72   : > { %5656 = dma.hbm_to_vmem [thread:$0]  (!%p6496_p7), %s6492_s18, 32768, %s6494_s19, %s6500_s27, %s6316_s16, %s6316_s16, %s6317_s17  }
  0x73   : > { %p7366_p2 = scmp.ne.s32.totalorder %s7362_s26, 0 }
  0x74   : > { %s240_s8 = sand.u32 (!%p7366_p2), 1, %s6300_s21   ;;  %p7367_p6 = scmp.ne.s32.totalorder (!%p7366_p2), %s7361_s25, 0 }
  0x75   : > { %238 = sbr.rel (%p7366_p2) target bundleno = 1081 (0x439), region = 40  ;;  %s4722_s30 = sshll.u32 (!%p7366_p2), %s240_s8, 11 }
  0x76   : > { %s241_s7 = scalar_lea.sflag (!%p7366_p2), [#allocation4], %s240_s8  ;;  %s6531_s9 = scalar_lea.vmem (!%p7366_p2), [#allocation3], %s4722_s30 }
  0x7c   : > { %6283 = dma.done.wait (%p7367_p6), %s241_s7, 32768  }
  0x7d   : > { %6285 = vsyncadd (%p7367_p6), %s241_s7, 4294934528  ;;  %p7368_p1 = scmp.ne.s32.totalorder %s7360_s24, 0 }
  0x7f   : > { %6287 = dma.done.wait (%p7368_p1), [#allocation6], 16416  }
  0x80   : > { %6289 = vsyncadd (%p7368_p1), [#allocation6], 4294950880 }
  0x81   : > { %6291 = dma.done.wait (%p7368_p1), [#allocation9], 32  }
  0x82   : > { %6293 = vsyncadd (%p7368_p1), [#allocation9], 4294967264  ;;  %v5703_v1 = vld [vmem:[#allocation5 + $0x4] ss:$8 sps:$4 sm:$0xff]   ;;  %v5707_v3 = vld [vmem:[#allocation5] ss:$8 sps:$4 sm:$0xff]  }
  0x83   : > { %v5705_v2 = vld [vmem:[#allocation5 + $0x204] ss:$8 sps:$4 sm:$0xff]   ;;  %2606 = vmatprep.subr.bf16.mxu1 %v5703_v1  ;;  %v5708_v4 = vld [vmem:[#allocation5 + $0x200] ss:$8 sps:$4 sm:$0xff]   ;;  %v5709_v5 = vld [vmem:[#allocation5 + $0x14] ss:$8 sps:$4 sm:$0xff]  }
  0x84   : > { %3312 = vmatprep.subr.bf16.mxu0 %v5705_v2  ;;  %2607 = vmatpush1.bf16.msra.mxu1 %v5707_v3  ;;  %v5711_v6 = vld [vmem:[#allocation5 + $0x214] ss:$8 sps:$4 sm:$0xff]   ;;  %v5713_v7 = vld [vmem:[#allocation5 + $0x10] ss:$8 sps:$4 sm:$0xff]   ;;  %v5715_v9 = vld [vmem:[#allocation5 + $0x24] ss:$8 sps:$4 sm:$0xff]  }
  0x85   : > { %3313 = vmatpush1.bf16.msra.mxu0 %v5708_v4  ;;  %2608 = vmatprep.subr.bf16.mxu1 %v5709_v5  ;;  %v5714_v8 = vld [vmem:[#allocation5 + $0x210] ss:$8 sps:$4 sm:$0xff]   ;;  %v5717_v10 = vld [vmem:[#allocation5 + $0x224] ss:$8 sps:$4 sm:$0xff]   ;;  %v5719_v11 = vld [vmem:[#allocation5 + $0x20] ss:$8 sps:$4 sm:$0xff]  }
  0x86   : > { %3314 = vmatprep.subr.bf16.mxu0 %v5711_v6  ;;  %v5720_v12 = vld [vmem:[#allocation5 + $0x220] ss:$8 sps:$4 sm:$0xff]   ;;  %v5721_v13 = vld [vmem:[#allocation5 + $0x34] ss:$8 sps:$4 sm:$0xff]   ;;  %v5725_v15 = vld [vmem:[#allocation5 + $0x30] ss:$8 sps:$4 sm:$0xff]  }
  0x87   : > { %v5723_v14 = vld [vmem:[#allocation5 + $0x234] ss:$8 sps:$4 sm:$0xff]   ;;  %v5726_v16 = vld [vmem:[#allocation5 + $0x230] ss:$8 sps:$4 sm:$0xff]   ;;  %v5727_v17 = vld [vmem:[#allocation5 + $0x44] ss:$8 sps:$4 sm:$0xff]  }
  0x88   : > { %2609 = vmatpush1.bf16.msra.mxu1 %v5713_v7  ;;  %v5729_v18 = vld [vmem:[#allocation5 + $0x244] ss:$8 sps:$4 sm:$0xff]   ;;  %v5731_v19 = vld [vmem:[#allocation5 + $0x40] ss:$8 sps:$4 sm:$0xff]   ;;  %v5733_v21 = vld [vmem:[#allocation5 + $0x54] ss:$8 sps:$4 sm:$0xff]  }
  0x89   : > { %3315 = vmatpush1.bf16.msra.mxu0 %v5714_v8  ;;  %2610 = vmatprep.subr.bf16.mxu1 %v5715_v9  ;;  %v5732_v20 = vld [vmem:[#allocation5 + $0x240] ss:$8 sps:$4 sm:$0xff]   ;;  %v5735_v22 = vld [vmem:[#allocation5 + $0x254] ss:$8 sps:$4 sm:$0xff]   ;;  %v5737_v23 = vld [vmem:[#allocation5 + $0x50] ss:$8 sps:$4 sm:$0xff]  }
  0x8a   : > { %3316 = vmatprep.subr.bf16.mxu0 %v5717_v10  ;;  %v5738_v24 = vld [vmem:[#allocation5 + $0x250] ss:$8 sps:$4 sm:$0xff]   ;;  %v5739_v25 = vld [vmem:[#allocation5 + $0x64] ss:$8 sps:$4 sm:$0xff]   ;;  %v5743_v27 = vld [vmem:[#allocation5 + $0x60] ss:$8 sps:$4 sm:$0xff]  }
  0x8b   : > { %v5741_v26 = vld [vmem:[#allocation5 + $0x264] ss:$8 sps:$4 sm:$0xff]   ;;  %v5744_v28 = vld [vmem:[#allocation5 + $0x260] ss:$8 sps:$4 sm:$0xff]   ;;  %v5745_v29 = vld [vmem:[#allocation5 + $0x74] ss:$8 sps:$4 sm:$0xff]  }
  0x8c   : > { %2611 = vmatpush1.bf16.msra.mxu1 %v5719_v11  ;;  %v5747_v30 = vld [vmem:[#allocation5 + $0x274] ss:$8 sps:$4 sm:$0xff]   ;;  %v5749_v31 = vld [vmem:[#allocation5 + $0x70] ss:$8 sps:$4 sm:$0xff]   ;;  %v5751_v33 = vld [vmem:[#allocation5 + $0x84] ss:$8 sps:$4 sm:$0xff]  }
  0x8d   : > { %3317 = vmatpush1.bf16.msra.mxu0 %v5720_v12  ;;  %2612 = vmatprep.subr.bf16.mxu1 %v5721_v13  ;;  %v5750_v32 = vld [vmem:[#allocation5 + $0x270] ss:$8 sps:$4 sm:$0xff]   ;;  %v5753_v34 = vld [vmem:[#allocation5 + $0x284] ss:$8 sps:$4 sm:$0xff]   ;;  %v5755_v35 = vld [vmem:[#allocation5 + $0x80] ss:$8 sps:$4 sm:$0xff]  }
  0x8e   : > { %3318 = vmatprep.subr.bf16.mxu0 %v5723_v14  ;;  %v5756_v36 = vld [vmem:[#allocation5 + $0x280] ss:$8 sps:$4 sm:$0xff]   ;;  %v5757_v37 = vld [vmem:[#allocation5 + $0x94] ss:$8 sps:$4 sm:$0xff]   ;;  %v5761_v39 = vld [vmem:[#allocation5 + $0x90] ss:$8 sps:$4 sm:$0xff]  }
  0x8f   : > { %v5759_v38 = vld [vmem:[#allocation5 + $0x294] ss:$8 sps:$4 sm:$0xff]   ;;  %v5762_v40 = vld [vmem:[#allocation5 + $0x290] ss:$8 sps:$4 sm:$0xff]   ;;  %v5763_v41 = vld [vmem:[#allocation5 + $0xa4] ss:$8 sps:$4 sm:$0xff]  }
  0x90   : > { %2613 = vmatpush1.bf16.msra.mxu1 %v5725_v15  ;;  %v5765_v42 = vld [vmem:[#allocation5 + $0x2a4] ss:$8 sps:$4 sm:$0xff]   ;;  %v5767_v43 = vld [vmem:[#allocation5 + $0xa0] ss:$8 sps:$4 sm:$0xff]   ;;  %v5769_v45 = vld [vmem:[#allocation5 + $0xb4] ss:$8 sps:$4 sm:$0xff]  }
  0x91   : > { %3319 = vmatpush1.bf16.msra.mxu0 %v5726_v16  ;;  %2614 = vmatprep.subr.bf16.mxu1 %v5727_v17  ;;  %v5768_v44 = vld [vmem:[#allocation5 + $0x2a0] ss:$8 sps:$4 sm:$0xff]   ;;  %v5771_v46 = vld [vmem:[#allocation5 + $0x2b4] ss:$8 sps:$4 sm:$0xff]   ;;  %v5773_v47 = vld [vmem:[#allocation5 + $0xb0] ss:$8 sps:$4 sm:$0xff]  }
  0x92   : > { %3320 = vmatprep.subr.bf16.mxu0 %v5729_v18  ;;  %v5774_v48 = vld [vmem:[#allocation5 + $0x2b0] ss:$8 sps:$4 sm:$0xff]   ;;  %v290_v49 = vld [vmem:[%s6531_s9] sm:$0xff]  ;;  %v5781_v59 = vld [vmem:[#allocation5 + $0xd4] ss:$8 sps:$4 sm:$0xff]   ;;  %s7015_s24 = sshll.u32 %s4710_s4, 6 }
  0x93   : > { %v294_v50 = vld [vmem:[%s6531_s9 + $0x20] sm:$0xff]  ;;  %v292_v51 = vld [vmem:[%s6531_s9 + $0x10] sm:$0xff]  ;;  %p285_p7 = scmp.lt.s32.totalorder %s7015_s24, 127  ;;  %vm4549_vm0 = vcmask 7168  }
  0x94   : > { %2615 = vmatpush1.bf16.msra.mxu1 %v5731_v19  ;;  %v296_v52 = vld [vmem:[%s6531_s9 + $0x30] sm:$0xff]  ;;  %v5775_v53 = vld [vmem:[#allocation5 + $0xc4] ss:$8 sps:$4 sm:$0xff]   ;;  %v4729_v54 = vcombine.high %v290_v49, %v294_v50  ;;  %v5779_v57 = vld [vmem:[#allocation5 + $0xc0] ss:$8 sps:$4 sm:$0xff]   ;;  %v4728_v13 = vcombine.low %v290_v49, %v294_v50 }
  0x95   : > { %3321 = vmatpush1.bf16.msra.mxu0 %v5732_v20  ;;  %2616 = vmatprep.subr.bf16.mxu1 %v5733_v21  ;;  %v5777_v55 = vld [vmem:[#allocation5 + $0x2c4] ss:$8 sps:$4 sm:$0xff]   ;;  %v4733_v56 = vcombine.high %v292_v51, %v296_v52  ;;  %v5780_v58 = vld [vmem:[#allocation5 + $0x2c0] ss:$8 sps:$4 sm:$0xff]   ;;  %v5783_v60 = vld [vmem:[#allocation5 + $0x2d4] ss:$8 sps:$4 sm:$0xff]   ;;  %v4732_v14 = vcombine.low %v292_v51, %v296_v52 }
  0x96   : > { %3322 = vmatprep.subr.bf16.mxu0 %v5735_v22  ;;  %2638 = vmatprep.mubr.bf16.mxu1 %v4729_v54  ;;  %v5785_v61 = vld [vmem:[#allocation5 + $0xd0] ss:$8 sps:$4 sm:$0xff]   ;;  %v5787_v63 = vld [vmem:[#allocation5 + $0xe4] ss:$8 sps:$4 sm:$0xff]   ;;  %v5791_v1 = vld [vmem:[#allocation5 + $0xe0] ss:$8 sps:$4 sm:$0xff]  }
  0x97   : > { %3344 = vmatprep.mubr.bf16.mxu0 %v4733_v56  ;;  %v5786_v62 = vld [vmem:[#allocation5 + $0x2d0] ss:$8 sps:$4 sm:$0xff]   ;;  %v5789_v0 = vld [vmem:[#allocation5 + $0x2e4] ss:$8 sps:$4 sm:$0xff]   ;;  %v5792_v2 = vld [vmem:[#allocation5 + $0x2e0] ss:$8 sps:$4 sm:$0xff]  }
  0x98   : > { %2617 = vmatpush1.bf16.msra.mxu1 %v5737_v23  ;;  %v5793_v3 = vld [vmem:[#allocation5 + $0xf4] ss:$8 sps:$4 sm:$0xff]   ;;  %v5797_v5 = vld [vmem:[#allocation5 + $0xf0] ss:$8 sps:$4 sm:$0xff]   ;;  %v5801_v7 = vld [vmem:[#allocation5 + $0x104] ss:$8 sps:$4 sm:$0xff]  }
  0x99   : > { %3323 = vmatpush1.bf16.msra.mxu0 %v5738_v24  ;;  %2618 = vmatprep.subr.bf16.mxu1 %v5739_v25  ;;  %v5795_v4 = vld [vmem:[#allocation5 + $0x2f4] ss:$8 sps:$4 sm:$0xff]   ;;  %v5798_v6 = vld [vmem:[#allocation5 + $0x2f0] ss:$8 sps:$4 sm:$0xff]   ;;  %v5804_v8 = vld [vmem:[#allocation5 + $0x304] ss:$8 sps:$4 sm:$0xff]  }
  0x9a   : > { %3324 = vmatprep.subr.bf16.mxu0 %v5741_v26  ;;  %v298_v9 = vld [vmem:[%s6531_s9 + $0x40] sm:$0xff]  ;;  %v300_v11 = vld [vmem:[%s6531_s9 + $0x50] sm:$0xff]  ;;  %s7374_s24 = smov (!%p285_p7, %s7015_s24), 127 }
  0x9b   : > { %v302_v10 = vld [vmem:[%s6531_s9 + $0x60] sm:$0xff]  ;;  %v304_v12 = vld [vmem:[%s6531_s9 + $0x70] sm:$0xff]  ;;  %s4727_s23 = sshll.u32 %s7374_s24, 3 }
  0x9c   : > { %2619 = vmatpush1.bf16.msra.mxu1 %v5743_v27  ;;  %v5799_v15 = vld [vmem:[#allocation5 + $0x100] ss:$8 sps:$4 sm:$0xff]   ;;  %v4737_v17 = vcombine.high %v298_v9, %v302_v10  ;;  %v4741_v18 = vcombine.high %v300_v11, %v304_v12  ;;  %v5807_v19 = vld [vmem:[#allocation5 + $0x114] ss:$8 sps:$4 sm:$0xff]   ;;  %v5805_v24 = vld [vmem:[#allocation5 + $0x110] ss:$8 sps:$4 sm:$0xff]   ;;  %s7042_s26 = scalar_lea.vmem %s7355_s5, %s4727_s23 }
  0x9d   : > { %3325 = vmatpush1.bf16.msra.mxu0 %v5744_v28  ;;  %2620 = vmatprep.subr.bf16.mxu1 %v5745_v29  ;;  %v5802_v16 = vld [vmem:[#allocation5 + $0x300] ss:$8 sps:$4 sm:$0xff]   ;;  %v5810_v20 = vld [vmem:[#allocation5 + $0x314] ss:$8 sps:$4 sm:$0xff]   ;;  %v5808_v25 = vld [vmem:[#allocation5 + $0x310] ss:$8 sps:$4 sm:$0xff]   ;;  %v4736_v29 = vcombine.low %v298_v9, %v302_v10 }
  0x9e   : > { %3326 = vmatprep.subr.bf16.mxu0 %v5747_v30  ;;  %v306_v21 = vld [vmem:[%s6531_s9 + $0x80] sm:$0xff]  ;;  %v308_v23 = vld [vmem:[%s6531_s9 + $0x90] sm:$0xff]  ;;  %v4740_v30 = vcombine.low %v300_v11, %v304_v12 }
  0x9f   : > { %v310_v22 = vld [vmem:[%s6531_s9 + $0xa0] sm:$0xff]  ;;  %v312_v26 = vld [vmem:[%s6531_s9 + $0xb0] sm:$0xff] }
  0xa0   : > { %2621 = vmatpush1.bf16.msra.mxu1 %v5749_v31  ;;  %v5813_v27 = vld [vmem:[#allocation5 + $0x124] ss:$8 sps:$4 sm:$0xff]   ;;  %v4745_v31 = vcombine.high %v306_v21, %v310_v22  ;;  %v5823_v49 = vld [vmem:[#allocation5 + $0x140] ss:$8 sps:$4 sm:$0xff]   ;;  %v5831_v51 = vld [vmem:[#allocation5 + $0x154] ss:$8 sps:$4 sm:$0xff]  }
  0xa1   : > { %3327 = vmatpush1.bf16.msra.mxu0 %v5750_v32  ;;  %2622 = vmatprep.subr.bf16.mxu1 %v5751_v33  ;;  %v5816_v28 = vld [vmem:[#allocation5 + $0x324] ss:$8 sps:$4 sm:$0xff]   ;;  %v4749_v32 = vcombine.high %v308_v23, %v312_v26  ;;  %v5811_v33 = vld [vmem:[#allocation5 + $0x120] ss:$8 sps:$4 sm:$0xff]   ;;  %v5834_v52 = vld [vmem:[#allocation5 + $0x354] ss:$8 sps:$4 sm:$0xff]  }
  0xa2   : > { %3328 = vmatprep.subr.bf16.mxu0 %v5753_v34  ;;  %v5814_v34 = vld [vmem:[#allocation5 + $0x320] ss:$8 sps:$4 sm:$0xff]   ;;  %v328_v56 = vld [vmem:[%s6531_s9 + $0x130] sm:$0xff]  ;;  %v5849_v11 = vld [vmem:[#allocation5 + $0x184] ss:$8 sps:$4 sm:$0xff]  }
  0xa3   : > { %v5826_v50 = vld [vmem:[#allocation5 + $0x340] ss:$8 sps:$4 sm:$0xff]   ;;  %v5841_v9 = vld [vmem:[#allocation5 + $0x170] ss:$8 sps:$4 sm:$0xff]   ;;  %v5852_v12 = vld [vmem:[#allocation5 + $0x384] ss:$8 sps:$4 sm:$0xff]  }
  0xa4   : > { %2623 = vmatpush1.bf16.msra.mxu1 %v5755_v35  ;;  %v5819_v35 = vld [vmem:[#allocation5 + $0x134] ss:$8 sps:$4 sm:$0xff]   ;;  %v326_v54 = vld [vmem:[%s6531_s9 + $0x120] sm:$0xff]  ;;  %v5844_v10 = vld [vmem:[#allocation5 + $0x370] ss:$8 sps:$4 sm:$0xff]  }
  0xa5   : > { %3329 = vmatpush1.bf16.msra.mxu0 %v5756_v36  ;;  %2624 = vmatprep.subr.bf16.mxu1 %v5757_v37  ;;  %v5822_v36 = vld [vmem:[#allocation5 + $0x334] ss:$8 sps:$4 sm:$0xff]   ;;  %v314_v37 = vld [vmem:[%s6531_s9 + $0xc0] sm:$0xff] }
  0xa6   : > { %3330 = vmatprep.subr.bf16.mxu0 %v5759_v38  ;;  %v318_v38 = vld [vmem:[%s6531_s9 + $0xe0] sm:$0xff] }
  0xa8   : > { %2625 = vmatpush1.bf16.msra.mxu1 %v5761_v39  ;;  %v316_v39 = vld [vmem:[%s6531_s9 + $0xd0] sm:$0xff] }
  0xa9   : > { %3331 = vmatpush1.bf16.msra.mxu0 %v5762_v40  ;;  %2626 = vmatprep.subr.bf16.mxu1 %v5763_v41  ;;  %v320_v40 = vld [vmem:[%s6531_s9 + $0xf0] sm:$0xff] }
  0xaa   : > { %3332 = vmatprep.subr.bf16.mxu0 %v5765_v42  ;;  %v5817_v41 = vld [vmem:[#allocation5 + $0x130] ss:$8 sps:$4 sm:$0xff]  }
  0xab   : > { %v5820_v42 = vld [vmem:[#allocation5 + $0x330] ss:$8 sps:$4 sm:$0xff]  }
  0xac   : > { %2627 = vmatpush1.bf16.msra.mxu1 %v5767_v43  ;;  %v5825_v43 = vld [vmem:[#allocation5 + $0x144] ss:$8 sps:$4 sm:$0xff]  }
  0xad   : > { %3333 = vmatpush1.bf16.msra.mxu0 %v5768_v44  ;;  %2628 = vmatprep.subr.bf16.mxu1 %v5769_v45  ;;  %v5828_v44 = vld [vmem:[#allocation5 + $0x344] ss:$8 sps:$4 sm:$0xff]   ;;  %v4744_v45 = vcombine.low %v306_v21, %v310_v22 }
  0xae   : > { %3334 = vmatprep.subr.bf16.mxu0 %v5771_v46  ;;  %v4748_v46 = vcombine.low %v308_v23, %v312_v26  ;;  %v338_v21 = vld [vmem:[%s6531_s9 + $0x180] sm:$0xff]  ;;  %v340_v23 = vld [vmem:[%s6531_s9 + $0x190] sm:$0xff] }
  0xaf   : > { %v342_v22 = vld [vmem:[%s6531_s9 + $0x1a0] sm:$0xff]  ;;  %v5856_v26 = vld [vmem:[#allocation5 + $0x390] ss:$8 sps:$4 sm:$0xff]  }
  0xb0   : > { %2629 = vmatpush1.bf16.msra.mxu1 %v5773_v47  ;;  %v4753_v47 = vcombine.high %v314_v37, %v318_v38 }
  0xb1   : > { %3335 = vmatpush1.bf16.msra.mxu0 %v5774_v48  ;;  %2630 = vmatprep.subr.bf16.mxu1 %v5775_v53  ;;  %v4757_v48 = vcombine.high %v316_v39, %v320_v40  ;;  %v322_v53 = vld [vmem:[%s6531_s9 + $0x100] sm:$0xff] }
  0xb2   : > { %3336 = vmatprep.subr.bf16.mxu0 %v5777_v55  ;;  %v324_v55 = vld [vmem:[%s6531_s9 + $0x110] sm:$0xff] }
  0xb4   : > { %2631 = vmatpush1.bf16.msra.mxu1 %v5779_v57  ;;  %v5829_v57 = vld [vmem:[#allocation5 + $0x150] ss:$8 sps:$4 sm:$0xff]  }
  0xb5   : > { %3337 = vmatpush1.bf16.msra.mxu0 %v5780_v58  ;;  %2632 = vmatprep.subr.bf16.mxu1 %v5781_v59  ;;  %v5832_v58 = vld [vmem:[#allocation5 + $0x350] ss:$8 sps:$4 sm:$0xff]   ;;  %v5837_v59 = vld [vmem:[#allocation5 + $0x164] ss:$8 sps:$4 sm:$0xff]  }
  0xb6   : > { %3338 = vmatprep.subr.bf16.mxu0 %v5783_v60  ;;  %v5840_v60 = vld [vmem:[#allocation5 + $0x364] ss:$8 sps:$4 sm:$0xff]  }
  0xb8   : > { %2633 = vmatpush1.bf16.msra.mxu1 %v5785_v61  ;;  %v4752_v61 = vcombine.low %v314_v37, %v318_v38  ;;  %v348_v37 = vld [vmem:[%s6531_s9 + $0x1d0] sm:$0xff] }
  0xb9   : > { %3339 = vmatpush1.bf16.msra.mxu0 %v5786_v62  ;;  %2634 = vmatprep.subr.bf16.mxu1 %v5787_v63  ;;  %v4756_v62 = vcombine.low %v316_v39, %v320_v40  ;;  %v4761_v63 = vcombine.high %v322_v53, %v326_v54  ;;  %v352_v38 = vld [vmem:[%s6531_s9 + $0x1f0] sm:$0xff]  ;;  %v4776_v39 = vcombine.low %v338_v21, %v342_v22 }
  0xba   : > { %3340 = vmatprep.subr.bf16.mxu0 %v5789_v0  ;;  %v4765_v0 = vcombine.high %v324_v55, %v328_v56 }
  0xbc   : > { %2635 = vmatpush1.bf16.msra.mxu1 %v5791_v1  ;;  %v5835_v1 = vld [vmem:[#allocation5 + $0x160] ss:$8 sps:$4 sm:$0xff]  }
  0xbd   : > { %3341 = vmatpush1.bf16.msra.mxu0 %v5792_v2  ;;  %2636 = vmatprep.subr.bf16.mxu1 %v5793_v3  ;;  %v5838_v2 = vld [vmem:[#allocation5 + $0x360] ss:$8 sps:$4 sm:$0xff]   ;;  %v5843_v3 = vld [vmem:[#allocation5 + $0x174] ss:$8 sps:$4 sm:$0xff]  }
  0xbe   : > { %3342 = vmatprep.subr.bf16.mxu0 %v5795_v4  ;;  %v5846_v4 = vld [vmem:[#allocation5 + $0x374] ss:$8 sps:$4 sm:$0xff]  }
  0xc0   : > { %2637 = vmatpush1.bf16.msra.mxu1 %v5797_v5  ;;  %v330_v5 = vld [vmem:[%s6531_s9 + $0x140] sm:$0xff] }
  0xc1   : > { %3343 = vmatpush1.bf16.msra.mxu0 %v5798_v6  ;;  %2959 = vmatprep.subr.bf16.mxu1 %v5801_v7  ;;  %v334_v6 = vld [vmem:[%s6531_s9 + $0x160] sm:$0xff]  ;;  %v332_v7 = vld [vmem:[%s6531_s9 + $0x150] sm:$0xff] }
  0xc2   : > { %3665 = vmatprep.subr.bf16.mxu0 %v5804_v8  ;;  %v336_v8 = vld [vmem:[%s6531_s9 + $0x170] sm:$0xff] }
  0xc3   : > { %2639 = vmatmul.mubr.bf16.vlgmr.msra.gmra.mrb[0].mxu1 %v4728_v13  ;;  %v4760_v13 = vcombine.low %v322_v53, %v326_v54 }
  0xc4   : > { %3345 = vmatmul.mubr.bf16.vlgmr.msra.gmra.mrb[0].mxu0 %v4732_v14  ;;  %2960 = vmatpush1.bf16.msra.mxu1 %v5799_v15  ;;  %v4764_v14 = vcombine.low %v324_v55, %v328_v56  ;;  %v4769_v15 = vcombine.high %v330_v5, %v334_v6  ;;  %v362_v55 = vld [vmem:[%s6531_s9 + $0x240] sm:$0xff] }
  0xc5   : > { %3666 = vmatpush1.bf16.msra.mxu0 %v5802_v16  ;;  %2648 = vmatprep.mubr.bf16.mxu1 %v4737_v17  ;;  %v4773_v16 = vcombine.high %v332_v7, %v336_v8  ;;  %v5847_v17 = vld [vmem:[#allocation5 + $0x180] ss:$8 sps:$4 sm:$0xff]  }
  0xc6   : > { %3354 = vmatprep.mubr.bf16.mxu0 %v4741_v18  ;;  %2961 = vmatprep.subr.bf16.mxu1 %v5807_v19  ;;  %v5850_v18 = vld [vmem:[#allocation5 + $0x380] ss:$8 sps:$4 sm:$0xff]   ;;  %v5855_v19 = vld [vmem:[#allocation5 + $0x194] ss:$8 sps:$4 sm:$0xff]  }
  0xc7   : > { %3667 = vmatprep.subr.bf16.mxu0 %v5810_v20  ;;  %v5858_v20 = vld [vmem:[#allocation5 + $0x394] ss:$8 sps:$4 sm:$0xff]   ;;  %v366_v56 = vld [vmem:[%s6531_s9 + $0x260] sm:$0xff] }
  0xc8   : > { %2962 = vmatpush1.bf16.msra.mxu1 %v5805_v24  ;;  %v344_v24 = vld [vmem:[%s6531_s9 + $0x1b0] sm:$0xff] }
  0xc9   : > { %3668 = vmatpush1.bf16.msra.mxu0 %v5808_v25  ;;  %2963 = vmatprep.subr.bf16.mxu1 %v5813_v27  ;;  %v5853_v25 = vld [vmem:[#allocation5 + $0x190] ss:$8 sps:$4 sm:$0xff]   ;;  %v5861_v27 = vld [vmem:[#allocation5 + $0x1a4] ss:$8 sps:$4 sm:$0xff]   ;;  %v4780_v40 = vcombine.low %v340_v23, %v344_v24 }
  0xca   : > { %3669 = vmatprep.subr.bf16.mxu0 %v5816_v28  ;;  %v5864_v28 = vld [vmem:[#allocation5 + $0x3a4] ss:$8 sps:$4 sm:$0xff]  }
  0xcb   : > { %2649 = vmatmul.mubr.bf16.gmra.mrb[4].mxu1 %v4736_v29  ;;  %v4768_v29 = vcombine.low %v330_v5, %v334_v6  ;;  %v372_v5 = vld [vmem:[%s6531_s9 + $0x290] sm:$0xff] }
  0xcc   : > { %3355 = vmatmul.mubr.bf16.gmra.mrb[4].mxu0 %v4740_v30  ;;  %2658 = vmatprep.mubr.bf16.mxu1 %v4745_v31  ;;  %v4772_v30 = vcombine.low %v332_v7, %v336_v8  ;;  %v5859_v31 = vld [vmem:[#allocation5 + $0x1a0] ss:$8 sps:$4 sm:$0xff]   ;;  %v376_v6 = vld [vmem:[%s6531_s9 + $0x2b0] sm:$0xff]  ;;  %v4800_v7 = vcombine.low %v362_v55, %v366_v56 }
  0xcd   : > { %3364 = vmatprep.mubr.bf16.mxu0 %v4749_v32  ;;  %2964 = vmatpush1.bf16.msra.mxu1 %v5811_v33  ;;  %v5862_v32 = vld [vmem:[#allocation5 + $0x3a0] ss:$8 sps:$4 sm:$0xff]   ;;  %v4777_v33 = vcombine.high %v338_v21, %v342_v22  ;;  %v5880_v21 = vld [vmem:[#allocation5 + $0x3d0] ss:$8 sps:$4 sm:$0xff]  }
  0xce   : > { %3670 = vmatpush1.bf16.msra.mxu0 %v5814_v34  ;;  %2965 = vmatprep.subr.bf16.mxu1 %v5819_v35  ;;  %v4781_v34 = vcombine.high %v340_v23, %v344_v24  ;;  %v346_v35 = vld [vmem:[%s6531_s9 + $0x1c0] sm:$0xff]  ;;  %v5882_v23 = vld [vmem:[#allocation5 + $0x3d4] ss:$8 sps:$4 sm:$0xff]  }
  0xcf   : > { %3671 = vmatprep.subr.bf16.mxu0 %v5822_v36  ;;  %v350_v36 = vld [vmem:[%s6531_s9 + $0x1e0] sm:$0xff] }
  0xd0   : > { %v386_v22 = vld [vmem:[%s6531_s9 + $0x300] sm:$0xff] }
  0xd1   : > { %2966 = vmatpush1.bf16.msra.mxu1 %v5817_v41  ;;  %v4785_v41 = vcombine.high %v346_v35, %v350_v36  ;;  %v390_v24 = vld [vmem:[%s6531_s9 + $0x320] sm:$0xff] }
  0xd2   : > { %3672 = vmatpush1.bf16.msra.mxu0 %v5820_v42  ;;  %2967 = vmatprep.subr.bf16.mxu1 %v5825_v43  ;;  %v4789_v42 = vcombine.high %v348_v37, %v352_v38  ;;  %v5865_v43 = vld [vmem:[#allocation5 + $0x1b0] ss:$8 sps:$4 sm:$0xff]  }
  0xd3   : > { %3673 = vmatprep.subr.bf16.mxu0 %v5828_v44  ;;  %2659 = vmatmul.mubr.bf16.gmra.mrb[8].mxu1 %v4744_v45  ;;  %v5867_v44 = vld [vmem:[#allocation5 + $0x1b4] ss:$8 sps:$4 sm:$0xff]   ;;  %v5868_v45 = vld [vmem:[#allocation5 + $0x3b0] ss:$8 sps:$4 sm:$0xff]  }
  0xd4   : > { %3365 = vmatmul.mubr.bf16.gmra.mrb[8].mxu0 %v4748_v46  ;;  %2668 = vmatprep.mubr.bf16.mxu1 %v4753_v47  ;;  %v354_v46 = vld [vmem:[%s6531_s9 + $0x200] sm:$0xff]  ;;  %v5870_v47 = vld [vmem:[#allocation5 + $0x3b4] ss:$8 sps:$4 sm:$0xff]  }
  0xd5   : > { %3374 = vmatprep.mubr.bf16.mxu0 %v4757_v48  ;;  %2968 = vmatpush1.bf16.msra.mxu1 %v5823_v49  ;;  %v358_v48 = vld [vmem:[%s6531_s9 + $0x220] sm:$0xff]  ;;  %v356_v49 = vld [vmem:[%s6531_s9 + $0x210] sm:$0xff] }
  0xd6   : > { %3674 = vmatpush1.bf16.msra.mxu0 %v5826_v50  ;;  %2969 = vmatprep.subr.bf16.mxu1 %v5831_v51  ;;  %v360_v50 = vld [vmem:[%s6531_s9 + $0x230] sm:$0xff]  ;;  %v4784_v51 = vcombine.low %v346_v35, %v350_v36  ;;  %v4793_v53 = vcombine.high %v354_v46, %v358_v48  ;;  %v4824_v35 = vcombine.low %v386_v22, %v390_v24 }
  0xd7   : > { %3675 = vmatprep.subr.bf16.mxu0 %v5834_v52  ;;  %v4788_v52 = vcombine.low %v348_v37, %v352_v38  ;;  %v4797_v54 = vcombine.high %v356_v49, %v360_v50 }
  0xd9   : > { %2970 = vmatpush1.bf16.msra.mxu1 %v5829_v57  ;;  %v364_v57 = vld [vmem:[%s6531_s9 + $0x250] sm:$0xff] }
  0xda   : > { %3676 = vmatpush1.bf16.msra.mxu0 %v5832_v58  ;;  %2971 = vmatprep.subr.bf16.mxu1 %v5837_v59  ;;  %v368_v58 = vld [vmem:[%s6531_s9 + $0x270] sm:$0xff]  ;;  %v4792_v59 = vcombine.low %v354_v46, %v358_v48 }
  0xdb   : > { %3677 = vmatprep.subr.bf16.mxu0 %v5840_v60  ;;  %2669 = vmatmul.mubr.bf16.gmra.mrb[12].mxu1 %v4752_v61  ;;  %v4796_v60 = vcombine.low %v356_v49, %v360_v50  ;;  %v4801_v61 = vcombine.high %v362_v55, %v366_v56  ;;  %v4804_v8 = vcombine.low %v364_v57, %v368_v58  ;;  %v408_v46 = vld [vmem:[%s6531_s9 + $0x3b0] sm:$0xff] }
  0xdc   : > { %3375 = vmatmul.mubr.bf16.gmra.mrb[12].mxu0 %v4756_v62  ;;  %2678 = vmatprep.mubr.bf16.mxu1 %v4761_v63  ;;  %v4805_v62 = vcombine.high %v364_v57, %v368_v58  ;;  %v5871_v63 = vld [vmem:[#allocation5 + $0x1c0] ss:$8 sps:$4 sm:$0xff]  }
  0xdd   : > { %3384 = vmatprep.mubr.bf16.mxu0 %v4765_v0  ;;  %2972 = vmatpush1.bf16.msra.mxu1 %v5835_v1  ;;  %v5873_v0 = vld [vmem:[#allocation5 + $0x1c4] ss:$8 sps:$4 sm:$0xff]   ;;  %v5874_v1 = vld [vmem:[#allocation5 + $0x3c0] ss:$8 sps:$4 sm:$0xff]  }
  0xde   : > { %3678 = vmatpush1.bf16.msra.mxu0 %v5838_v2  ;;  %2973 = vmatprep.subr.bf16.mxu1 %v5843_v3  ;;  %v370_v2 = vld [vmem:[%s6531_s9 + $0x280] sm:$0xff] }
  0xdf   : > { %3679 = vmatprep.subr.bf16.mxu0 %v5846_v4  ;;  %v5876_v3 = vld [vmem:[#allocation5 + $0x3c4] ss:$8 sps:$4 sm:$0xff]  }
  0xe0   : > { %v374_v4 = vld [vmem:[%s6531_s9 + $0x2a0] sm:$0xff] }
  0xe1   : > { %2974 = vmatpush1.bf16.msra.mxu1 %v5841_v9  ;;  %v4809_v9 = vcombine.high %v370_v2, %v374_v4 }
  0xe2   : > { %3680 = vmatpush1.bf16.msra.mxu0 %v5844_v10  ;;  %2975 = vmatprep.subr.bf16.mxu1 %v5849_v11  ;;  %v4813_v10 = vcombine.high %v372_v5, %v376_v6  ;;  %v378_v11 = vld [vmem:[%s6531_s9 + $0x2c0] sm:$0xff] }
  0xe3   : > { %3681 = vmatprep.subr.bf16.mxu0 %v5852_v12  ;;  %2679 = vmatmul.mubr.bf16.gmra.mrb[16].mxu1 %v4760_v13  ;;  %v382_v12 = vld [vmem:[%s6531_s9 + $0x2e0] sm:$0xff]  ;;  %v380_v13 = vld [vmem:[%s6531_s9 + $0x2d0] sm:$0xff] }
  0xe4   : > { %3385 = vmatmul.mubr.bf16.gmra.mrb[16].mxu0 %v4764_v14  ;;  %2688 = vmatprep.mubr.bf16.mxu1 %v4769_v15  ;;  %v384_v14 = vld [vmem:[%s6531_s9 + $0x2f0] sm:$0xff]  ;;  %v4808_v15 = vcombine.low %v370_v2, %v374_v4 }
  0xe5   : > { %3394 = vmatprep.mubr.bf16.mxu0 %v4773_v16  ;;  %2976 = vmatpush1.bf16.msra.mxu1 %v5847_v17  ;;  %v4812_v16 = vcombine.low %v372_v5, %v376_v6  ;;  %v4817_v17 = vcombine.high %v378_v11, %v382_v12  ;;  %v424_v2 = vld [vmem:[%s6531_s9 + $0x430] sm:$0xff] }
  0xe6   : > { %3682 = vmatpush1.bf16.msra.mxu0 %v5850_v18  ;;  %2977 = vmatprep.subr.bf16.mxu1 %v5855_v19  ;;  %v4821_v18 = vcombine.high %v380_v13, %v384_v14  ;;  %v5877_v19 = vld [vmem:[#allocation5 + $0x1d0] ss:$8 sps:$4 sm:$0xff]  }
  0xe7   : > { %3683 = vmatprep.subr.bf16.mxu0 %v5858_v20  ;;  %v5879_v20 = vld [vmem:[#allocation5 + $0x1d4] ss:$8 sps:$4 sm:$0xff]  }
  0xe9   : > { %2978 = vmatpush1.bf16.msra.mxu1 %v5853_v25  ;;  %v388_v25 = vld [vmem:[%s6531_s9 + $0x310] sm:$0xff] }
  0xea   : > { %3684 = vmatpush1.bf16.msra.mxu0 %v5856_v26  ;;  %2979 = vmatprep.subr.bf16.mxu1 %v5861_v27  ;;  %v392_v26 = vld [vmem:[%s6531_s9 + $0x330] sm:$0xff]  ;;  %v4816_v27 = vcombine.low %v378_v11, %v382_v12 }
  0xeb   : > { %3685 = vmatprep.subr.bf16.mxu0 %v5864_v28  ;;  %2689 = vmatmul.mubr.bf16.gmra.mrb[20].mxu1 %v4768_v29  ;;  %v4820_v28 = vcombine.low %v380_v13, %v384_v14  ;;  %v4825_v29 = vcombine.high %v386_v22, %v390_v24  ;;  %v4828_v36 = vcombine.low %v388_v25, %v392_v26  ;;  %v446_v24 = vld [vmem:[%s6531_s9 + $0x4e0] sm:$0xff] }
  0xec   : > { %3395 = vmatmul.mubr.bf16.gmra.mrb[20].mxu0 %v4772_v30  ;;  %2698 = vmatprep.mubr.bf16.mxu1 %v4777_v33  ;;  %v4829_v30 = vcombine.high %v388_v25, %v392_v26  ;;  %v396_v33 = vld [vmem:[%s6531_s9 + $0x350] sm:$0xff] }
  0xed   : > { %3404 = vmatprep.mubr.bf16.mxu0 %v4781_v34  ;;  %2980 = vmatpush1.bf16.msra.mxu1 %v5859_v31  ;;  %v394_v31 = vld [vmem:[%s6531_s9 + $0x340] sm:$0xff]  ;;  %v400_v34 = vld [vmem:[%s6531_s9 + $0x370] sm:$0xff] }
  0xee   : > { %3686 = vmatpush1.bf16.msra.mxu0 %v5862_v32  ;;  %2981 = vmatprep.subr.bf16.mxu1 %v5867_v44  ;;  %v398_v32 = vld [vmem:[%s6531_s9 + $0x360] sm:$0xff]  ;;  %v4837_v38 = vcombine.high %v396_v33, %v400_v34  ;;  %v4836_v48 = vcombine.low %v396_v33, %v400_v34  ;;  %v444_v25 = vld [vmem:[%s6531_s9 + $0x4d0] sm:$0xff] }
  0xef   : > { %3687 = vmatprep.subr.bf16.mxu0 %v5870_v47  ;;  %v4833_v37 = vcombine.high %v394_v31, %v398_v32  ;;  %v406_v44 = vld [vmem:[%s6531_s9 + $0x3a0] sm:$0xff]  ;;  %v4832_v47 = vcombine.low %v394_v31, %v398_v32  ;;  %v448_v26 = vld [vmem:[%s6531_s9 + $0x4f0] sm:$0xff] }
  0xf0   : > { %v450_v31 = vld [vmem:[%s6531_s9 + $0x500] sm:$0xff]  ;;  %v452_v33 = vld [vmem:[%s6531_s9 + $0x510] sm:$0xff] }
  0xf1   : > { %2982 = vmatpush1.bf16.msra.mxu1 %v5865_v43  ;;  %v5888_v43 = vld [vmem:[#allocation5 + $0x3e4] ss:$8 sps:$4 sm:$0xff]   ;;  %v456_v34 = vld [vmem:[%s6531_s9 + $0x530] sm:$0xff] }
  0xf2   : > { %3688 = vmatpush1.bf16.msra.mxu0 %v5868_v45  ;;  %2983 = vmatprep.subr.bf16.mxu1 %v5873_v0  ;;  %v404_v45 = vld [vmem:[%s6531_s9 + $0x390] sm:$0xff]  ;;  %v422_v0 = vld [vmem:[%s6531_s9 + $0x420] sm:$0xff] }
  0xf3   : > { %2699 = vmatmul.mubr.bf16.gmra.mrb[24].mxu1 %v4776_v39  ;;  %3689 = vmatprep.subr.bf16.mxu0 %v5876_v3  ;;  %v5883_v39 = vld [vmem:[#allocation5 + $0x1e0] ss:$8 sps:$4 sm:$0xff]   ;;  %v4845_v50 = vcombine.high %v404_v45, %v408_v46  ;;  %v4844_v56 = vcombine.low %v404_v45, %v408_v46 }
  0xf4   : > { %3405 = vmatmul.mubr.bf16.gmra.mrb[24].mxu0 %v4780_v40  ;;  %2708 = vmatprep.mubr.bf16.mxu1 %v4785_v41  ;;  %v5885_v40 = vld [vmem:[#allocation5 + $0x1e4] ss:$8 sps:$4 sm:$0xff]   ;;  %v5886_v41 = vld [vmem:[#allocation5 + $0x3e0] ss:$8 sps:$4 sm:$0xff]  }
  0xf5   : > { %3414 = vmatprep.mubr.bf16.mxu0 %v4789_v42  ;;  %2984 = vmatpush1.bf16.msra.mxu1 %v5871_v63  ;;  %v402_v42 = vld [vmem:[%s6531_s9 + $0x380] sm:$0xff]  ;;  %v5894_v63 = vld [vmem:[#allocation5 + $0x3f4] ss:$8 sps:$4 sm:$0xff]  }
  0xf6   : > { %3690 = vmatpush1.bf16.msra.mxu0 %v5874_v1  ;;  %2985 = vmatprep.subr.bf16.mxu1 %v5879_v20  ;;  %v4841_v49 = vcombine.high %v402_v42, %v406_v44  ;;  %v4840_v55 = vcombine.low %v402_v42, %v406_v44  ;;  %v420_v1 = vld [vmem:[%s6531_s9 + $0x410] sm:$0xff]  ;;  %v454_v32 = vld [vmem:[%s6531_s9 + $0x520] sm:$0xff]  ;;  %v4892_v44 = vcombine.low %v452_v33, %v456_v34 }
  0xf7   : > { %3691 = vmatprep.subr.bf16.mxu0 %v5882_v23  ;;  %v4861_v6 = vcombine.high %v420_v1, %v424_v2  ;;  %v4860_v12 = vcombine.low %v420_v1, %v424_v2  ;;  %v442_v23 = vld [vmem:[%s6531_s9 + $0x4c0] sm:$0xff]  ;;  %v464_v42 = vld [vmem:[%s6531_s9 + $0x570] sm:$0xff] }
  0xf8   : > { %v484_v1 = vld [vmem:[%s6531_s9 + $0x610] sm:$0xff] }
  0xf9   : > { %2986 = vmatpush1.bf16.msra.mxu1 %v5877_v19  ;;  %v488_v2 = vld [vmem:[%s6531_s9 + $0x630] sm:$0xff] }
  0xfa   : > { %3692 = vmatpush1.bf16.msra.mxu0 %v5880_v21  ;;  %2987 = vmatprep.subr.bf16.mxu1 %v5885_v40  ;;  %v462_v40 = vld [vmem:[%s6531_s9 + $0x560] sm:$0xff] }
  0xfb   : > { %2709 = vmatmul.mubr.bf16.gmra.mrb[28].mxu1 %v4784_v51  ;;  %3693 = vmatprep.subr.bf16.mxu0 %v5888_v43  ;;  %v410_v51 = vld [vmem:[%s6531_s9 + $0x3c0] sm:$0xff]  ;;  %v4888_v43 = vcombine.low %v450_v31, %v454_v32 }
  0xfc   : > { %3415 = vmatmul.mubr.bf16.gmra.mrb[28].mxu0 %v4788_v52  ;;  %2718 = vmatprep.mubr.bf16.mxu1 %v4793_v53  ;;  %v414_v52 = vld [vmem:[%s6531_s9 + $0x3e0] sm:$0xff]  ;;  %v412_v53 = vld [vmem:[%s6531_s9 + $0x3d0] sm:$0xff] }
  0xfd   : > { %3424 = vmatprep.mubr.bf16.mxu0 %v4797_v54  ;;  %2988 = vmatpush1.bf16.msra.mxu1 %v5883_v39  ;;  %v416_v54 = vld [vmem:[%s6531_s9 + $0x3f0] sm:$0xff]  ;;  %v4849_v57 = vcombine.high %v410_v51, %v414_v52  ;;  %v4848_v3 = vcombine.low %v410_v51, %v414_v52  ;;  %v458_v39 = vld [vmem:[%s6531_s9 + $0x540] sm:$0xff] }
  0xfe   : > { %3694 = vmatpush1.bf16.msra.mxu0 %v5886_v41  ;;  %v4853_v58 = vcombine.high %v412_v53, %v416_v54  ;;  %v4852_v4 = vcombine.low %v412_v53, %v416_v54  ;;  %v460_v41 = vld [vmem:[%s6531_s9 + $0x550] sm:$0xff]  ;;  %v4897_v45 = vcombine.high %v458_v39, %v462_v40  ;;  %v4896_v51 = vcombine.low %v458_v39, %v462_v40  ;;  %v522_v39 = vld [vmem:[%s6531_s9 + $0x740] sm:$0xff] }
  0xff   : > { %3695 = vmatprep.subr.bf16.mxu0 %v5894_v63  ;;  %v4901_v46 = vcombine.high %v460_v41, %v464_v42  ;;  %v4900_v52 = vcombine.low %v460_v41, %v464_v42  ;;  %v482_v63 = vld [vmem:[%s6531_s9 + $0x600] sm:$0xff]  ;;  %v524_v41 = vld [vmem:[%s6531_s9 + $0x750] sm:$0xff] }
 0x100   : > { %v526_v40 = vld [vmem:[%s6531_s9 + $0x760] sm:$0xff]  ;;  %v528_v42 = vld [vmem:[%s6531_s9 + $0x770] sm:$0xff] }
 0x103   : > { %2719 = vmatmul.mubr.bf16.gmra.mrb[32].mxu1 %v4792_v59  ;;  %v5889_v59 = vld [vmem:[#allocation5 + $0x1f0] ss:$8 sps:$4 sm:$0xff]  }
 0x104   : > { %3425 = vmatmul.mubr.bf16.gmra.mrb[32].mxu0 %v4796_v60  ;;  %2728 = vmatprep.mubr.bf16.mxu1 %v4801_v61  ;;  %v5891_v60 = vld [vmem:[#allocation5 + $0x1f4] ss:$8 sps:$4 sm:$0xff]   ;;  %v5892_v61 = vld [vmem:[#allocation5 + $0x3f0] ss:$8 sps:$4 sm:$0xff]  }
 0x105   : > { %3434 = vmatprep.mubr.bf16.mxu0 %v4805_v62  ;;  %v418_v62 = vld [vmem:[%s6531_s9 + $0x400] sm:$0xff]  ;;  %2989 = vmatprep.subr.bf16.mxu1 %v5891_v60 }
 0x106   : > { %2990 = vmatpush1.bf16.msra.mxu1 %v5889_v59  ;;  %3696 = vmatpush1.bf16.msra.mxu0 %v5892_v61  ;;  %v4857_v5 = vcombine.high %v418_v62, %v422_v0  ;;  %v4856_v11 = vcombine.low %v418_v62, %v422_v0  ;;  %v486_v0 = vld [vmem:[%s6531_s9 + $0x620] sm:$0xff] }
 0x10b   : > { %2729 = vmatmul.mubr.bf16.gmra.mrb[36].mxu1 %v4800_v7  ;;  %v426_v7 = vld [vmem:[%s6531_s9 + $0x440] sm:$0xff] }
 0x10c   : > { %3435 = vmatmul.mubr.bf16.gmra.mrb[36].mxu0 %v4804_v8  ;;  %2738 = vmatprep.mubr.bf16.mxu1 %v4809_v9  ;;  %v430_v8 = vld [vmem:[%s6531_s9 + $0x460] sm:$0xff]  ;;  %v428_v9 = vld [vmem:[%s6531_s9 + $0x450] sm:$0xff] }
 0x10d   : > { %3444 = vmatprep.mubr.bf16.mxu0 %v4813_v10  ;;  %v432_v10 = vld [vmem:[%s6531_s9 + $0x470] sm:$0xff]  ;;  %v4865_v13 = vcombine.high %v426_v7, %v430_v8  ;;  %v4864_v19 = vcombine.low %v426_v7, %v430_v8  ;;  %v490_v7 = vld [vmem:[%s6531_s9 + $0x640] sm:$0xff] }
 0x10e   : > { %v4869_v14 = vcombine.high %v428_v9, %v432_v10  ;;  %v4868_v20 = vcombine.low %v428_v9, %v432_v10  ;;  %v494_v8 = vld [vmem:[%s6531_s9 + $0x660] sm:$0xff]  ;;  %v492_v9 = vld [vmem:[%s6531_s9 + $0x650] sm:$0xff] }
 0x10f   : > { %v496_v10 = vld [vmem:[%s6531_s9 + $0x670] sm:$0xff] }
 0x113   : > { %2739 = vmatmul.mubr.bf16.gmra.mrb[40].mxu1 %v4808_v15  ;;  %v434_v15 = vld [vmem:[%s6531_s9 + $0x480] sm:$0xff] }
 0x114   : > { %3445 = vmatmul.mubr.bf16.gmra.mrb[40].mxu0 %v4812_v16  ;;  %2748 = vmatprep.mubr.bf16.mxu1 %v4817_v17  ;;  %v438_v16 = vld [vmem:[%s6531_s9 + $0x4a0] sm:$0xff]  ;;  %v436_v17 = vld [vmem:[%s6531_s9 + $0x490] sm:$0xff] }
 0x115   : > { %3454 = vmatprep.mubr.bf16.mxu0 %v4821_v18  ;;  %v440_v18 = vld [vmem:[%s6531_s9 + $0x4b0] sm:$0xff]  ;;  %v4873_v21 = vcombine.high %v434_v15, %v438_v16 }
 0x116   : > { %v4877_v22 = vcombine.high %v436_v17, %v440_v18 }
 0x11b   : > { %2749 = vmatmul.mubr.bf16.gmra.mrb[44].mxu1 %v4816_v27  ;;  %v4872_v27 = vcombine.low %v434_v15, %v438_v16  ;;  %v498_v15 = vld [vmem:[%s6531_s9 + $0x680] sm:$0xff] }
 0x11c   : > { %3455 = vmatmul.mubr.bf16.gmra.mrb[44].mxu0 %v4820_v28  ;;  %2758 = vmatprep.mubr.bf16.mxu1 %v4825_v29  ;;  %v4876_v28 = vcombine.low %v436_v17, %v440_v18  ;;  %v4881_v29 = vcombine.high %v442_v23, %v446_v24  ;;  %v502_v16 = vld [vmem:[%s6531_s9 + $0x6a0] sm:$0xff]  ;;  %v500_v17 = vld [vmem:[%s6531_s9 + $0x690] sm:$0xff] }
 0x11d   : > { %3464 = vmatprep.mubr.bf16.mxu0 %v4829_v30  ;;  %v4885_v30 = vcombine.high %v444_v25, %v448_v26  ;;  %v504_v18 = vld [vmem:[%s6531_s9 + $0x6b0] sm:$0xff] }
 0x123   : > { %2759 = vmatmul.mubr.bf16.gmra.mrb[48].mxu1 %v4824_v35  ;;  %v4880_v35 = vcombine.low %v442_v23, %v446_v24  ;;  %v506_v23 = vld [vmem:[%s6531_s9 + $0x6c0] sm:$0xff] }
 0x124   : > { %3465 = vmatmul.mubr.bf16.gmra.mrb[48].mxu0 %v4828_v36  ;;  %2768 = vmatprep.mubr.bf16.mxu1 %v4833_v37  ;;  %v4884_v36 = vcombine.low %v444_v25, %v448_v26  ;;  %v4889_v37 = vcombine.high %v450_v31, %v454_v32  ;;  %v510_v24 = vld [vmem:[%s6531_s9 + $0x6e0] sm:$0xff]  ;;  %v508_v25 = vld [vmem:[%s6531_s9 + $0x6d0] sm:$0xff] }
 0x125   : > { %3474 = vmatprep.mubr.bf16.mxu0 %v4837_v38  ;;  %v4893_v38 = vcombine.high %v452_v33, %v456_v34  ;;  %v512_v26 = vld [vmem:[%s6531_s9 + $0x6f0] sm:$0xff]  ;;  %v514_v31 = vld [vmem:[%s6531_s9 + $0x700] sm:$0xff] }
 0x126   : > { %v518_v32 = vld [vmem:[%s6531_s9 + $0x720] sm:$0xff]  ;;  %v516_v33 = vld [vmem:[%s6531_s9 + $0x710] sm:$0xff] }
 0x127   : > { %v520_v34 = vld [vmem:[%s6531_s9 + $0x730] sm:$0xff] }
 0x12b   : > { %2769 = vmatmul.mubr.bf16.gmra.mrb[52].mxu1 %v4832_v47  ;;  %v466_v47 = vld [vmem:[%s6531_s9 + $0x580] sm:$0xff] }
 0x12c   : > { %3475 = vmatmul.mubr.bf16.gmra.mrb[52].mxu0 %v4836_v48  ;;  %2778 = vmatprep.mubr.bf16.mxu1 %v4841_v49  ;;  %v470_v48 = vld [vmem:[%s6531_s9 + $0x5a0] sm:$0xff]  ;;  %v468_v49 = vld [vmem:[%s6531_s9 + $0x590] sm:$0xff] }
 0x12d   : > { %3484 = vmatprep.mubr.bf16.mxu0 %v4845_v50  ;;  %v472_v50 = vld [vmem:[%s6531_s9 + $0x5b0] sm:$0xff]  ;;  %v4905_v53 = vcombine.high %v466_v47, %v470_v48  ;;  %v4904_v59 = vcombine.low %v466_v47, %v470_v48  ;;  %v530_v47 = vld [vmem:[%s6531_s9 + $0x780] sm:$0xff] }
 0x12e   : > { %v4909_v54 = vcombine.high %v468_v49, %v472_v50  ;;  %v4908_v60 = vcombine.low %v468_v49, %v472_v50  ;;  %v534_v48 = vld [vmem:[%s6531_s9 + $0x7a0] sm:$0xff]  ;;  %v532_v49 = vld [vmem:[%s6531_s9 + $0x790] sm:$0xff] }
 0x12f   : > { %v536_v50 = vld [vmem:[%s6531_s9 + $0x7b0] sm:$0xff] }
 0x133   : > { %2779 = vmatmul.mubr.bf16.gmra.mrb[56].mxu1 %v4840_v55  ;;  %v474_v55 = vld [vmem:[%s6531_s9 + $0x5c0] sm:$0xff] }
 0x134   : > { %3485 = vmatmul.mubr.bf16.gmra.mrb[56].mxu0 %v4844_v56  ;;  %2788 = vmatprep.mubr.bf16.mxu1 %v4849_v57  ;;  %v478_v56 = vld [vmem:[%s6531_s9 + $0x5e0] sm:$0xff]  ;;  %v476_v57 = vld [vmem:[%s6531_s9 + $0x5d0] sm:$0xff] }
 0x135   : > { %3494 = vmatprep.mubr.bf16.mxu0 %v4853_v58  ;;  %v480_v58 = vld [vmem:[%s6531_s9 + $0x5f0] sm:$0xff]  ;;  %v4913_v61 = vcombine.high %v474_v55, %v478_v56 }
 0x136   : > { %v4917_v62 = vcombine.high %v476_v57, %v480_v58 }
 0x13b   : > { %2789 = vmatmul.mubr.bf16.gmra.mrb[60].mxu1 %v4848_v3  ;;  %v4912_v3 = vcombine.low %v474_v55, %v478_v56  ;;  %v538_v55 = vld [vmem:[%s6531_s9 + $0x7c0] sm:$0xff] }
 0x13c   : > { %3495 = vmatmul.mubr.bf16.gmra.mrb[60].mxu0 %v4852_v4  ;;  %2798 = vmatprep.mubr.bf16.mxu1 %v4857_v5  ;;  %v4916_v4 = vcombine.low %v476_v57, %v480_v58  ;;  %v4921_v5 = vcombine.high %v482_v63, %v486_v0  ;;  %v542_v56 = vld [vmem:[%s6531_s9 + $0x7e0] sm:$0xff]  ;;  %v540_v57 = vld [vmem:[%s6531_s9 + $0x7d0] sm:$0xff] }
 0x13d   : > { %3504 = vmatprep.mubr.bf16.mxu0 %v4861_v6  ;;  %v4925_v6 = vcombine.high %v484_v1, %v488_v2  ;;  %v544_v58 = vld [vmem:[%s6531_s9 + $0x7f0] sm:$0xff] }
 0x143   : > { %2799 = vmatmul.mubr.bf16.gmra.mrb[64].mxu1 %v4856_v11  ;;  %v4920_v11 = vcombine.low %v482_v63, %v486_v0  ;;  %v291_v63 = vld [vmem:[%s6531_s9 + $0x8] sm:$0xff] }
 0x144   : > { %3505 = vmatmul.mubr.bf16.gmra.mrb[64].mxu0 %v4860_v12  ;;  %2808 = vmatprep.mubr.bf16.mxu1 %v4865_v13  ;;  %v4924_v12 = vcombine.low %v484_v1, %v488_v2  ;;  %v4929_v13 = vcombine.high %v490_v7, %v494_v8  ;;  %v295_v0 = vld [vmem:[%s6531_s9 + $0x28] sm:$0xff]  ;;  %v293_v1 = vld [vmem:[%s6531_s9 + $0x18] sm:$0xff] }
 0x145   : > { %3514 = vmatprep.mubr.bf16.mxu0 %v4869_v14  ;;  %v4933_v14 = vcombine.high %v492_v9, %v496_v10  ;;  %v297_v2 = vld [vmem:[%s6531_s9 + $0x38] sm:$0xff] }
 0x14b   : > { %2809 = vmatmul.mubr.bf16.gmra.mrb[68].mxu1 %v4864_v19  ;;  %v4928_v19 = vcombine.low %v490_v7, %v494_v8  ;;  %v299_v7 = vld [vmem:[%s6531_s9 + $0x48] sm:$0xff] }
 0x14c   : > { %3515 = vmatmul.mubr.bf16.gmra.mrb[68].mxu0 %v4868_v20  ;;  %2818 = vmatprep.mubr.bf16.mxu1 %v4873_v21  ;;  %v4932_v20 = vcombine.low %v492_v9, %v496_v10  ;;  %v4937_v21 = vcombine.high %v498_v15, %v502_v16  ;;  %v303_v8 = vld [vmem:[%s6531_s9 + $0x68] sm:$0xff]  ;;  %v301_v9 = vld [vmem:[%s6531_s9 + $0x58] sm:$0xff] }
 0x14d   : > { %3524 = vmatprep.mubr.bf16.mxu0 %v4877_v22  ;;  %v4941_v22 = vcombine.high %v500_v17, %v504_v18  ;;  %v305_v10 = vld [vmem:[%s6531_s9 + $0x78] sm:$0xff] }
 0x153   : > { %2819 = vmatmul.mubr.bf16.gmra.mrb[72].mxu1 %v4872_v27  ;;  %v4936_v27 = vcombine.low %v498_v15, %v502_v16  ;;  %v307_v15 = vld [vmem:[%s6531_s9 + $0x88] sm:$0xff] }
 0x154   : > { %3525 = vmatmul.mubr.bf16.gmra.mrb[72].mxu0 %v4876_v28  ;;  %2828 = vmatprep.mubr.bf16.mxu1 %v4881_v29  ;;  %v4940_v28 = vcombine.low %v500_v17, %v504_v18  ;;  %v4945_v29 = vcombine.high %v506_v23, %v510_v24  ;;  %v311_v16 = vld [vmem:[%s6531_s9 + $0xa8] sm:$0xff]  ;;  %v309_v17 = vld [vmem:[%s6531_s9 + $0x98] sm:$0xff] }
 0x155   : > { %3534 = vmatprep.mubr.bf16.mxu0 %v4885_v30  ;;  %v4949_v30 = vcombine.high %v508_v25, %v512_v26  ;;  %v313_v18 = vld [vmem:[%s6531_s9 + $0xb8] sm:$0xff] }
 0x15b   : > { %2829 = vmatmul.mubr.bf16.gmra.mrb[76].mxu1 %v4880_v35  ;;  %v4944_v35 = vcombine.low %v506_v23, %v510_v24  ;;  %v315_v23 = vld [vmem:[%s6531_s9 + $0xc8] sm:$0xff] }
 0x15c   : > { %3535 = vmatmul.mubr.bf16.gmra.mrb[76].mxu0 %v4884_v36  ;;  %2838 = vmatprep.mubr.bf16.mxu1 %v4889_v37  ;;  %v4948_v36 = vcombine.low %v508_v25, %v512_v26  ;;  %v4953_v37 = vcombine.high %v514_v31, %v518_v32  ;;  %v319_v24 = vld [vmem:[%s6531_s9 + $0xe8] sm:$0xff]  ;;  %v317_v25 = vld [vmem:[%s6531_s9 + $0xd8] sm:$0xff] }
 0x15d   : > { %3544 = vmatprep.mubr.bf16.mxu0 %v4893_v38  ;;  %v4957_v38 = vcombine.high %v516_v33, %v520_v34  ;;  %v321_v26 = vld [vmem:[%s6531_s9 + $0xf8] sm:$0xff] }
 0x163   : > { %2839 = vmatmul.mubr.bf16.gmra.mrb[80].mxu1 %v4888_v43  ;;  %v4952_v43 = vcombine.low %v514_v31, %v518_v32  ;;  %v323_v31 = vld [vmem:[%s6531_s9 + $0x108] sm:$0xff] }
 0x164   : > { %3545 = vmatmul.mubr.bf16.gmra.mrb[80].mxu0 %v4892_v44  ;;  %2848 = vmatprep.mubr.bf16.mxu1 %v4897_v45  ;;  %v4956_v44 = vcombine.low %v516_v33, %v520_v34  ;;  %v4961_v45 = vcombine.high %v522_v39, %v526_v40  ;;  %v327_v32 = vld [vmem:[%s6531_s9 + $0x128] sm:$0xff]  ;;  %v325_v33 = vld [vmem:[%s6531_s9 + $0x118] sm:$0xff] }
 0x165   : > { %3554 = vmatprep.mubr.bf16.mxu0 %v4901_v46  ;;  %v4965_v46 = vcombine.high %v524_v41, %v528_v42  ;;  %v329_v34 = vld [vmem:[%s6531_s9 + $0x138] sm:$0xff] }
 0x16b   : > { %2849 = vmatmul.mubr.bf16.gmra.mrb[84].mxu1 %v4896_v51  ;;  %v4960_v51 = vcombine.low %v522_v39, %v526_v40  ;;  %v331_v39 = vld [vmem:[%s6531_s9 + $0x148] sm:$0xff] }
 0x16c   : > { %3555 = vmatmul.mubr.bf16.gmra.mrb[84].mxu0 %v4900_v52  ;;  %2858 = vmatprep.mubr.bf16.mxu1 %v4905_v53  ;;  %v4964_v52 = vcombine.low %v524_v41, %v528_v42  ;;  %v4969_v53 = vcombine.high %v530_v47, %v534_v48  ;;  %v335_v40 = vld [vmem:[%s6531_s9 + $0x168] sm:$0xff]  ;;  %v333_v41 = vld [vmem:[%s6531_s9 + $0x158] sm:$0xff] }
 0x16d   : > { %3564 = vmatprep.mubr.bf16.mxu0 %v4909_v54  ;;  %v4973_v54 = vcombine.high %v532_v49, %v536_v50  ;;  %v337_v42 = vld [vmem:[%s6531_s9 + $0x178] sm:$0xff] }
 0x173   : > { %2859 = vmatmul.mubr.bf16.gmra.mrb[88].mxu1 %v4904_v59  ;;  %v4968_v59 = vcombine.low %v530_v47, %v534_v48  ;;  %v339_v47 = vld [vmem:[%s6531_s9 + $0x188] sm:$0xff] }
 0x174   : > { %3565 = vmatmul.mubr.bf16.gmra.mrb[88].mxu0 %v4908_v60  ;;  %2868 = vmatprep.mubr.bf16.mxu1 %v4913_v61  ;;  %v4972_v60 = vcombine.low %v532_v49, %v536_v50  ;;  %v4977_v61 = vcombine.high %v538_v55, %v542_v56  ;;  %v343_v48 = vld [vmem:[%s6531_s9 + $0x1a8] sm:$0xff]  ;;  %v341_v49 = vld [vmem:[%s6531_s9 + $0x198] sm:$0xff] }
 0x175   : > { %3574 = vmatprep.mubr.bf16.mxu0 %v4917_v62  ;;  %v4981_v62 = vcombine.high %v540_v57, %v544_v58  ;;  %v345_v50 = vld [vmem:[%s6531_s9 + $0x1b8] sm:$0xff] }
 0x17b   : > { %2869 = vmatmul.mubr.bf16.gmra.mrb[92].mxu1 %v4912_v3  ;;  %v4976_v3 = vcombine.low %v538_v55, %v542_v56  ;;  %v347_v55 = vld [vmem:[%s6531_s9 + $0x1c8] sm:$0xff] }
 0x17c   : > { %3575 = vmatmul.mubr.bf16.gmra.mrb[92].mxu0 %v4916_v4  ;;  %2878 = vmatprep.mubr.bf16.mxu1 %v4921_v5  ;;  %v4980_v4 = vcombine.low %v540_v57, %v544_v58  ;;  %v4731_v5 = vcombine.high %v291_v63, %v295_v0  ;;  %v351_v56 = vld [vmem:[%s6531_s9 + $0x1e8] sm:$0xff]  ;;  %v349_v57 = vld [vmem:[%s6531_s9 + $0x1d8] sm:$0xff] }
 0x17d   : > { %3584 = vmatprep.mubr.bf16.mxu0 %v4925_v6  ;;  %v4735_v6 = vcombine.high %v293_v1, %v297_v2  ;;  %v353_v58 = vld [vmem:[%s6531_s9 + $0x1f8] sm:$0xff] }
 0x183   : > { %2879 = vmatmul.mubr.bf16.gmra.mrb[96].mxu1 %v4920_v11  ;;  %v4730_v11 = vcombine.low %v291_v63, %v295_v0  ;;  %v355_v63 = vld [vmem:[%s6531_s9 + $0x208] sm:$0xff] }
 0x184   : > { %3585 = vmatmul.mubr.bf16.gmra.mrb[96].mxu0 %v4924_v12  ;;  %2888 = vmatprep.mubr.bf16.mxu1 %v4929_v13  ;;  %v4734_v12 = vcombine.low %v293_v1, %v297_v2  ;;  %v4739_v13 = vcombine.high %v299_v7, %v303_v8  ;;  %v359_v0 = vld [vmem:[%s6531_s9 + $0x228] sm:$0xff]  ;;  %v357_v1 = vld [vmem:[%s6531_s9 + $0x218] sm:$0xff] }
 0x185   : > { %3594 = vmatprep.mubr.bf16.mxu0 %v4933_v14  ;;  %v4743_v14 = vcombine.high %v301_v9, %v305_v10  ;;  %v361_v2 = vld [vmem:[%s6531_s9 + $0x238] sm:$0xff] }
 0x18b   : > { %2889 = vmatmul.mubr.bf16.gmra.mrb[100].mxu1 %v4928_v19  ;;  %v4738_v19 = vcombine.low %v299_v7, %v303_v8  ;;  %v363_v7 = vld [vmem:[%s6531_s9 + $0x248] sm:$0xff] }
 0x18c   : > { %3595 = vmatmul.mubr.bf16.gmra.mrb[100].mxu0 %v4932_v20  ;;  %2898 = vmatprep.mubr.bf16.mxu1 %v4937_v21  ;;  %v4742_v20 = vcombine.low %v301_v9, %v305_v10  ;;  %v4747_v21 = vcombine.high %v307_v15, %v311_v16  ;;  %v367_v8 = vld [vmem:[%s6531_s9 + $0x268] sm:$0xff]  ;;  %v365_v9 = vld [vmem:[%s6531_s9 + $0x258] sm:$0xff] }
 0x18d   : > { %3604 = vmatprep.mubr.bf16.mxu0 %v4941_v22  ;;  %v4751_v22 = vcombine.high %v309_v17, %v313_v18  ;;  %v369_v10 = vld [vmem:[%s6531_s9 + $0x278] sm:$0xff] }
 0x193   : > { %2899 = vmatmul.mubr.bf16.gmra.mrb[104].mxu1 %v4936_v27  ;;  %v4746_v27 = vcombine.low %v307_v15, %v311_v16  ;;  %v371_v15 = vld [vmem:[%s6531_s9 + $0x288] sm:$0xff] }
 0x194   : > { %3605 = vmatmul.mubr.bf16.gmra.mrb[104].mxu0 %v4940_v28  ;;  %2908 = vmatprep.mubr.bf16.mxu1 %v4945_v29  ;;  %v4750_v28 = vcombine.low %v309_v17, %v313_v18  ;;  %v4755_v29 = vcombine.high %v315_v23, %v319_v24  ;;  %v375_v16 = vld [vmem:[%s6531_s9 + $0x2a8] sm:$0xff]  ;;  %v373_v17 = vld [vmem:[%s6531_s9 + $0x298] sm:$0xff] }
 0x195   : > { %3614 = vmatprep.mubr.bf16.mxu0 %v4949_v30  ;;  %v4759_v30 = vcombine.high %v317_v25, %v321_v26  ;;  %v377_v18 = vld [vmem:[%s6531_s9 + $0x2b8] sm:$0xff] }
 0x19b   : > { %2909 = vmatmul.mubr.bf16.gmra.mrb[108].mxu1 %v4944_v35  ;;  %v4754_v35 = vcombine.low %v315_v23, %v319_v24  ;;  %v379_v23 = vld [vmem:[%s6531_s9 + $0x2c8] sm:$0xff] }
 0x19c   : > { %3615 = vmatmul.mubr.bf16.gmra.mrb[108].mxu0 %v4948_v36  ;;  %2918 = vmatprep.mubr.bf16.mxu1 %v4953_v37  ;;  %v4758_v36 = vcombine.low %v317_v25, %v321_v26  ;;  %v4763_v37 = vcombine.high %v323_v31, %v327_v32  ;;  %v383_v24 = vld [vmem:[%s6531_s9 + $0x2e8] sm:$0xff]  ;;  %v381_v25 = vld [vmem:[%s6531_s9 + $0x2d8] sm:$0xff] }
 0x19d   : > { %3624 = vmatprep.mubr.bf16.mxu0 %v4957_v38  ;;  %v4767_v38 = vcombine.high %v325_v33, %v329_v34  ;;  %v385_v26 = vld [vmem:[%s6531_s9 + $0x2f8] sm:$0xff] }
 0x1a3   : > { %2919 = vmatmul.mubr.bf16.gmra.mrb[112].mxu1 %v4952_v43  ;;  %v4762_v43 = vcombine.low %v323_v31, %v327_v32  ;;  %v387_v31 = vld [vmem:[%s6531_s9 + $0x308] sm:$0xff] }
 0x1a4   : > { %3625 = vmatmul.mubr.bf16.gmra.mrb[112].mxu0 %v4956_v44  ;;  %2928 = vmatprep.mubr.bf16.mxu1 %v4961_v45  ;;  %v4766_v44 = vcombine.low %v325_v33, %v329_v34  ;;  %v4771_v45 = vcombine.high %v331_v39, %v335_v40  ;;  %v391_v32 = vld [vmem:[%s6531_s9 + $0x328] sm:$0xff]  ;;  %v389_v33 = vld [vmem:[%s6531_s9 + $0x318] sm:$0xff] }
 0x1a5   : > { %3634 = vmatprep.mubr.bf16.mxu0 %v4965_v46  ;;  %v4775_v46 = vcombine.high %v333_v41, %v337_v42  ;;  %v393_v34 = vld [vmem:[%s6531_s9 + $0x338] sm:$0xff] }
 0x1ab   : > { %2929 = vmatmul.mubr.bf16.gmra.mrb[116].mxu1 %v4960_v51  ;;  %v4770_v51 = vcombine.low %v331_v39, %v335_v40  ;;  %v395_v39 = vld [vmem:[%s6531_s9 + $0x348] sm:$0xff] }
 0x1ac   : > { %3635 = vmatmul.mubr.bf16.gmra.mrb[116].mxu0 %v4964_v52  ;;  %2938 = vmatprep.mubr.bf16.mxu1 %v4969_v53  ;;  %v4774_v52 = vcombine.low %v333_v41, %v337_v42  ;;  %v4779_v53 = vcombine.high %v339_v47, %v343_v48  ;;  %v399_v40 = vld [vmem:[%s6531_s9 + $0x368] sm:$0xff]  ;;  %v397_v41 = vld [vmem:[%s6531_s9 + $0x358] sm:$0xff] }
 0x1ad   : > { %3644 = vmatprep.mubr.bf16.mxu0 %v4973_v54  ;;  %v4783_v54 = vcombine.high %v341_v49, %v345_v50  ;;  %v401_v42 = vld [vmem:[%s6531_s9 + $0x378] sm:$0xff] }
 0x1b3   : > { %2939 = vmatmul.mubr.bf16.gmra.mrb[120].mxu1 %v4968_v59  ;;  %v4778_v59 = vcombine.low %v339_v47, %v343_v48  ;;  %v403_v47 = vld [vmem:[%s6531_s9 + $0x388] sm:$0xff] }
 0x1b4   : > { %3645 = vmatmul.mubr.bf16.gmra.mrb[120].mxu0 %v4972_v60  ;;  %2948 = vmatprep.mubr.bf16.mxu1 %v4977_v61  ;;  %v4782_v60 = vcombine.low %v341_v49, %v345_v50  ;;  %v4787_v61 = vcombine.high %v347_v55, %v351_v56  ;;  %v407_v48 = vld [vmem:[%s6531_s9 + $0x3a8] sm:$0xff]  ;;  %v405_v49 = vld [vmem:[%s6531_s9 + $0x398] sm:$0xff] }
 0x1b5   : > { %3654 = vmatprep.mubr.bf16.mxu0 %v4981_v62  ;;  %v4791_v62 = vcombine.high %v349_v57, %v353_v58  ;;  %v409_v50 = vld [vmem:[%s6531_s9 + $0x3b8] sm:$0xff] }
 0x1bb   : > { %2949 = vmatmul.mubr.bf16.gmra.mrb[124].mxu1 %v4976_v3  ;;  %v4786_v3 = vcombine.low %v347_v55, %v351_v56  ;;  %v411_v55 = vld [vmem:[%s6531_s9 + $0x3c8] sm:$0xff] }
 0x1bc   : > { %3655 = vmatmul.mubr.bf16.gmra.mrb[124].mxu0 %v4980_v4  ;;  %2991 = vmatprep.mubr.bf16.mxu1 %v4731_v5  ;;  %v4790_v4 = vcombine.low %v349_v57, %v353_v58  ;;  %v4795_v5 = vcombine.high %v355_v63, %v359_v0  ;;  %v415_v56 = vld [vmem:[%s6531_s9 + $0x3e8] sm:$0xff]  ;;  %v413_v57 = vld [vmem:[%s6531_s9 + $0x3d8] sm:$0xff] }
 0x1bd   : > { %3697 = vmatprep.mubr.bf16.mxu0 %v4735_v6  ;;  %v4799_v6 = vcombine.high %v357_v1, %v361_v2  ;;  %v417_v58 = vld [vmem:[%s6531_s9 + $0x3f8] sm:$0xff] }
 0x1c3   : > { %2992 = vmatmul.mubr.bf16.vlgmr.msra.gmra.mrb[0].mxu1 %v4730_v11  ;;  %v4794_v11 = vcombine.low %v355_v63, %v359_v0  ;;  %v419_v63 = vld [vmem:[%s6531_s9 + $0x408] sm:$0xff] }
 0x1c4   : > { %3698 = vmatmul.mubr.bf16.vlgmr.msra.gmra.mrb[0].mxu0 %v4734_v12  ;;  %3001 = vmatprep.mubr.bf16.mxu1 %v4739_v13  ;;  %v4798_v12 = vcombine.low %v357_v1, %v361_v2  ;;  %v4803_v13 = vcombine.high %v363_v7, %v367_v8  ;;  %v423_v0 = vld [vmem:[%s6531_s9 + $0x428] sm:$0xff]  ;;  %v421_v1 = vld [vmem:[%s6531_s9 + $0x418] sm:$0xff] }
 0x1c5   : > { %3707 = vmatprep.mubr.bf16.mxu0 %v4743_v14  ;;  %v4807_v14 = vcombine.high %v365_v9, %v369_v10  ;;  %v425_v2 = vld [vmem:[%s6531_s9 + $0x438] sm:$0xff] }
 0x1cb   : > { %3002 = vmatmul.mubr.bf16.gmra.mrb[4].mxu1 %v4738_v19  ;;  %v4802_v19 = vcombine.low %v363_v7, %v367_v8  ;;  %v427_v7 = vld [vmem:[%s6531_s9 + $0x448] sm:$0xff] }
 0x1cc   : > { %3708 = vmatmul.mubr.bf16.gmra.mrb[4].mxu0 %v4742_v20  ;;  %3011 = vmatprep.mubr.bf16.mxu1 %v4747_v21  ;;  %v4806_v20 = vcombine.low %v365_v9, %v369_v10  ;;  %v4811_v21 = vcombine.high %v371_v15, %v375_v16  ;;  %v431_v8 = vld [vmem:[%s6531_s9 + $0x468] sm:$0xff]  ;;  %v429_v9 = vld [vmem:[%s6531_s9 + $0x458] sm:$0xff] }
 0x1cd   : > { %3717 = vmatprep.mubr.bf16.mxu0 %v4751_v22  ;;  %v4815_v22 = vcombine.high %v373_v17, %v377_v18  ;;  %v433_v10 = vld [vmem:[%s6531_s9 + $0x478] sm:$0xff] }
 0x1d3   : > { %3012 = vmatmul.mubr.bf16.gmra.mrb[8].mxu1 %v4746_v27  ;;  %v4810_v27 = vcombine.low %v371_v15, %v375_v16  ;;  %v435_v15 = vld [vmem:[%s6531_s9 + $0x488] sm:$0xff] }
 0x1d4   : > { %3718 = vmatmul.mubr.bf16.gmra.mrb[8].mxu0 %v4750_v28  ;;  %3021 = vmatprep.mubr.bf16.mxu1 %v4755_v29  ;;  %v4814_v28 = vcombine.low %v373_v17, %v377_v18  ;;  %v4819_v29 = vcombine.high %v379_v23, %v383_v24  ;;  %v439_v16 = vld [vmem:[%s6531_s9 + $0x4a8] sm:$0xff]  ;;  %v437_v17 = vld [vmem:[%s6531_s9 + $0x498] sm:$0xff] }
 0x1d5   : > { %3727 = vmatprep.mubr.bf16.mxu0 %v4759_v30  ;;  %v4823_v30 = vcombine.high %v381_v25, %v385_v26  ;;  %v441_v18 = vld [vmem:[%s6531_s9 + $0x4b8] sm:$0xff] }
 0x1db   : > { %3022 = vmatmul.mubr.bf16.gmra.mrb[12].mxu1 %v4754_v35  ;;  %v4818_v35 = vcombine.low %v379_v23, %v383_v24  ;;  %v443_v23 = vld [vmem:[%s6531_s9 + $0x4c8] sm:$0xff] }
 0x1dc   : > { %3728 = vmatmul.mubr.bf16.gmra.mrb[12].mxu0 %v4758_v36  ;;  %3031 = vmatprep.mubr.bf16.mxu1 %v4763_v37  ;;  %v4822_v36 = vcombine.low %v381_v25, %v385_v26  ;;  %v4827_v37 = vcombine.high %v387_v31, %v391_v32  ;;  %v447_v24 = vld [vmem:[%s6531_s9 + $0x4e8] sm:$0xff]  ;;  %v445_v25 = vld [vmem:[%s6531_s9 + $0x4d8] sm:$0xff] }
 0x1dd   : > { %3737 = vmatprep.mubr.bf16.mxu0 %v4767_v38  ;;  %v4831_v38 = vcombine.high %v389_v33, %v393_v34  ;;  %v449_v26 = vld [vmem:[%s6531_s9 + $0x4f8] sm:$0xff] }
 0x1e3   : > { %3032 = vmatmul.mubr.bf16.gmra.mrb[16].mxu1 %v4762_v43  ;;  %v4826_v43 = vcombine.low %v387_v31, %v391_v32  ;;  %v451_v31 = vld [vmem:[%s6531_s9 + $0x508] sm:$0xff] }
 0x1e4   : > { %3738 = vmatmul.mubr.bf16.gmra.mrb[16].mxu0 %v4766_v44  ;;  %3041 = vmatprep.mubr.bf16.mxu1 %v4771_v45  ;;  %v4830_v44 = vcombine.low %v389_v33, %v393_v34  ;;  %v4835_v45 = vcombine.high %v395_v39, %v399_v40  ;;  %v455_v32 = vld [vmem:[%s6531_s9 + $0x528] sm:$0xff]  ;;  %v453_v33 = vld [vmem:[%s6531_s9 + $0x518] sm:$0xff] }
 0x1e5   : > { %3747 = vmatprep.mubr.bf16.mxu0 %v4775_v46  ;;  %v4839_v46 = vcombine.high %v397_v41, %v401_v42  ;;  %v457_v34 = vld [vmem:[%s6531_s9 + $0x538] sm:$0xff] }
 0x1eb   : > { %3042 = vmatmul.mubr.bf16.gmra.mrb[20].mxu1 %v4770_v51  ;;  %v4834_v51 = vcombine.low %v395_v39, %v399_v40  ;;  %v459_v39 = vld [vmem:[%s6531_s9 + $0x548] sm:$0xff] }
 0x1ec   : > { %3748 = vmatmul.mubr.bf16.gmra.mrb[20].mxu0 %v4774_v52  ;;  %3051 = vmatprep.mubr.bf16.mxu1 %v4779_v53  ;;  %v4838_v52 = vcombine.low %v397_v41, %v401_v42  ;;  %v4843_v53 = vcombine.high %v403_v47, %v407_v48  ;;  %v463_v40 = vld [vmem:[%s6531_s9 + $0x568] sm:$0xff]  ;;  %v461_v41 = vld [vmem:[%s6531_s9 + $0x558] sm:$0xff] }
 0x1ed   : > { %3757 = vmatprep.mubr.bf16.mxu0 %v4783_v54  ;;  %v4847_v54 = vcombine.high %v405_v49, %v409_v50  ;;  %v465_v42 = vld [vmem:[%s6531_s9 + $0x578] sm:$0xff] }
 0x1f3   : > { %3052 = vmatmul.mubr.bf16.gmra.mrb[24].mxu1 %v4778_v59  ;;  %v4842_v59 = vcombine.low %v403_v47, %v407_v48  ;;  %v467_v47 = vld [vmem:[%s6531_s9 + $0x588] sm:$0xff] }
 0x1f4   : > { %3758 = vmatmul.mubr.bf16.gmra.mrb[24].mxu0 %v4782_v60  ;;  %3061 = vmatprep.mubr.bf16.mxu1 %v4787_v61  ;;  %v4846_v60 = vcombine.low %v405_v49, %v409_v50  ;;  %v4851_v61 = vcombine.high %v411_v55, %v415_v56  ;;  %v471_v48 = vld [vmem:[%s6531_s9 + $0x5a8] sm:$0xff]  ;;  %v469_v49 = vld [vmem:[%s6531_s9 + $0x598] sm:$0xff] }
 0x1f5   : > { %3767 = vmatprep.mubr.bf16.mxu0 %v4791_v62  ;;  %v4855_v62 = vcombine.high %v413_v57, %v417_v58  ;;  %v473_v50 = vld [vmem:[%s6531_s9 + $0x5b8] sm:$0xff] }
 0x1fb   : > { %3062 = vmatmul.mubr.bf16.gmra.mrb[28].mxu1 %v4786_v3  ;;  %v4850_v3 = vcombine.low %v411_v55, %v415_v56  ;;  %v475_v55 = vld [vmem:[%s6531_s9 + $0x5c8] sm:$0xff] }
 0x1fc   : > { %3768 = vmatmul.mubr.bf16.gmra.mrb[28].mxu0 %v4790_v4  ;;  %3071 = vmatprep.mubr.bf16.mxu1 %v4795_v5  ;;  %v4854_v4 = vcombine.low %v413_v57, %v417_v58  ;;  %v4859_v5 = vcombine.high %v419_v63, %v423_v0  ;;  %v479_v56 = vld [vmem:[%s6531_s9 + $0x5e8] sm:$0xff]  ;;  %v477_v57 = vld [vmem:[%s6531_s9 + $0x5d8] sm:$0xff] }
 0x1fd   : > { %3777 = vmatprep.mubr.bf16.mxu0 %v4799_v6  ;;  %v4863_v6 = vcombine.high %v421_v1, %v425_v2  ;;  %v481_v58 = vld [vmem:[%s6531_s9 + $0x5f8] sm:$0xff] }
 0x203   : > { %3072 = vmatmul.mubr.bf16.gmra.mrb[32].mxu1 %v4794_v11  ;;  %v4858_v11 = vcombine.low %v419_v63, %v423_v0  ;;  %v483_v63 = vld [vmem:[%s6531_s9 + $0x608] sm:$0xff] }
 0x204   : > { %3778 = vmatmul.mubr.bf16.gmra.mrb[32].mxu0 %v4798_v12  ;;  %3081 = vmatprep.mubr.bf16.mxu1 %v4803_v13  ;;  %v4862_v12 = vcombine.low %v421_v1, %v425_v2  ;;  %v4867_v13 = vcombine.high %v427_v7, %v431_v8  ;;  %v487_v0 = vld [vmem:[%s6531_s9 + $0x628] sm:$0xff]  ;;  %v485_v1 = vld [vmem:[%s6531_s9 + $0x618] sm:$0xff] }
 0x205   : > { %3787 = vmatprep.mubr.bf16.mxu0 %v4807_v14  ;;  %v4871_v14 = vcombine.high %v429_v9, %v433_v10  ;;  %v489_v2 = vld [vmem:[%s6531_s9 + $0x638] sm:$0xff] }
 0x20b   : > { %3082 = vmatmul.mubr.bf16.gmra.mrb[36].mxu1 %v4802_v19  ;;  %v4866_v19 = vcombine.low %v427_v7, %v431_v8  ;;  %v491_v7 = vld [vmem:[%s6531_s9 + $0x648] sm:$0xff] }
 0x20c   : > { %3788 = vmatmul.mubr.bf16.gmra.mrb[36].mxu0 %v4806_v20  ;;  %3091 = vmatprep.mubr.bf16.mxu1 %v4811_v21  ;;  %v4870_v20 = vcombine.low %v429_v9, %v433_v10  ;;  %v4875_v21 = vcombine.high %v435_v15, %v439_v16  ;;  %v495_v8 = vld [vmem:[%s6531_s9 + $0x668] sm:$0xff]  ;;  %v493_v9 = vld [vmem:[%s6531_s9 + $0x658] sm:$0xff] }
 0x20d   : > { %3797 = vmatprep.mubr.bf16.mxu0 %v4815_v22  ;;  %v4879_v22 = vcombine.high %v437_v17, %v441_v18  ;;  %v497_v10 = vld [vmem:[%s6531_s9 + $0x678] sm:$0xff] }
 0x213   : > { %3092 = vmatmul.mubr.bf16.gmra.mrb[40].mxu1 %v4810_v27  ;;  %v4874_v27 = vcombine.low %v435_v15, %v439_v16  ;;  %v499_v15 = vld [vmem:[%s6531_s9 + $0x688] sm:$0xff] }
 0x214   : > { %3798 = vmatmul.mubr.bf16.gmra.mrb[40].mxu0 %v4814_v28  ;;  %3101 = vmatprep.mubr.bf16.mxu1 %v4819_v29  ;;  %v4878_v28 = vcombine.low %v437_v17, %v441_v18  ;;  %v4883_v29 = vcombine.high %v443_v23, %v447_v24  ;;  %v503_v16 = vld [vmem:[%s6531_s9 + $0x6a8] sm:$0xff]  ;;  %v501_v17 = vld [vmem:[%s6531_s9 + $0x698] sm:$0xff] }
 0x215   : > { %3807 = vmatprep.mubr.bf16.mxu0 %v4823_v30  ;;  %v4887_v30 = vcombine.high %v445_v25, %v449_v26  ;;  %v505_v18 = vld [vmem:[%s6531_s9 + $0x6b8] sm:$0xff] }
 0x21b   : > { %3102 = vmatmul.mubr.bf16.gmra.mrb[44].mxu1 %v4818_v35  ;;  %v4882_v35 = vcombine.low %v443_v23, %v447_v24  ;;  %v4943_v23 = vcombine.high %v501_v17, %v505_v18 }
 0x21c   : > { %3808 = vmatmul.mubr.bf16.gmra.mrb[44].mxu0 %v4822_v36  ;;  %3111 = vmatprep.mubr.bf16.mxu1 %v4827_v37  ;;  %v4886_v36 = vcombine.low %v445_v25, %v449_v26  ;;  %v4891_v37 = vcombine.high %v451_v31, %v455_v32  ;;  %v507_v25 = vld [vmem:[%s6531_s9 + $0x6c8] sm:$0xff] }
 0x21d   : > { %3817 = vmatprep.mubr.bf16.mxu0 %v4831_v38  ;;  %v4895_v38 = vcombine.high %v453_v33, %v457_v34  ;;  %v511_v26 = vld [vmem:[%s6531_s9 + $0x6e8] sm:$0xff] }
 0x223   : > { %3112 = vmatmul.mubr.bf16.gmra.mrb[48].mxu1 %v4826_v43  ;;  %v4890_v43 = vcombine.low %v451_v31, %v455_v32  ;;  %v674_v32 = vld [vmem:[#allocation7] sm:$0x3] }
 0x224   : > { %3818 = vmatmul.mubr.bf16.gmra.mrb[48].mxu0 %v4830_v44  ;;  %3121 = vmatprep.mubr.bf16.mxu1 %v4835_v45  ;;  %v4894_v44 = vcombine.low %v453_v33, %v457_v34  ;;  %v4899_v45 = vcombine.high %v459_v39, %v463_v40  ;;  %v4947_v34 = vcombine.high %v507_v25, %v511_v26 }
 0x225   : > { %3827 = vmatprep.mubr.bf16.mxu0 %v4839_v46  ;;  %v4903_v46 = vcombine.high %v461_v41, %v465_v42 }
 0x22b   : > { %3122 = vmatmul.mubr.bf16.gmra.mrb[52].mxu1 %v4834_v51  ;;  %v4898_v51 = vcombine.low %v459_v39, %v463_v40  ;;  %v519_v39 = vld [vmem:[%s6531_s9 + $0x728] sm:$0xff]  ;;  %v517_v40 = vld [vmem:[%s6531_s9 + $0x718] sm:$0xff] }
 0x22c   : > { %3828 = vmatmul.mubr.bf16.gmra.mrb[52].mxu0 %v4838_v52  ;;  %3131 = vmatprep.mubr.bf16.mxu1 %v4843_v53  ;;  %v4902_v52 = vcombine.low %v461_v41, %v465_v42  ;;  %v4907_v53 = vcombine.high %v467_v47, %v471_v48  ;;  %v521_v41 = vld [vmem:[%s6531_s9 + $0x738] sm:$0xff] }
 0x22d   : > { %3837 = vmatprep.mubr.bf16.mxu0 %v4847_v54  ;;  %v4911_v54 = vcombine.high %v469_v49, %v473_v50 }
 0x233   : > { %3132 = vmatmul.mubr.bf16.gmra.mrb[56].mxu1 %v4842_v59  ;;  %v4906_v59 = vcombine.low %v467_v47, %v471_v48  ;;  %v4946_v47 = vcombine.low %v507_v25, %v511_v26  ;;  %v6834_v26 = vld [vmem:[%s6531_s9 + $0x788] sm:$0xff] }
 0x234   : > { %3838 = vmatmul.mubr.bf16.gmra.mrb[56].mxu0 %v4846_v60  ;;  %3141 = vmatprep.mubr.bf16.mxu1 %v4851_v61  ;;  %v4910_v60 = vcombine.low %v469_v49, %v473_v50  ;;  %v4915_v61 = vcombine.high %v475_v55, %v479_v56 }
 0x235   : > { %3847 = vmatprep.mubr.bf16.mxu0 %v4855_v62  ;;  %v4919_v62 = vcombine.high %v477_v57, %v481_v58 }
 0x23b   : > { %3142 = vmatmul.mubr.bf16.gmra.mrb[60].mxu1 %v4850_v3  ;;  %v4914_v3 = vcombine.low %v475_v55, %v479_v56 }
 0x23c   : > { %3848 = vmatmul.mubr.bf16.gmra.mrb[60].mxu0 %v4854_v4  ;;  %3151 = vmatprep.mubr.bf16.mxu1 %v4859_v5  ;;  %v4918_v4 = vcombine.low %v477_v57, %v481_v58  ;;  %v4923_v5 = vcombine.high %v483_v63, %v487_v0 }
 0x23d   : > { %3857 = vmatprep.mubr.bf16.mxu0 %v4863_v6  ;;  %v4927_v6 = vcombine.high %v485_v1, %v489_v2 }
 0x243   : > { %3152 = vmatmul.mubr.bf16.gmra.mrb[64].mxu1 %v4858_v11  ;;  %v4922_v11 = vcombine.low %v483_v63, %v487_v0  ;;  %v6809_v63 = vld [vmem:[%s6531_s9 + $0x768] sm:$0xff]  ;;  %v6812_v0 = vld [vmem:[%s6531_s9 + $0x758] sm:$0xff] }
 0x244   : > { %3858 = vmatmul.mubr.bf16.gmra.mrb[64].mxu0 %v4862_v12  ;;  %3161 = vmatprep.mubr.bf16.mxu1 %v4867_v13  ;;  %v4926_v12 = vcombine.low %v485_v1, %v489_v2  ;;  %v4931_v13 = vcombine.high %v491_v7, %v495_v8  ;;  %v6815_v1 = vld [vmem:[%s6531_s9 + $0x778] sm:$0xff] }
 0x245   : > { %3867 = vmatprep.mubr.bf16.mxu0 %v4871_v14  ;;  %v4935_v14 = vcombine.high %v493_v9, %v497_v10 }
 0x24b   : > { %3162 = vmatmul.mubr.bf16.gmra.mrb[68].mxu1 %v4866_v19  ;;  %v4930_v19 = vcombine.low %v491_v7, %v495_v8  ;;  %v4958_v8 = vcombine.low %v517_v40, %v521_v41 }
 0x24c   : > { %3868 = vmatmul.mubr.bf16.gmra.mrb[68].mxu0 %v4870_v20  ;;  %3171 = vmatprep.mubr.bf16.mxu1 %v4875_v21  ;;  %v4934_v20 = vcombine.low %v493_v9, %v497_v10  ;;  %v676_v21 = vlaneseq  ;;  %v4146_v9 = vld [vmem:[#allocation8] sm:$0x3] }
 0x24d   : > { %3877 = vmatprep.mubr.bf16.mxu0 %v4879_v22  ;;  %v4939_v22 = vcombine.high %v499_v15, %v503_v16 }
 0x24e   : > { %v6781_v24 = vshrl.u32 %v676_v21, 7 }
 0x250   : > { %v678_v31 = vsub.s32 0, %v6781_v24  ;;  %v682_v33 = vsub.s32 1, %v6781_v24 }
 0x252   : > { %v6827_v21 = vrot.slane %v4146_v9, %v678_v31 }
 0x253   : > { %3172 = vmatmul.mubr.bf16.gmra.mrb[72].mxu1 %v4874_v27  ;;  %v509_v27 = vld [vmem:[%s6531_s9 + $0x6d8] sm:$0xff] }
 0x254   : > { %3878 = vmatmul.mubr.bf16.gmra.mrb[72].mxu0 %v4878_v28  ;;  %3181 = vmatprep.mubr.bf16.mxu1 %v4883_v29  ;;  %v513_v28 = vld [vmem:[%s6531_s9 + $0x6f8] sm:$0xff]  ;;  %v4938_v29 = vcombine.low %v499_v15, %v503_v16 }
 0x255   : > { %3887 = vmatprep.mubr.bf16.mxu0 %v4887_v30  ;;  %v4942_v30 = vcombine.low %v501_v17, %v505_v18  ;;  %v4950_v48 = vcombine.low %v509_v27, %v513_v28 }
 0x25b   : > { %3182 = vmatmul.mubr.bf16.gmra.mrb[76].mxu1 %v4882_v35  ;;  %v4951_v35 = vcombine.high %v509_v27, %v513_v28  ;;  %v6837_v28 = vld [vmem:[%s6531_s9 + $0x7a8] sm:$0xff] }
 0x25c   : > { %3888 = vmatmul.mubr.bf16.gmra.mrb[76].mxu0 %v4886_v36  ;;  %3191 = vmatprep.mubr.bf16.mxu1 %v4891_v37  ;;  %v6791_v36 = vrot.slane %v674_v32, %v678_v31  ;;  %v6795_v37 = vrot.slane %v674_v32, %v682_v33 }
 0x25d   : > { %3897 = vmatprep.mubr.bf16.mxu0 %v4895_v38  ;;  %v515_v38 = vld [vmem:[%s6531_s9 + $0x708] sm:$0xff] }
 0x25e   : > { %v4954_v7 = vcombine.low %v515_v38, %v519_v39 }
 0x263   : > { %3192 = vmatmul.mubr.bf16.gmra.mrb[80].mxu1 %v4890_v43 }
 0x264   : > { %3898 = vmatmul.mubr.bf16.gmra.mrb[80].mxu0 %v4894_v44  ;;  %3201 = vmatprep.mubr.bf16.mxu1 %v4899_v45 }
 0x265   : > { %3907 = vmatprep.mubr.bf16.mxu0 %v4903_v46 }
 0x26b   : > { %3202 = vmatmul.mubr.bf16.gmra.mrb[84].mxu1 %v4898_v51 }
 0x26c   : > { %3908 = vmatmul.mubr.bf16.gmra.mrb[84].mxu0 %v4902_v52  ;;  %3211 = vmatprep.mubr.bf16.mxu1 %v4907_v53  ;;  %v4955_v52 = vcombine.high %v515_v38, %v519_v39  ;;  %v4959_v53 = vcombine.high %v517_v40, %v521_v41  ;;  %v4966_v41 = vcombine.low %v6812_v0, %v6815_v1 }
 0x26d   : > { %3917 = vmatprep.mubr.bf16.mxu0 %v4911_v54 }
 0x273   : > { %3212 = vmatmul.mubr.bf16.gmra.mrb[88].mxu1 %v4906_v59 }
 0x274   : > { %3918 = vmatmul.mubr.bf16.gmra.mrb[88].mxu0 %v4910_v60  ;;  %3221 = vmatprep.mubr.bf16.mxu1 %v4915_v61 }
 0x275   : > { %3927 = vmatprep.mubr.bf16.mxu0 %v4919_v62  ;;  %v6806_v62 = vld [vmem:[%s6531_s9 + $0x748] sm:$0xff] }
 0x276   : > { %v4962_v40 = vcombine.low %v6806_v62, %v6809_v63 }
 0x27b   : > { %3222 = vmatmul.mubr.bf16.gmra.mrb[92].mxu1 %v4914_v3 }
 0x27c   : > { %3928 = vmatmul.mubr.bf16.gmra.mrb[92].mxu0 %v4918_v4  ;;  %3231 = vmatprep.mubr.bf16.mxu1 %v4923_v5 }
 0x27d   : > { %3937 = vmatprep.mubr.bf16.mxu0 %v4927_v6 }
 0x283   : > { %3232 = vmatmul.mubr.bf16.gmra.mrb[96].mxu1 %v4922_v11 }
 0x284   : > { %3938 = vmatmul.mubr.bf16.gmra.mrb[96].mxu0 %v4926_v12  ;;  %3241 = vmatprep.mubr.bf16.mxu1 %v4931_v13  ;;  %v4963_v13 = vcombine.high %v6806_v62, %v6809_v63  ;;  %v6865_v63 = vld [vmem:[%s6531_s9 + $0x7e8] sm:$0xff] }
 0x285   : > { %3947 = vmatprep.mubr.bf16.mxu0 %v4935_v14  ;;  %v4967_v14 = vcombine.high %v6812_v0, %v6815_v1  ;;  %v6868_v0 = vld [vmem:[%s6531_s9 + $0x7d8] sm:$0xff] }
 0x286   : > { %v6871_v1 = vld [vmem:[%s6531_s9 + $0x7f8] sm:$0xff] }
 0x28b   : > { %3242 = vmatmul.mubr.bf16.gmra.mrb[100].mxu1 %v4930_v19 }
 0x28c   : > { %3948 = vmatmul.mubr.bf16.gmra.mrb[100].mxu0 %v4934_v20  ;;  %3251 = vmatprep.mubr.bf16.mxu1 %v4939_v22 }
 0x28d   : > { %3957 = vmatprep.mubr.bf16.mxu0 %v4943_v23  ;;  %v6831_v23 = vrot.slane %v4146_v9, %v682_v33 }
 0x293   : > { %3252 = vmatmul.mubr.bf16.gmra.mrb[104].mxu1 %v4938_v29  ;;  %v6840_v29 = vld [vmem:[%s6531_s9 + $0x798] sm:$0xff] }
 0x294   : > { %3958 = vmatmul.mubr.bf16.gmra.mrb[104].mxu0 %v4942_v30  ;;  %3261 = vmatprep.mubr.bf16.mxu1 %v4947_v34  ;;  %v6843_v30 = vld [vmem:[%s6531_s9 + $0x7b8] sm:$0xff] }
 0x295   : > { %3967 = vmatprep.mubr.bf16.mxu0 %v4951_v35 }
 0x296   : > { %v2993_v42 = vpop.f32.mrb[0].mxu1 }
 0x297   : > { %v3699_v43 = vpop.f32.mrb[0].mxu0  ;;  %v5117_v44 = vadd.f32 %v2993_v42, %v6791_v36  ;;  %v2995_v45 = vpop.f32.mrb[1].mxu1 }
 0x298   : > { %v3701_v46 = vpop.f32.mrb[1].mxu0  ;;  %v5119_v49 = vadd.f32 %v2995_v45, %v6795_v37  ;;  %v2997_v50 = vpop.f32.mrb[2].mxu1 }
 0x299   : > { %v3703_v51 = vpop.f32.mrb[2].mxu0  ;;  %v5118_v54 = vadd.f32 %v5117_v44, %v3699_v43  ;;  %v5121_v55 = vadd.f32 %v2997_v50, %v6791_v36  ;;  %v2999_v56 = vpop.f32.mrb[3].mxu1 }
 0x29a   : > { %v3705_v57 = vpop.f32.mrb[3].mxu0  ;;  %v5120_v58 = vadd.f32 %v5119_v49, %v3701_v46  ;;  %v5123_v59 = vadd.f32 %v2999_v56, %v6795_v37  ;;  %v4975_v49 = vcombine.high %v6840_v29, %v6843_v30 }
 0x29b   : > { %5895 = vtanh.f32 %v5118_v54  ;;  %v5122_v60 = vadd.f32 %v5121_v55, %v3703_v51  ;;  %3262 = vmatmul.mubr.bf16.gmra.mrb[108].mxu1 %v4946_v47 }
 0x29c   : > { %3968 = vmatmul.mubr.bf16.gmra.mrb[108].mxu0 %v4950_v48  ;;  %5897 = vtanh.f32 %v5120_v58  ;;  %v5124_v61 = vadd.f32 %v5123_v59, %v3705_v57  ;;  %3271 = vmatprep.mubr.bf16.mxu1 %v4955_v52  ;;  %v4971_v48 = vcombine.high %v6834_v26, %v6837_v28 }
 0x29d   : > { %3977 = vmatprep.mubr.bf16.mxu0 %v4959_v53  ;;  %5899 = vtanh.f32 %v5122_v60 }
 0x29e   : > { %5901 = vtanh.f32 %v5124_v61  ;;  %v3003_v2 = vpop.f32.mrb[4].mxu1  ;;  %v6862_v61 = vld [vmem:[%s6531_s9 + $0x7c8] sm:$0xff] }
 0x29f   : > { %v3709_v3 = vpop.f32.mrb[4].mxu0  ;;  %v5125_v4 = vadd.f32 %v3003_v2, %v6791_v36  ;;  %v3005_v5 = vpop.f32.mrb[5].mxu1 }
 0x2a0   : > { %v3711_v6 = vpop.f32.mrb[5].mxu0  ;;  %v5127_v10 = vadd.f32 %v3005_v5, %v6795_v37  ;;  %v3007_v11 = vpop.f32.mrb[6].mxu1 }
 0x2a1   : > { %v3713_v12 = vpop.f32.mrb[6].mxu0  ;;  %v5126_v15 = vadd.f32 %v5125_v4, %v3709_v3  ;;  %v5129_v16 = vadd.f32 %v3007_v11, %v6791_v36  ;;  %v3009_v17 = vpop.f32.mrb[7].mxu1  ;;  %v4974_v11 = vcombine.low %v6840_v29, %v6843_v30 }
 0x2a2   : > { %v3715_v18 = vpop.f32.mrb[7].mxu0  ;;  %v5128_v19 = vadd.f32 %v5127_v10, %v3711_v6  ;;  %v5131_v20 = vadd.f32 %v3009_v17, %v6795_v37  ;;  %v4970_v10 = vcombine.low %v6834_v26, %v6837_v28 }
 0x2a3   : > { %5903 = vtanh.f32 %v5126_v15  ;;  %v5130_v22 = vadd.f32 %v5129_v16, %v3713_v12  ;;  %3272 = vmatmul.mubr.bf16.gmra.mrb[112].mxu1 %v4954_v7 }
 0x2a4   : > { %3978 = vmatmul.mubr.bf16.gmra.mrb[112].mxu0 %v4958_v8  ;;  %5905 = vtanh.f32 %v5128_v19  ;;  %v5132_v25 = vadd.f32 %v5131_v20, %v3715_v18  ;;  %3281 = vmatprep.mubr.bf16.mxu1 %v4963_v13  ;;  %v4979_v18 = vcombine.high %v6862_v61, %v6865_v63  ;;  %v4983_v19 = vcombine.high %v6868_v0, %v6871_v1 }
 0x2a5   : > { %3987 = vmatprep.mubr.bf16.mxu0 %v4967_v14  ;;  %v5896_v27 = vpop.eup %5895  ;;  %5907 = vtanh.f32 %v5130_v22 }
 0x2a6   : > { %v5898_v31 = vpop.eup %5897  ;;  %5909 = vtanh.f32 %v5132_v25  ;;  %v3013_v32 = vpop.f32.mrb[8].mxu1  ;;  %v4158_v33 = vmul.f32 %v5896_v27, %v6827_v21 }
 0x2a7   : > { %v3719_v24 = vpop.f32.mrb[8].mxu0  ;;  %v5900_v34 = vpop.eup %5899  ;;  %v5133_v35 = vadd.f32 %v3013_v32, %v6791_v36  ;;  %v4159_v42 = vmul.f32 %v5898_v31, %v6831_v23 }
 0x2a8   : > { %v3015_v38 = vpop.f32.mrb[9].mxu1  ;;  %v3721_v39 = vpop.f32.mrb[9].mxu0  ;;  %v4160_v47 = vmul.f32 %v5900_v34, %v6827_v21 }
 0x2a9   : > { %v5902_v43 = vpop.eup %5901  ;;  %v5135_v44 = vadd.f32 %v3015_v38, %v6795_v37  ;;  %v3017_v45 = vpop.f32.mrb[10].mxu1  ;;  %v5134_v50 = vadd.f32 %v5133_v35, %v3719_v24  ;;  %v4286_v54 = vadd.f32 %v4159_v42, %v4158_v33 }
 0x2aa   : > { %v3723_v46 = vpop.f32.mrb[10].mxu0  ;;  %v5137_v51 = vadd.f32 %v3017_v45, %v6791_v36  ;;  %v3019_v52 = vpop.f32.mrb[11].mxu1  ;;  %v4161_v55 = vmul.f32 %v5902_v43, %v6831_v23  ;;  %v4982_v45 = vcombine.low %v6868_v0, %v6871_v1 }
 0x2ab   : > { %v3725_v53 = vpop.f32.mrb[11].mxu0  ;;  %v5136_v56 = vadd.f32 %v5135_v44, %v3721_v39  ;;  %v5139_v57 = vadd.f32 %v3019_v52, %v6795_v37  ;;  %5911 = vtanh.f32 %v5134_v50  ;;  %3282 = vmatmul.mubr.bf16.gmra.mrb[116].mxu1 %v4962_v40  ;;  %4287 = vadd.xlane.f32.xlu0 %v4286_v54  ;;  %v4978_v44 = vcombine.low %v6862_v61, %v6865_v63 }
 0x2ac   : > { %v5138_v58 = vadd.f32 %v5137_v51, %v3723_v46  ;;  %3988 = vmatmul.mubr.bf16.gmra.mrb[116].mxu0 %v4966_v41  ;;  %v4289_v59 = vadd.f32 %v4161_v55, %v4160_v47  ;;  %3291 = vmatprep.mubr.bf16.mxu1 %v4971_v48 }
 0x2ad   : > { %5913 = vtanh.f32 %v5136_v56  ;;  %v5140_v60 = vadd.f32 %v5139_v57, %v3725_v53  ;;  %v5904_v62 = vpop.eup %5903  ;;  %3997 = vmatprep.mubr.bf16.mxu0 %v4975_v49 }
 0x2ae   : > { %5915 = vtanh.f32 %v5138_v58  ;;  %v5906_v2 = vpop.eup %5905  ;;  %v3023_v3 = vpop.f32.mrb[12].mxu1  ;;  %v4162_v5 = vmul.f32 %v5904_v62, %v6827_v21 }
 0x2af   : > { %5917 = vtanh.f32 %v5140_v60  ;;  %v3729_v4 = vpop.f32.mrb[12].mxu0  ;;  %v5908_v6 = vpop.eup %5907  ;;  %v5141_v7 = vadd.f32 %v3023_v3, %v6791_v36  ;;  %v4163_v12 = vmul.f32 %v5906_v2, %v6831_v23  ;;  %4290 = vadd.xlane.f32.xlu0 %v4289_v59 }
 0x2b0   : > { %v3731_v8 = vpop.f32.mrb[13].mxu0  ;;  %v3025_v9 = vpop.f32.mrb[13].mxu1  ;;  %v4164_v17 = vmul.f32 %v5908_v6, %v6827_v21 }
 0x2b1   : > { %v5910_v13 = vpop.eup %5909  ;;  %v5143_v14 = vadd.f32 %v3025_v9, %v6795_v37  ;;  %v3027_v15 = vpop.f32.mrb[14].mxu1  ;;  %v5142_v20 = vadd.f32 %v5141_v7, %v3729_v4  ;;  %v4292_v27 = vadd.f32 %v4163_v12, %v4162_v5 }
 0x2b2   : > { %v3733_v16 = vpop.f32.mrb[14].mxu0  ;;  %v5145_v22 = vadd.f32 %v3027_v15, %v6791_v36  ;;  %v3029_v25 = vpop.f32.mrb[15].mxu1  ;;  %v4165_v28 = vmul.f32 %v5910_v13, %v6831_v23 }
 0x2b3   : > { %v3735_v26 = vpop.f32.mrb[15].mxu0  ;;  %v5144_v29 = vadd.f32 %v5143_v14, %v3731_v8  ;;  %v5147_v30 = vadd.f32 %v3029_v25, %v6795_v37  ;;  %5919 = vtanh.f32 %v5142_v20  ;;  %3292 = vmatmul.mubr.bf16.gmra.mrb[120].mxu1 %v4970_v10  ;;  %4293 = vadd.xlane.f32.xlu1 %v4292_v27 }
 0x2b4   : > { %v5146_v31 = vadd.f32 %v5145_v22, %v3733_v16  ;;  %3998 = vmatmul.mubr.bf16.gmra.mrb[120].mxu0 %v4974_v11  ;;  %v4295_v32 = vadd.f32 %v4165_v28, %v4164_v17  ;;  %3301 = vmatprep.mubr.bf16.mxu1 %v4979_v18 }
 0x2b5   : > { %5921 = vtanh.f32 %v5144_v29  ;;  %v5148_v24 = vadd.f32 %v5147_v30, %v3735_v26  ;;  %v5912_v33 = vpop.eup %5911  ;;  %4007 = vmatprep.mubr.bf16.mxu0 %v4983_v19 }
 0x2b6   : > { %5923 = vtanh.f32 %v5146_v31  ;;  %v3033_v35 = vpop.f32.mrb[16].mxu1  ;;  %v4166_v39 = vmul.f32 %v5912_v33, %v6827_v21 }
 0x2b7   : > { %v5914_v34 = vpop.eup %5913  ;;  %5925 = vtanh.f32 %v5148_v24  ;;  %v3739_v38 = vpop.f32.mrb[16].mxu0  ;;  %v5149_v41 = vadd.f32 %v3033_v35, %v6791_v36  ;;  %4296 = vadd.xlane.f32.xlu1 %v4295_v32 }
 0x2b8   : > { %v5916_v40 = vpop.eup %5915  ;;  %v3741_v42 = vpop.f32.mrb[17].mxu0  ;;  %v4167_v46 = vmul.f32 %v5914_v34, %v6831_v23 }
 0x2b9   : > { %v3035_v43 = vpop.f32.mrb[17].mxu1  ;;  %v5918_v47 = vpop.eup %5917  ;;  %v4168_v51 = vmul.f32 %v5916_v40, %v6827_v21  ;;  %v5150_v52 = vadd.f32 %v5149_v41, %v3739_v38 }
 0x2ba   : > { %v5151_v48 = vadd.f32 %v3035_v43, %v6795_v37  ;;  %v3037_v49 = vpop.f32.mrb[18].mxu1  ;;  %v3743_v50 = vpop.f32.mrb[18].mxu0  ;;  %v4298_v56 = vadd.f32 %v4167_v46, %v4166_v39  ;;  %v4169_v57 = vmul.f32 %v5918_v47, %v6831_v23 }
 0x2bb   : > { %v5153_v53 = vadd.f32 %v3037_v49, %v6791_v36  ;;  %v3039_v54 = vpop.f32.mrb[19].mxu1  ;;  %v3745_v55 = vpop.f32.mrb[19].mxu0  ;;  %5927 = vtanh.f32 %v5150_v52  ;;  %3302 = vmatmul.mubr.bf16.gmra.mrb[124].mxu1 %v4978_v44 }
 0x2bc   : > { %v5152_v58 = vadd.f32 %v5151_v48, %v3741_v42  ;;  %v5155_v59 = vadd.f32 %v3039_v54, %v6795_v37  ;;  %4008 = vmatmul.mubr.bf16.gmra.mrb[124].mxu0 %v4982_v45  ;;  %v4301_v61 = vadd.f32 %v4169_v57, %v4168_v51  ;;  %4299 = vadd.xlane.f32.xlu0 %v4298_v56 }
 0x2bd   : > { %v5154_v60 = vadd.f32 %v5153_v53, %v3743_v50  ;;  %v5920_v63 = vpop.eup %5919 }
 0x2be   : > { %5929 = vtanh.f32 %v5152_v58  ;;  %v5156_v62 = vadd.f32 %v5155_v59, %v3745_v55  ;;  %4302 = vadd.xlane.f32.xlu1 %v4301_v61  ;;  %v3043_v1 = vpop.f32.mrb[20].mxu1  ;;  %v4170_v3 = vmul.f32 %v5920_v63, %v6827_v21 }
 0x2bf   : > { %5931 = vtanh.f32 %v5154_v60  ;;  %v5922_v0 = vpop.eup %5921  ;;  %v3749_v2 = vpop.f32.mrb[20].mxu0  ;;  %v5157_v5 = vadd.f32 %v3043_v1, %v6791_v36 }
 0x2c0   : > { %5933 = vtanh.f32 %v5156_v62  ;;  %v5924_v4 = vpop.eup %5923  ;;  %v3045_v6 = vpop.f32.mrb[21].mxu1  ;;  %v4171_v8 = vmul.f32 %v5922_v0, %v6831_v23 }
 0x2c1   : > { %v3751_v7 = vpop.f32.mrb[21].mxu0  ;;  %v5926_v9 = vpop.eup %5925  ;;  %v5159_v10 = vadd.f32 %v3045_v6, %v6795_v37  ;;  %v4172_v13 = vmul.f32 %v5924_v4, %v6827_v21  ;;  %v5158_v14 = vadd.f32 %v5157_v5, %v3749_v2 }
 0x2c2   : > { %v3047_v11 = vpop.f32.mrb[22].mxu1  ;;  %v3753_v12 = vpop.f32.mrb[22].mxu0  ;;  %v4304_v18 = vadd.f32 %v4171_v8, %v4170_v3  ;;  %v4173_v19 = vmul.f32 %v5926_v9, %v6831_v23 }
 0x2c3   : > { %v5161_v15 = vadd.f32 %v3047_v11, %v6791_v36  ;;  %v3049_v16 = vpop.f32.mrb[23].mxu1  ;;  %v3755_v17 = vpop.f32.mrb[23].mxu0  ;;  %v5160_v20 = vadd.f32 %v5159_v10, %v3751_v7  ;;  %5935 = vtanh.f32 %v5158_v14 }
 0x2c4   : > { %v5163_v22 = vadd.f32 %v3049_v16, %v6795_v37  ;;  %4305 = vadd.xlane.f32.xlu0 %v4304_v18  ;;  %v4307_v26 = vadd.f32 %v4173_v19, %v4172_v13 }
 0x2c5   : > { %v5162_v25 = vadd.f32 %v5161_v15, %v3753_v12  ;;  %5937 = vtanh.f32 %v5160_v20  ;;  %v5928_v28 = vpop.eup %5927 }
 0x2c6   : > { %v5164_v27 = vadd.f32 %v5163_v22, %v3755_v17  ;;  %4308 = vadd.xlane.f32.xlu1 %v4307_v26  ;;  %v3053_v30 = vpop.f32.mrb[24].mxu1  ;;  %v4174_v32 = vmul.f32 %v5928_v28, %v6827_v21 }
 0x2c7   : > { %5939 = vtanh.f32 %v5162_v25  ;;  %v3759_v31 = vpop.f32.mrb[24].mxu0  ;;  %v5165_v33 = vadd.f32 %v3053_v30, %v6791_v36  ;;  %v3055_v34 = vpop.f32.mrb[25].mxu1 }
 0x2c8   : > { %v5930_v29 = vpop.eup %5929  ;;  %5941 = vtanh.f32 %v5164_v27  ;;  %v3761_v35 = vpop.f32.mrb[25].mxu0  ;;  %v5167_v40 = vadd.f32 %v3055_v34, %v6795_v37 }
 0x2c9   : > { %v5932_v24 = vpop.eup %5931  ;;  %v4175_v38 = vmul.f32 %v5930_v29, %v6831_v23  ;;  %v3057_v41 = vpop.f32.mrb[26].mxu1  ;;  %v5166_v44 = vadd.f32 %v5165_v33, %v3759_v31 }
 0x2ca   : > { %v5934_v39 = vpop.eup %5933  ;;  %v3763_v42 = vpop.f32.mrb[26].mxu0  ;;  %v4176_v43 = vmul.f32 %v5932_v24, %v6827_v21  ;;  %v5169_v45 = vadd.f32 %v3057_v41, %v6791_v36  ;;  %v5168_v50 = vadd.f32 %v5167_v40, %v3761_v35 }
 0x2cb   : > { %v3059_v46 = vpop.f32.mrb[27].mxu1  ;;  %v3765_v47 = vpop.f32.mrb[27].mxu0  ;;  %v4310_v48 = vadd.f32 %v4175_v38, %v4174_v32  ;;  %v4177_v49 = vmul.f32 %v5934_v39, %v6831_v23  ;;  %5943 = vtanh.f32 %v5166_v44 }
 0x2cc   : > { %v5171_v51 = vadd.f32 %v3059_v46, %v6795_v37  ;;  %v5170_v52 = vadd.f32 %v5169_v45, %v3763_v42  ;;  %5945 = vtanh.f32 %v5168_v50 }
 0x2cd   : > { %4311 = vadd.xlane.f32.xlu0 %v4310_v48  ;;  %v4313_v53 = vadd.f32 %v4177_v49, %v4176_v43  ;;  %v5936_v55 = vpop.eup %5935 }
 0x2ce   : > { %v5172_v54 = vadd.f32 %v5171_v51, %v3765_v47  ;;  %5947 = vtanh.f32 %v5170_v52  ;;  %v3063_v57 = vpop.f32.mrb[28].mxu1  ;;  %v4178_v59 = vmul.f32 %v5936_v55, %v6827_v21 }
 0x2cf   : > { %4314 = vadd.xlane.f32.xlu1 %v4313_v53  ;;  %v5938_v56 = vpop.eup %5937  ;;  %v3769_v58 = vpop.f32.mrb[28].mxu0  ;;  %v5173_v61 = vadd.f32 %v3063_v57, %v6791_v36 }
 0x2d0   : > { %5949 = vtanh.f32 %v5172_v54  ;;  %v3065_v62 = vpop.f32.mrb[29].mxu1  ;;  %v3771_v63 = vpop.f32.mrb[29].mxu0  ;;  %v4179_v0 = vmul.f32 %v5938_v56, %v6831_v23 }
 0x2d1   : > { %v5940_v60 = vpop.eup %5939  ;;  %v5175_v2 = vadd.f32 %v3065_v62, %v6795_v37  ;;  %v3067_v3 = vpop.f32.mrb[30].mxu1  ;;  %v5174_v6 = vadd.f32 %v5173_v61, %v3769_v58 }
 0x2d2   : > { %v5942_v1 = vpop.eup %5941  ;;  %v3773_v4 = vpop.f32.mrb[30].mxu0  ;;  %v4180_v5 = vmul.f32 %v5940_v60, %v6827_v21  ;;  %v5177_v7 = vadd.f32 %v3067_v3, %v6791_v36  ;;  %v4316_v10 = vadd.f32 %v4179_v0, %v4178_v59 }
 0x2d3   : > { %v3069_v8 = vpop.f32.mrb[31].mxu1  ;;  %v3775_v9 = vpop.f32.mrb[31].mxu0  ;;  %v4181_v11 = vmul.f32 %v5942_v1, %v6831_v23  ;;  %v5176_v12 = vadd.f32 %v5175_v2, %v3771_v63  ;;  %5951 = vtanh.f32 %v5174_v6 }
 0x2d4   : > { %v5179_v13 = vadd.f32 %v3069_v8, %v6795_v37  ;;  %v5178_v14 = vadd.f32 %v5177_v7, %v3773_v4  ;;  %4317 = vadd.xlane.f32.xlu0 %v4316_v10 }
 0x2d5   : > { %v4319_v15 = vadd.f32 %v4181_v11, %v4180_v5  ;;  %5953 = vtanh.f32 %v5176_v12  ;;  %v5944_v17 = vpop.eup %5943 }
 0x2d6   : > { %v5180_v16 = vadd.f32 %v5179_v13, %v3775_v9  ;;  %5955 = vtanh.f32 %v5178_v14  ;;  %v5946_v18 = vpop.eup %5945  ;;  %v3073_v19 = vpop.f32.mrb[32].mxu1  ;;  %v4182_v22 = vmul.f32 %v5944_v17, %v6827_v21 }
 0x2d7   : > { %4320 = vadd.xlane.f32.xlu1 %v4319_v15  ;;  %v3779_v20 = vpop.f32.mrb[32].mxu0  ;;  %v5181_v26 = vadd.f32 %v3073_v19, %v6791_v36  ;;  %v3075_v27 = vpop.f32.mrb[33].mxu1  ;;  %v4183_v29 = vmul.f32 %v5946_v18, %v6831_v23 }
 0x2d8   : > { %5957 = vtanh.f32 %v5180_v16  ;;  %v5948_v25 = vpop.eup %5947  ;;  %v3781_v28 = vpop.f32.mrb[33].mxu0  ;;  %v5183_v31 = vadd.f32 %v3075_v27, %v6795_v37 }
 0x2d9   : > { %v3077_v32 = vpop.f32.mrb[34].mxu1  ;;  %v3783_v24 = vpop.f32.mrb[34].mxu0  ;;  %v4184_v33 = vmul.f32 %v5948_v25, %v6827_v21  ;;  %v5182_v34 = vadd.f32 %v5181_v26, %v3779_v20  ;;  %v4322_v40 = vadd.f32 %v4183_v29, %v4182_v22 }
 0x2da   : > { %v5950_v30 = vpop.eup %5949  ;;  %v5185_v35 = vadd.f32 %v3077_v32, %v6791_v36  ;;  %v3079_v38 = vpop.f32.mrb[35].mxu1  ;;  %v5184_v42 = vadd.f32 %v5183_v31, %v3781_v28 }
 0x2db   : > { %v3785_v39 = vpop.f32.mrb[35].mxu0  ;;  %v4185_v41 = vmul.f32 %v5950_v30, %v6831_v23  ;;  %v5187_v43 = vadd.f32 %v3079_v38, %v6795_v37  ;;  %5959 = vtanh.f32 %v5182_v34  ;;  %4323 = vadd.xlane.f32.xlu0 %v4322_v40 }
 0x2dc   : > { %v5186_v44 = vadd.f32 %v5185_v35, %v3783_v24  ;;  %5961 = vtanh.f32 %v5184_v42 }
 0x2dd   : > { %v4325_v45 = vadd.f32 %v4185_v41, %v4184_v33  ;;  %v5188_v46 = vadd.f32 %v5187_v43, %v3785_v39  ;;  %v5952_v47 = vpop.eup %5951 }
 0x2de   : > { %5963 = vtanh.f32 %v5186_v44  ;;  %v3083_v49 = vpop.f32.mrb[36].mxu1  ;;  %v4186_v51 = vmul.f32 %v5952_v47, %v6827_v21 }
 0x2df   : > { %4326 = vadd.xlane.f32.xlu1 %v4325_v45  ;;  %v5954_v48 = vpop.eup %5953  ;;  %5965 = vtanh.f32 %v5188_v46  ;;  %v3789_v50 = vpop.f32.mrb[36].mxu0  ;;  %v5189_v53 = vadd.f32 %v3083_v49, %v6791_v36 }
 0x2e0   : > { %v5956_v52 = vpop.eup %5955  ;;  %v3085_v54 = vpop.f32.mrb[37].mxu1  ;;  %v4187_v56 = vmul.f32 %v5954_v48, %v6831_v23 }
 0x2e1   : > { %v3791_v55 = vpop.f32.mrb[37].mxu0  ;;  %v5191_v58 = vadd.f32 %v3085_v54, %v6795_v37  ;;  %v3087_v59 = vpop.f32.mrb[38].mxu1  ;;  %v4188_v61 = vmul.f32 %v5956_v52, %v6827_v21  ;;  %v5190_v62 = vadd.f32 %v5189_v53, %v3789_v50 }
 0x2e2   : > { %v5958_v57 = vpop.eup %5957  ;;  %v3793_v60 = vpop.f32.mrb[38].mxu0  ;;  %v5193_v63 = vadd.f32 %v3087_v59, %v6791_v36  ;;  %v4328_v2 = vadd.f32 %v4187_v56, %v4186_v51 }
 0x2e3   : > { %v3089_v0 = vpop.f32.mrb[39].mxu1  ;;  %v3795_v1 = vpop.f32.mrb[39].mxu0  ;;  %v4189_v3 = vmul.f32 %v5958_v57, %v6831_v23  ;;  %v5192_v4 = vadd.f32 %v5191_v58, %v3791_v55  ;;  %5967 = vtanh.f32 %v5190_v62 }
 0x2e4   : > { %v5195_v5 = vadd.f32 %v3089_v0, %v6795_v37  ;;  %v5194_v6 = vadd.f32 %v5193_v63, %v3793_v60  ;;  %4329 = vadd.xlane.f32.xlu0 %v4328_v2 }
 0x2e5   : > { %v4331_v7 = vadd.f32 %v4189_v3, %v4188_v61  ;;  %5969 = vtanh.f32 %v5192_v4  ;;  %v5960_v9 = vpop.eup %5959 }
 0x2e6   : > { %v5196_v8 = vadd.f32 %v5195_v5, %v3795_v1  ;;  %5971 = vtanh.f32 %v5194_v6  ;;  %v5962_v10 = vpop.eup %5961  ;;  %v3093_v11 = vpop.f32.mrb[40].mxu1  ;;  %v4190_v13 = vmul.f32 %v5960_v9, %v6827_v21 }
 0x2e7   : > { %4332 = vadd.xlane.f32.xlu1 %v4331_v7  ;;  %v3799_v12 = vpop.f32.mrb[40].mxu0  ;;  %v5197_v15 = vadd.f32 %v3093_v11, %v6791_v36  ;;  %v3095_v16 = vpop.f32.mrb[41].mxu1  ;;  %v4191_v18 = vmul.f32 %v5962_v10, %v6831_v23 }
 0x2e8   : > { %5973 = vtanh.f32 %v5196_v8  ;;  %v5964_v14 = vpop.eup %5963  ;;  %v3801_v17 = vpop.f32.mrb[41].mxu0  ;;  %v5199_v20 = vadd.f32 %v3095_v16, %v6795_v37 }
 0x2e9   : > { %v5966_v19 = vpop.eup %5965  ;;  %v3097_v22 = vpop.f32.mrb[42].mxu1  ;;  %v4192_v26 = vmul.f32 %v5964_v14, %v6827_v21  ;;  %v5198_v27 = vadd.f32 %v5197_v15, %v3799_v12  ;;  %v4334_v31 = vadd.f32 %v4191_v18, %v4190_v13 }
 0x2ea   : > { %v3803_v25 = vpop.f32.mrb[42].mxu0  ;;  %v5201_v28 = vadd.f32 %v3097_v22, %v6791_v36  ;;  %v3099_v29 = vpop.f32.mrb[43].mxu1  ;;  %v4193_v32 = vmul.f32 %v5966_v19, %v6831_v23  ;;  %v5200_v24 = vadd.f32 %v5199_v20, %v3801_v17 }
 0x2eb   : > { %v3805_v30 = vpop.f32.mrb[43].mxu0  ;;  %v5203_v33 = vadd.f32 %v3099_v29, %v6795_v37  ;;  %5975 = vtanh.f32 %v5198_v27  ;;  %4335 = vadd.xlane.f32.xlu0 %v4334_v31 }
 0x2ec   : > { %v5202_v34 = vadd.f32 %v5201_v28, %v3803_v25  ;;  %v4337_v35 = vadd.f32 %v4193_v32, %v4192_v26  ;;  %5977 = vtanh.f32 %v5200_v24 }
 0x2ed   : > { %v5204_v38 = vadd.f32 %v5203_v33, %v3805_v30  ;;  %v5968_v39 = vpop.eup %5967 }
 0x2ee   : > { %5979 = vtanh.f32 %v5202_v34  ;;  %4338 = vadd.xlane.f32.xlu1 %v4337_v35  ;;  %v3103_v41 = vpop.f32.mrb[44].mxu1  ;;  %v4194_v43 = vmul.f32 %v5968_v39, %v6827_v21 }
 0x2ef   : > { %v5970_v40 = vpop.eup %5969  ;;  %5981 = vtanh.f32 %v5204_v38  ;;  %v3809_v42 = vpop.f32.mrb[44].mxu0  ;;  %v5205_v45 = vadd.f32 %v3103_v41, %v6791_v36 }
 0x2f0   : > { %v5972_v44 = vpop.eup %5971  ;;  %v3105_v46 = vpop.f32.mrb[45].mxu1  ;;  %v4195_v48 = vmul.f32 %v5970_v40, %v6831_v23 }
 0x2f1   : > { %v3811_v47 = vpop.f32.mrb[45].mxu0  ;;  %v5207_v50 = vadd.f32 %v3105_v46, %v6795_v37  ;;  %v3107_v51 = vpop.f32.mrb[46].mxu1  ;;  %v4196_v53 = vmul.f32 %v5972_v44, %v6827_v21  ;;  %v5206_v54 = vadd.f32 %v5205_v45, %v3809_v42 }
 0x2f2   : > { %v5974_v49 = vpop.eup %5973  ;;  %v3813_v52 = vpop.f32.mrb[46].mxu0  ;;  %v5209_v55 = vadd.f32 %v3107_v51, %v6791_v36  ;;  %v4340_v58 = vadd.f32 %v4195_v48, %v4194_v43 }
 0x2f3   : > { %v3109_v56 = vpop.f32.mrb[47].mxu1  ;;  %v3815_v57 = vpop.f32.mrb[47].mxu0  ;;  %v4197_v59 = vmul.f32 %v5974_v49, %v6831_v23  ;;  %v5208_v60 = vadd.f32 %v5207_v50, %v3811_v47  ;;  %5983 = vtanh.f32 %v5206_v54 }
 0x2f4   : > { %v5211_v61 = vadd.f32 %v3109_v56, %v6795_v37  ;;  %v5210_v62 = vadd.f32 %v5209_v55, %v3813_v52  ;;  %4341 = vadd.xlane.f32.xlu0 %v4340_v58 }
 0x2f5   : > { %v4343_v63 = vadd.f32 %v4197_v59, %v4196_v53  ;;  %5985 = vtanh.f32 %v5208_v60  ;;  %v5976_v1 = vpop.eup %5975 }
 0x2f6   : > { %v5212_v0 = vadd.f32 %v5211_v61, %v3815_v57  ;;  %5987 = vtanh.f32 %v5210_v62  ;;  %v5978_v2 = vpop.eup %5977  ;;  %v3113_v3 = vpop.f32.mrb[48].mxu1  ;;  %v4198_v5 = vmul.f32 %v5976_v1, %v6827_v21 }
 0x2f7   : > { %4344 = vadd.xlane.f32.xlu1 %v4343_v63  ;;  %v3819_v4 = vpop.f32.mrb[48].mxu0  ;;  %v5213_v7 = vadd.f32 %v3113_v3, %v6791_v36  ;;  %v3115_v8 = vpop.f32.mrb[49].mxu1  ;;  %v4199_v10 = vmul.f32 %v5978_v2, %v6831_v23 }
 0x2f8   : > { %5989 = vtanh.f32 %v5212_v0  ;;  %v5980_v6 = vpop.eup %5979  ;;  %v3821_v9 = vpop.f32.mrb[49].mxu0  ;;  %v5215_v12 = vadd.f32 %v3115_v8, %v6795_v37 }
 0x2f9   : > { %v5982_v11 = vpop.eup %5981  ;;  %v3117_v13 = vpop.f32.mrb[50].mxu1  ;;  %v4200_v15 = vmul.f32 %v5980_v6, %v6827_v21  ;;  %v5214_v16 = vadd.f32 %v5213_v7, %v3819_v4  ;;  %v4346_v20 = vadd.f32 %v4199_v10, %v4198_v5 }
 0x2fa   : > { %v3823_v14 = vpop.f32.mrb[50].mxu0  ;;  %v5217_v17 = vadd.f32 %v3117_v13, %v6791_v36  ;;  %v3119_v18 = vpop.f32.mrb[51].mxu1  ;;  %v4201_v22 = vmul.f32 %v5982_v11, %v6831_v23  ;;  %v5216_v25 = vadd.f32 %v5215_v12, %v3821_v9 }
 0x2fb   : > { %v3825_v19 = vpop.f32.mrb[51].mxu0  ;;  %v5219_v26 = vadd.f32 %v3119_v18, %v6795_v37  ;;  %5991 = vtanh.f32 %v5214_v16  ;;  %4347 = vadd.xlane.f32.xlu0 %v4346_v20 }
 0x2fc   : > { %v5218_v27 = vadd.f32 %v5217_v17, %v3823_v14  ;;  %v4349_v28 = vadd.f32 %v4201_v22, %v4200_v15  ;;  %5993 = vtanh.f32 %v5216_v25 }
 0x2fd   : > { %v5220_v29 = vadd.f32 %v5219_v26, %v3825_v19  ;;  %v5984_v30 = vpop.eup %5983 }
 0x2fe   : > { %5995 = vtanh.f32 %v5218_v27  ;;  %4350 = vadd.xlane.f32.xlu1 %v4349_v28  ;;  %v3123_v32 = vpop.f32.mrb[52].mxu1  ;;  %v4202_v33 = vmul.f32 %v5984_v30, %v6827_v21 }
 0x2ff   : > { %v5986_v31 = vpop.eup %5985  ;;  %5997 = vtanh.f32 %v5220_v29  ;;  %v3829_v24 = vpop.f32.mrb[52].mxu0  ;;  %v5221_v35 = vadd.f32 %v3123_v32, %v6791_v36 }
 0x300   : > { %v5988_v34 = vpop.eup %5987  ;;  %v3125_v38 = vpop.f32.mrb[53].mxu1  ;;  %v4203_v40 = vmul.f32 %v5986_v31, %v6831_v23 }
 0x301   : > { %v3831_v39 = vpop.f32.mrb[53].mxu0  ;;  %v5223_v42 = vadd.f32 %v3125_v38, %v6795_v37  ;;  %v3127_v43 = vpop.f32.mrb[54].mxu1  ;;  %v4204_v45 = vmul.f32 %v5988_v34, %v6827_v21  ;;  %v5222_v46 = vadd.f32 %v5221_v35, %v3829_v24 }
 0x302   : > { %v5990_v41 = vpop.eup %5989  ;;  %v3833_v44 = vpop.f32.mrb[54].mxu0  ;;  %v5225_v47 = vadd.f32 %v3127_v43, %v6791_v36  ;;  %v4352_v50 = vadd.f32 %v4203_v40, %v4202_v33 }
 0x303   : > { %v3129_v48 = vpop.f32.mrb[55].mxu1  ;;  %v3835_v49 = vpop.f32.mrb[55].mxu0  ;;  %v4205_v51 = vmul.f32 %v5990_v41, %v6831_v23  ;;  %v5224_v52 = vadd.f32 %v5223_v42, %v3831_v39  ;;  %5999 = vtanh.f32 %v5222_v46 }
 0x304   : > { %v5227_v53 = vadd.f32 %v3129_v48, %v6795_v37  ;;  %v5226_v54 = vadd.f32 %v5225_v47, %v3833_v44  ;;  %4353 = vadd.xlane.f32.xlu0 %v4352_v50 }
 0x305   : > { %v4355_v55 = vadd.f32 %v4205_v51, %v4204_v45  ;;  %6001 = vtanh.f32 %v5224_v52  ;;  %v5992_v57 = vpop.eup %5991 }
 0x306   : > { %v5228_v56 = vadd.f32 %v5227_v53, %v3835_v49  ;;  %6003 = vtanh.f32 %v5226_v54  ;;  %v5994_v58 = vpop.eup %5993  ;;  %v3133_v59 = vpop.f32.mrb[56].mxu1  ;;  %v4206_v61 = vmul.f32 %v5992_v57, %v6827_v21 }
 0x307   : > { %4356 = vadd.xlane.f32.xlu1 %v4355_v55  ;;  %v3839_v60 = vpop.f32.mrb[56].mxu0  ;;  %v5229_v63 = vadd.f32 %v3133_v59, %v6791_v36  ;;  %v3135_v0 = vpop.f32.mrb[57].mxu1  ;;  %v4207_v2 = vmul.f32 %v5994_v58, %v6831_v23 }
 0x308   : > { %6005 = vtanh.f32 %v5228_v56  ;;  %v5996_v62 = vpop.eup %5995  ;;  %v3841_v1 = vpop.f32.mrb[57].mxu0  ;;  %v5231_v4 = vadd.f32 %v3135_v0, %v6795_v37 }
 0x309   : > { %v5998_v3 = vpop.eup %5997  ;;  %v3137_v5 = vpop.f32.mrb[58].mxu1  ;;  %v4208_v7 = vmul.f32 %v5996_v62, %v6827_v21  ;;  %v5230_v8 = vadd.f32 %v5229_v63, %v3839_v60  ;;  %v4358_v12 = vadd.f32 %v4207_v2, %v4206_v61 }
 0x30a   : > { %v3843_v6 = vpop.f32.mrb[58].mxu0  ;;  %v5233_v9 = vadd.f32 %v3137_v5, %v6791_v36  ;;  %v3139_v10 = vpop.f32.mrb[59].mxu1  ;;  %v4209_v13 = vmul.f32 %v5998_v3, %v6831_v23  ;;  %v5232_v14 = vadd.f32 %v5231_v4, %v3841_v1 }
 0x30b   : > { %v3845_v11 = vpop.f32.mrb[59].mxu0  ;;  %v5235_v15 = vadd.f32 %v3139_v10, %v6795_v37  ;;  %6007 = vtanh.f32 %v5230_v8  ;;  %4359 = vadd.xlane.f32.xlu0 %v4358_v12 }
 0x30c   : > { %v5234_v16 = vadd.f32 %v5233_v9, %v3843_v6  ;;  %v4361_v17 = vadd.f32 %v4209_v13, %v4208_v7  ;;  %6009 = vtanh.f32 %v5232_v14 }
 0x30d   : > { %v5236_v18 = vadd.f32 %v5235_v15, %v3845_v11  ;;  %v6000_v19 = vpop.eup %5999 }
 0x30e   : > { %6011 = vtanh.f32 %v5234_v16  ;;  %4362 = vadd.xlane.f32.xlu1 %v4361_v17  ;;  %v3143_v22 = vpop.f32.mrb[60].mxu1  ;;  %v4210_v26 = vmul.f32 %v6000_v19, %v6827_v21 }
 0x30f   : > { %v6002_v20 = vpop.eup %6001  ;;  %6013 = vtanh.f32 %v5236_v18  ;;  %v3849_v25 = vpop.f32.mrb[60].mxu0  ;;  %v5237_v28 = vadd.f32 %v3143_v22, %v6791_v36 }
 0x310   : > { %v6004_v27 = vpop.eup %6003  ;;  %v3145_v29 = vpop.f32.mrb[61].mxu1  ;;  %v4211_v31 = vmul.f32 %v6002_v20, %v6831_v23 }
 0x311   : > { %v3851_v30 = vpop.f32.mrb[61].mxu0  ;;  %v5239_v24 = vadd.f32 %v3145_v29, %v6795_v37  ;;  %v3147_v33 = vpop.f32.mrb[62].mxu1  ;;  %v4212_v35 = vmul.f32 %v6004_v27, %v6827_v21  ;;  %v5238_v38 = vadd.f32 %v5237_v28, %v3849_v25 }
 0x312   : > { %v6006_v32 = vpop.eup %6005  ;;  %v3853_v34 = vpop.f32.mrb[62].mxu0  ;;  %v5241_v39 = vadd.f32 %v3147_v33, %v6791_v36  ;;  %v4364_v42 = vadd.f32 %v4211_v31, %v4210_v26 }
 0x313   : > { %v3149_v40 = vpop.f32.mrb[63].mxu1  ;;  %v3855_v41 = vpop.f32.mrb[63].mxu0  ;;  %v4213_v43 = vmul.f32 %v6006_v32, %v6831_v23  ;;  %v5240_v44 = vadd.f32 %v5239_v24, %v3851_v30  ;;  %6015 = vtanh.f32 %v5238_v38 }
 0x314   : > { %v5243_v45 = vadd.f32 %v3149_v40, %v6795_v37  ;;  %v5242_v46 = vadd.f32 %v5241_v39, %v3853_v34  ;;  %4365 = vadd.xlane.f32.xlu0 %v4364_v42 }
 0x315   : > { %v4367_v47 = vadd.f32 %v4213_v43, %v4212_v35  ;;  %6017 = vtanh.f32 %v5240_v44  ;;  %v6008_v49 = vpop.eup %6007 }
 0x316   : > { %v5244_v48 = vadd.f32 %v5243_v45, %v3855_v41  ;;  %6019 = vtanh.f32 %v5242_v46  ;;  %v6010_v50 = vpop.eup %6009  ;;  %v3153_v51 = vpop.f32.mrb[64].mxu1  ;;  %v4214_v53 = vmul.f32 %v6008_v49, %v6827_v21 }
 0x317   : > { %4368 = vadd.xlane.f32.xlu1 %v4367_v47  ;;  %v3859_v52 = vpop.f32.mrb[64].mxu0  ;;  %v5245_v55 = vadd.f32 %v3153_v51, %v6791_v36  ;;  %v3155_v56 = vpop.f32.mrb[65].mxu1  ;;  %v4215_v58 = vmul.f32 %v6010_v50, %v6831_v23 }
 0x318   : > { %6021 = vtanh.f32 %v5244_v48  ;;  %v6012_v54 = vpop.eup %6011  ;;  %v3861_v57 = vpop.f32.mrb[65].mxu0  ;;  %v5247_v60 = vadd.f32 %v3155_v56, %v6795_v37 }
 0x319   : > { %v6014_v59 = vpop.eup %6013  ;;  %v3157_v61 = vpop.f32.mrb[66].mxu1  ;;  %v4216_v63 = vmul.f32 %v6012_v54, %v6827_v21  ;;  %v5246_v0 = vadd.f32 %v5245_v55, %v3859_v52  ;;  %v4370_v4 = vadd.f32 %v4215_v58, %v4214_v53 }
 0x31a   : > { %v3863_v62 = vpop.f32.mrb[66].mxu0  ;;  %v5249_v1 = vadd.f32 %v3157_v61, %v6791_v36  ;;  %v3159_v2 = vpop.f32.mrb[67].mxu1  ;;  %v4217_v5 = vmul.f32 %v6014_v59, %v6831_v23  ;;  %v5248_v6 = vadd.f32 %v5247_v60, %v3861_v57 }
 0x31b   : > { %v3865_v3 = vpop.f32.mrb[67].mxu0  ;;  %v5251_v7 = vadd.f32 %v3159_v2, %v6795_v37  ;;  %6023 = vtanh.f32 %v5246_v0  ;;  %4371 = vadd.xlane.f32.xlu0 %v4370_v4 }
 0x31c   : > { %v5250_v8 = vadd.f32 %v5249_v1, %v3863_v62  ;;  %v4373_v9 = vadd.f32 %v4217_v5, %v4216_v63  ;;  %6025 = vtanh.f32 %v5248_v6 }
 0x31d   : > { %v5252_v10 = vadd.f32 %v5251_v7, %v3865_v3  ;;  %v6016_v11 = vpop.eup %6015 }
 0x31e   : > { %6027 = vtanh.f32 %v5250_v8  ;;  %4374 = vadd.xlane.f32.xlu1 %v4373_v9  ;;  %v3163_v13 = vpop.f32.mrb[68].mxu1  ;;  %v4218_v15 = vmul.f32 %v6016_v11, %v6827_v21 }
 0x31f   : > { %v6018_v12 = vpop.eup %6017  ;;  %6029 = vtanh.f32 %v5252_v10  ;;  %v3869_v14 = vpop.f32.mrb[68].mxu0  ;;  %v5253_v17 = vadd.f32 %v3163_v13, %v6791_v36 }
 0x320   : > { %v6020_v16 = vpop.eup %6019  ;;  %v3165_v18 = vpop.f32.mrb[69].mxu1  ;;  %v4219_v20 = vmul.f32 %v6018_v12, %v6831_v23 }
 0x321   : > { %v3871_v19 = vpop.f32.mrb[69].mxu0  ;;  %v5255_v25 = vadd.f32 %v3165_v18, %v6795_v37  ;;  %v3167_v26 = vpop.f32.mrb[70].mxu1  ;;  %v4220_v28 = vmul.f32 %v6020_v16, %v6827_v21  ;;  %v5254_v29 = vadd.f32 %v5253_v17, %v3869_v14 }
 0x322   : > { %v6022_v22 = vpop.eup %6021  ;;  %v3873_v27 = vpop.f32.mrb[70].mxu0  ;;  %v5257_v30 = vadd.f32 %v3167_v26, %v6791_v36  ;;  %v4376_v24 = vadd.f32 %v4219_v20, %v4218_v15 }
 0x323   : > { %v3169_v31 = vpop.f32.mrb[71].mxu1  ;;  %v3875_v32 = vpop.f32.mrb[71].mxu0  ;;  %v4221_v33 = vmul.f32 %v6022_v22, %v6831_v23  ;;  %v5256_v34 = vadd.f32 %v5255_v25, %v3871_v19  ;;  %6031 = vtanh.f32 %v5254_v29 }
 0x324   : > { %v5259_v35 = vadd.f32 %v3169_v31, %v6795_v37  ;;  %v5258_v38 = vadd.f32 %v5257_v30, %v3873_v27  ;;  %4377 = vadd.xlane.f32.xlu0 %v4376_v24 }
 0x325   : > { %v4379_v39 = vadd.f32 %v4221_v33, %v4220_v28  ;;  %6033 = vtanh.f32 %v5256_v34  ;;  %v6024_v41 = vpop.eup %6023 }
 0x326   : > { %v5260_v40 = vadd.f32 %v5259_v35, %v3875_v32  ;;  %6035 = vtanh.f32 %v5258_v38  ;;  %v6026_v42 = vpop.eup %6025  ;;  %v3173_v43 = vpop.f32.mrb[72].mxu1  ;;  %v4222_v45 = vmul.f32 %v6024_v41, %v6827_v21 }
 0x327   : > { %4380 = vadd.xlane.f32.xlu1 %v4379_v39  ;;  %v3879_v44 = vpop.f32.mrb[72].mxu0  ;;  %v5261_v47 = vadd.f32 %v3173_v43, %v6791_v36  ;;  %v3175_v48 = vpop.f32.mrb[73].mxu1  ;;  %v4223_v50 = vmul.f32 %v6026_v42, %v6831_v23  ;;  %v7034_v42 = vld [vmem:[#allocation2] ss:$0 sm:$0xff] }
 0x328   : > { %6037 = vtanh.f32 %v5260_v40  ;;  %v6028_v46 = vpop.eup %6027  ;;  %v3881_v49 = vpop.f32.mrb[73].mxu0  ;;  %v5263_v52 = vadd.f32 %v3175_v48, %v6795_v37 }
 0x329   : > { %v6030_v51 = vpop.eup %6029  ;;  %v3177_v53 = vpop.f32.mrb[74].mxu1  ;;  %v4224_v55 = vmul.f32 %v6028_v46, %v6827_v21  ;;  %v5262_v56 = vadd.f32 %v5261_v47, %v3879_v44  ;;  %v4382_v60 = vadd.f32 %v4223_v50, %v4222_v45 }
 0x32a   : > { %v3883_v54 = vpop.f32.mrb[74].mxu0  ;;  %v5265_v57 = vadd.f32 %v3177_v53, %v6791_v36  ;;  %v3179_v58 = vpop.f32.mrb[75].mxu1  ;;  %v4225_v61 = vmul.f32 %v6030_v51, %v6831_v23  ;;  %v5264_v62 = vadd.f32 %v5263_v52, %v3881_v49 }
 0x32b   : > { %v3885_v59 = vpop.f32.mrb[75].mxu0  ;;  %v5267_v63 = vadd.f32 %v3179_v58, %v6795_v37  ;;  %6039 = vtanh.f32 %v5262_v56  ;;  %4383 = vadd.xlane.f32.xlu0 %v4382_v60 }
 0x32c   : > { %v5266_v0 = vadd.f32 %v5265_v57, %v3883_v54  ;;  %v4385_v1 = vadd.f32 %v4225_v61, %v4224_v55  ;;  %6041 = vtanh.f32 %v5264_v62 }
 0x32d   : > { %v5268_v2 = vadd.f32 %v5267_v63, %v3885_v59  ;;  %v6032_v3 = vpop.eup %6031 }
 0x32e   : > { %6043 = vtanh.f32 %v5266_v0  ;;  %4386 = vadd.xlane.f32.xlu1 %v4385_v1  ;;  %v3183_v5 = vpop.f32.mrb[76].mxu1  ;;  %v4226_v7 = vmul.f32 %v6032_v3, %v6827_v21 }
 0x32f   : > { %v6034_v4 = vpop.eup %6033  ;;  %6045 = vtanh.f32 %v5268_v2  ;;  %v3889_v6 = vpop.f32.mrb[76].mxu0  ;;  %v5269_v9 = vadd.f32 %v3183_v5, %v6791_v36 }
 0x330   : > { %v6036_v8 = vpop.eup %6035  ;;  %v3185_v10 = vpop.f32.mrb[77].mxu1  ;;  %v4227_v12 = vmul.f32 %v6034_v4, %v6831_v23 }
 0x331   : > { %v3891_v11 = vpop.f32.mrb[77].mxu0  ;;  %v5271_v14 = vadd.f32 %v3185_v10, %v6795_v37  ;;  %v3187_v15 = vpop.f32.mrb[78].mxu1  ;;  %v4228_v17 = vmul.f32 %v6036_v8, %v6827_v21  ;;  %v5270_v18 = vadd.f32 %v5269_v9, %v3889_v6 }
 0x332   : > { %v6038_v13 = vpop.eup %6037  ;;  %v3893_v16 = vpop.f32.mrb[78].mxu0  ;;  %v5273_v19 = vadd.f32 %v3187_v15, %v6791_v36  ;;  %v4388_v25 = vadd.f32 %v4227_v12, %v4226_v7 }
 0x333   : > { %v3189_v20 = vpop.f32.mrb[79].mxu1  ;;  %v3895_v22 = vpop.f32.mrb[79].mxu0  ;;  %v4229_v26 = vmul.f32 %v6038_v13, %v6831_v23  ;;  %v5272_v27 = vadd.f32 %v5271_v14, %v3891_v11  ;;  %6047 = vtanh.f32 %v5270_v18 }
 0x334   : > { %v5275_v28 = vadd.f32 %v3189_v20, %v6795_v37  ;;  %v5274_v29 = vadd.f32 %v5273_v19, %v3893_v16  ;;  %4389 = vadd.xlane.f32.xlu0 %v4388_v25 }
 0x335   : > { %v4391_v30 = vadd.f32 %v4229_v26, %v4228_v17  ;;  %6049 = vtanh.f32 %v5272_v27  ;;  %v6040_v32 = vpop.eup %6039 }
 0x336   : > { %v5276_v31 = vadd.f32 %v5275_v28, %v3895_v22  ;;  %6051 = vtanh.f32 %v5274_v29  ;;  %v6042_v24 = vpop.eup %6041  ;;  %v3193_v33 = vpop.f32.mrb[80].mxu1  ;;  %v4230_v35 = vmul.f32 %v6040_v32, %v6827_v21 }
 0x337   : > { %4392 = vadd.xlane.f32.xlu1 %v4391_v30  ;;  %v3899_v34 = vpop.f32.mrb[80].mxu0  ;;  %v5277_v39 = vadd.f32 %v3193_v33, %v6791_v36  ;;  %v3195_v40 = vpop.f32.mrb[81].mxu1  ;;  %v4231_v43 = vmul.f32 %v6042_v24, %v6831_v23 }
 0x338   : > { %6053 = vtanh.f32 %v5276_v31  ;;  %v6044_v38 = vpop.eup %6043  ;;  %v3901_v41 = vpop.f32.mrb[81].mxu0  ;;  %v5279_v45 = vadd.f32 %v3195_v40, %v6795_v37 }
 0x339   : > { %v6046_v44 = vpop.eup %6045  ;;  %v3903_v46 = vpop.f32.mrb[82].mxu0  ;;  %v4232_v48 = vmul.f32 %v6044_v38, %v6827_v21  ;;  %v5278_v49 = vadd.f32 %v5277_v39, %v3899_v34  ;;  %v4394_v53 = vadd.f32 %v4231_v43, %v4230_v35 }
 0x33a   : > { %v3197_v47 = vpop.f32.mrb[82].mxu1  ;;  %v4288_v50 = vpop.xlane.xlu0 %4287  ;;  %v4233_v54 = vmul.f32 %v6046_v44, %v6831_v23  ;;  %v5280_v55 = vadd.f32 %v5279_v45, %v3901_v41 }
 0x33b   : > { %v5281_v51 = vadd.f32 %v3197_v47, %v6791_v36  ;;  %v3199_v52 = vpop.f32.mrb[83].mxu1  ;;  %v4485_v56 = vadd.f32 %v7034_v42, %v4288_v50  ;;  %v3905_v58 = vpop.f32.mrb[83].mxu0  ;;  %6055 = vtanh.f32 %v5278_v49  ;;  %4395 = vadd.xlane.f32.xlu0 %v4394_v53 }
 0x33c   : > { %v5283_v57 = vadd.f32 %v3199_v52, %v6795_v37  ;;  %v4397_v60 = vadd.f32 %v4233_v54, %v4232_v48  ;;  %6057 = vtanh.f32 %v5280_v55 }
 0x33d   : > { %v5282_v59 = vadd.f32 %v5281_v51, %v3903_v46  ;;  %4550 = vst.msk [vmem:[%s7042_s26] sm:$0xff] %vm4549_vm0, %v4485_v56  ;;  %v6048_v62 = vpop.eup %6047 }
 0x33e   : > { %v5284_v61 = vadd.f32 %v5283_v57, %v3905_v58  ;;  %v4291_v63 = vpop.xlane.xlu0 %4290  ;;  %4398 = vadd.xlane.f32.xlu1 %v4397_v60  ;;  %v3203_v2 = vpop.f32.mrb[84].mxu1  ;;  %v4234_v4 = vmul.f32 %v6048_v62, %v6827_v21 }
 0x33f   : > { %6059 = vtanh.f32 %v5282_v59  ;;  %v6050_v0 = vpop.eup %6049  ;;  %v4486_v1 = vadd.f32 %v7034_v42, %v4291_v63  ;;  %v3909_v3 = vpop.f32.mrb[84].mxu0  ;;  %v5285_v6 = vadd.f32 %v3203_v2, %v6791_v36 }
 0x340   : > { %6061 = vtanh.f32 %v5284_v61  ;;  %v6052_v5 = vpop.eup %6051  ;;  %v3205_v7 = vpop.f32.mrb[85].mxu1  ;;  %v4235_v9 = vmul.f32 %v6050_v0, %v6831_v23 }
 0x341   : > { %v3911_v8 = vpop.f32.mrb[85].mxu0  ;;  %4551 = vst.msk [vmem:[%s7042_s26 + $0x8] sm:$0xff] %vm4549_vm0, %v4486_v1  ;;  %v5287_v11 = vadd.f32 %v3205_v7, %v6795_v37  ;;  %v3207_v13 = vpop.f32.mrb[86].mxu1  ;;  %v4236_v14 = vmul.f32 %v6052_v5, %v6827_v21  ;;  %v5286_v15 = vadd.f32 %v5285_v6, %v3909_v3 }
 0x342   : > { %v6054_v10 = vpop.eup %6053  ;;  %v3913_v12 = vpop.f32.mrb[86].mxu0  ;;  %v5289_v17 = vadd.f32 %v3207_v13, %v6791_v36  ;;  %v4400_v19 = vadd.f32 %v4235_v9, %v4234_v4 }
 0x343   : > { %v4294_v16 = vpop.xlane.xlu1 %4293  ;;  %v3209_v18 = vpop.f32.mrb[87].mxu1  ;;  %v4237_v20 = vmul.f32 %v6054_v10, %v6831_v23  ;;  %v5288_v22 = vadd.f32 %v5287_v11, %v3911_v8  ;;  %6063 = vtanh.f32 %v5286_v15 }
 0x344   : > { %v4487_v25 = vadd.f32 %v7034_v42, %v4294_v16  ;;  %v5291_v26 = vadd.f32 %v3209_v18, %v6795_v37  ;;  %v3915_v27 = vpop.f32.mrb[87].mxu0  ;;  %v5290_v28 = vadd.f32 %v5289_v17, %v3913_v12  ;;  %4401 = vadd.xlane.f32.xlu0 %v4400_v19 }
 0x345   : > { %v4403_v29 = vadd.f32 %v4237_v20, %v4236_v14  ;;  %6065 = vtanh.f32 %v5288_v22  ;;  %v6056_v31 = vpop.eup %6055 }
 0x346   : > { %4552 = vst.msk [vmem:[%s7042_s26 + $0x10] sm:$0xff] %vm4549_vm0, %v4487_v25  ;;  %v5292_v30 = vadd.f32 %v5291_v26, %v3915_v27  ;;  %6067 = vtanh.f32 %v5290_v28  ;;  %v6058_v24 = vpop.eup %6057  ;;  %v3213_v34 = vpop.f32.mrb[88].mxu1  ;;  %v4238_v38 = vmul.f32 %v6056_v31, %v6827_v21 }
 0x347   : > { %v4297_v32 = vpop.xlane.xlu1 %4296  ;;  %4404 = vadd.xlane.f32.xlu1 %v4403_v29  ;;  %v3919_v35 = vpop.f32.mrb[88].mxu0  ;;  %v5293_v40 = vadd.f32 %v3213_v34, %v6791_v36  ;;  %v4239_v44 = vmul.f32 %v6058_v24, %v6831_v23 }
 0x348   : > { %6069 = vtanh.f32 %v5292_v30  ;;  %v4488_v33 = vadd.f32 %v7034_v42, %v4297_v32  ;;  %v3215_v41 = vpop.f32.mrb[89].mxu1  ;;  %v3921_v43 = vpop.f32.mrb[89].mxu0 }
 0x349   : > { %v6060_v39 = vpop.eup %6059  ;;  %v5295_v46 = vadd.f32 %v3215_v41, %v6795_v37  ;;  %v3923_v47 = vpop.f32.mrb[90].mxu0  ;;  %v5294_v50 = vadd.f32 %v5293_v40, %v3919_v35  ;;  %v4406_v54 = vadd.f32 %v4239_v44, %v4238_v38 }
 0x34a   : > { %v6062_v45 = vpop.eup %6061  ;;  %4553 = vst.msk [vmem:[%s7042_s26 + $0x18] sm:$0xff] %vm4549_vm0, %v4488_v33  ;;  %v3217_v48 = vpop.f32.mrb[90].mxu1  ;;  %v4240_v49 = vmul.f32 %v6060_v39, %v6827_v21 }
 0x34b   : > { %v4300_v51 = vpop.xlane.xlu0 %4299  ;;  %v5297_v52 = vadd.f32 %v3217_v48, %v6791_v36  ;;  %v3219_v53 = vpop.f32.mrb[91].mxu1  ;;  %v4241_v55 = vmul.f32 %v6062_v45, %v6831_v23  ;;  %v5296_v56 = vadd.f32 %v5295_v46, %v3921_v43  ;;  %6071 = vtanh.f32 %v5294_v50  ;;  %4407 = vadd.xlane.f32.xlu0 %v4406_v54 }
 0x34c   : > { %v4489_v57 = vadd.f32 %v7034_v42, %v4300_v51  ;;  %v5299_v58 = vadd.f32 %v3219_v53, %v6795_v37  ;;  %v3925_v59 = vpop.f32.mrb[91].mxu0  ;;  %v4303_v60 = vpop.xlane.xlu1 %4302 }
 0x34d   : > { %v5298_v61 = vadd.f32 %v5297_v52, %v3923_v47  ;;  %v4490_v62 = vadd.f32 %v7034_v42, %v4303_v60  ;;  %v4409_v63 = vadd.f32 %v4241_v55, %v4240_v49  ;;  %6073 = vtanh.f32 %v5296_v56  ;;  %v6064_v1 = vpop.eup %6063 }
 0x34e   : > { %4554 = vst.msk [vmem:[%s7042_s26 + $0x20] sm:$0xff] %vm4549_vm0, %v4489_v57  ;;  %v5300_v0 = vadd.f32 %v5299_v58, %v3925_v59  ;;  %v3223_v3 = vpop.f32.mrb[92].mxu1  ;;  %v4242_v5 = vmul.f32 %v6064_v1, %v6827_v21 }
 0x34f   : > { %6075 = vtanh.f32 %v5298_v61  ;;  %4555 = vst.msk [vmem:[%s7042_s26 + $0x28] sm:$0xff] %vm4549_vm0, %v4490_v62  ;;  %4410 = vadd.xlane.f32.xlu1 %v4409_v63  ;;  %v6066_v2 = vpop.eup %6065  ;;  %v3929_v4 = vpop.f32.mrb[92].mxu0  ;;  %v5301_v7 = vadd.f32 %v3223_v3, %v6791_v36 }
 0x350   : > { %6077 = vtanh.f32 %v5300_v0  ;;  %v6068_v6 = vpop.eup %6067  ;;  %v3225_v8 = vpop.f32.mrb[93].mxu1  ;;  %v4243_v10 = vmul.f32 %v6066_v2, %v6831_v23 }
 0x351   : > { %v3931_v9 = vpop.f32.mrb[93].mxu0  ;;  %v5303_v12 = vadd.f32 %v3225_v8, %v6795_v37  ;;  %v4306_v14 = vpop.xlane.xlu0 %4305  ;;  %v4244_v15 = vmul.f32 %v6068_v6, %v6827_v21  ;;  %v5302_v16 = vadd.f32 %v5301_v7, %v3929_v4 }
 0x352   : > { %v6070_v11 = vpop.eup %6069  ;;  %v3933_v13 = vpop.f32.mrb[94].mxu0  ;;  %v4491_v17 = vadd.f32 %v7034_v42, %v4306_v14  ;;  %v4412_v20 = vadd.f32 %v4243_v10, %v4242_v5 }
 0x353   : > { %v3227_v18 = vpop.f32.mrb[94].mxu1  ;;  %v3935_v19 = vpop.f32.mrb[95].mxu0  ;;  %v4245_v22 = vmul.f32 %v6070_v11, %v6831_v23  ;;  %v5304_v25 = vadd.f32 %v5303_v12, %v3931_v9  ;;  %6079 = vtanh.f32 %v5302_v16 }
 0x354   : > { %v5305_v26 = vadd.f32 %v3227_v18, %v6791_v36  ;;  %v3229_v27 = vpop.f32.mrb[95].mxu1  ;;  %v4309_v28 = vpop.xlane.xlu1 %4308  ;;  %4556 = vst.msk [vmem:[%s7042_s26 + $0x30] sm:$0xff] %vm4549_vm0, %v4491_v17  ;;  %4413 = vadd.xlane.f32.xlu0 %v4412_v20 }
 0x355   : > { %v5307_v29 = vadd.f32 %v3229_v27, %v6795_v37  ;;  %v4492_v30 = vadd.f32 %v7034_v42, %v4309_v28  ;;  %v4415_v31 = vadd.f32 %v4245_v22, %v4244_v15  ;;  %6081 = vtanh.f32 %v5304_v25  ;;  %v6072_v24 = vpop.eup %6071 }
 0x356   : > { %v5306_v32 = vadd.f32 %v5305_v26, %v3933_v13  ;;  %v3233_v35 = vpop.f32.mrb[96].mxu1  ;;  %v4246_v39 = vmul.f32 %v6072_v24, %v6827_v21 }
 0x357   : > { %v5308_v33 = vadd.f32 %v5307_v29, %v3935_v19  ;;  %4557 = vst.msk [vmem:[%s7042_s26 + $0x38] sm:$0xff] %vm4549_vm0, %v4492_v30  ;;  %4416 = vadd.xlane.f32.xlu1 %v4415_v31  ;;  %v6074_v34 = vpop.eup %6073  ;;  %v3939_v38 = vpop.f32.mrb[96].mxu0  ;;  %v5309_v41 = vadd.f32 %v3233_v35, %v6791_v36 }
 0x358   : > { %6083 = vtanh.f32 %v5306_v32  ;;  %v3235_v43 = vpop.f32.mrb[97].mxu1  ;;  %v3941_v44 = vpop.f32.mrb[97].mxu0  ;;  %v4247_v45 = vmul.f32 %v6074_v34, %v6831_v23 }
 0x359   : > { %v6076_v40 = vpop.eup %6075  ;;  %6085 = vtanh.f32 %v5308_v33  ;;  %v5311_v47 = vadd.f32 %v3235_v43, %v6795_v37  ;;  %v3943_v48 = vpop.f32.mrb[98].mxu0  ;;  %v5310_v51 = vadd.f32 %v5309_v41, %v3939_v38 }
 0x35a   : > { %v6078_v46 = vpop.eup %6077  ;;  %v4312_v49 = vpop.xlane.xlu0 %4311  ;;  %v4248_v50 = vmul.f32 %v6076_v40, %v6827_v21  ;;  %v4418_v55 = vadd.f32 %v4247_v45, %v4246_v39 }
 0x35b   : > { %v4493_v52 = vadd.f32 %v7034_v42, %v4312_v49  ;;  %v3237_v53 = vpop.f32.mrb[98].mxu1  ;;  %v3945_v54 = vpop.f32.mrb[99].mxu0  ;;  %v4249_v56 = vmul.f32 %v6078_v46, %v6831_v23  ;;  %v5312_v57 = vadd.f32 %v5311_v47, %v3941_v44  ;;  %6087 = vtanh.f32 %v5310_v51 }
 0x35c   : > { %v5313_v58 = vadd.f32 %v3237_v53, %v6791_v36  ;;  %v3239_v59 = vpop.f32.mrb[99].mxu1  ;;  %v4315_v60 = vpop.xlane.xlu1 %4314  ;;  %4419 = vadd.xlane.f32.xlu0 %v4418_v55 }
 0x35d   : > { %4558 = vst.msk [vmem:[%s7042_s26 + $0x40] sm:$0xff] %vm4549_vm0, %v4493_v52  ;;  %v5315_v61 = vadd.f32 %v3239_v59, %v6795_v37  ;;  %v4494_v62 = vadd.f32 %v7034_v42, %v4315_v60  ;;  %v4421_v63 = vadd.f32 %v4249_v56, %v4248_v50  ;;  %6089 = vtanh.f32 %v5312_v57  ;;  %v6080_v1 = vpop.eup %6079 }
 0x35e   : > { %v5314_v0 = vadd.f32 %v5313_v58, %v3943_v48  ;;  %v3243_v4 = vpop.f32.mrb[100].mxu1  ;;  %v4250_v6 = vmul.f32 %v6080_v1, %v6827_v21 }
 0x35f   : > { %v5316_v2 = vadd.f32 %v5315_v61, %v3945_v54  ;;  %4559 = vst.msk [vmem:[%s7042_s26 + $0x48] sm:$0xff] %vm4549_vm0, %v4494_v62  ;;  %4422 = vadd.xlane.f32.xlu1 %v4421_v63  ;;  %v6082_v3 = vpop.eup %6081  ;;  %v3949_v5 = vpop.f32.mrb[100].mxu0  ;;  %v5317_v7 = vadd.f32 %v3243_v4, %v6791_v36 }
 0x360   : > { %6091 = vtanh.f32 %v5314_v0  ;;  %v3245_v8 = vpop.f32.mrb[101].mxu1  ;;  %v3951_v9 = vpop.f32.mrb[101].mxu0  ;;  %v4251_v10 = vmul.f32 %v6082_v3, %v6831_v23 }
 0x361   : > { %6093 = vtanh.f32 %v5316_v2  ;;  %v5319_v12 = vadd.f32 %v3245_v8, %v6795_v37  ;;  %v3953_v13 = vpop.f32.mrb[102].mxu0  ;;  %v4318_v14 = vpop.xlane.xlu0 %4317  ;;  %v5318_v16 = vadd.f32 %v5317_v7, %v3949_v5 }
 0x362   : > { %v6084_v11 = vpop.eup %6083  ;;  %v4495_v17 = vadd.f32 %v7034_v42, %v4318_v14  ;;  %v3247_v18 = vpop.f32.mrb[102].mxu1  ;;  %v4424_v20 = vadd.f32 %v4251_v10, %v4250_v6 }
 0x363   : > { %v6086_v15 = vpop.eup %6085  ;;  %v3955_v19 = vpop.f32.mrb[103].mxu0  ;;  %v4252_v22 = vmul.f32 %v6084_v11, %v6827_v21  ;;  %v5320_v25 = vadd.f32 %v5319_v12, %v3951_v9  ;;  %v5321_v26 = vadd.f32 %v3247_v18, %v6791_v36  ;;  %6095 = vtanh.f32 %v5318_v16 }
 0x364   : > { %v3249_v27 = vpop.f32.mrb[103].mxu1  ;;  %v4321_v28 = vpop.xlane.xlu1 %4320  ;;  %v4253_v29 = vmul.f32 %v6086_v15, %v6831_v23  ;;  %4560 = vst.msk [vmem:[%s7042_s26 + $0x50] sm:$0xff] %vm4549_vm0, %v4495_v17  ;;  %4425 = vadd.xlane.f32.xlu0 %v4424_v20 }
 0x365   : > { %v5323_v30 = vadd.f32 %v3249_v27, %v6795_v37  ;;  %v4496_v31 = vadd.f32 %v7034_v42, %v4321_v28  ;;  %6097 = vtanh.f32 %v5320_v25  ;;  %v5322_v32 = vadd.f32 %v5321_v26, %v3953_v13  ;;  %v6088_v33 = vpop.eup %6087 }
 0x366   : > { %v4427_v24 = vadd.f32 %v4253_v29, %v4252_v22  ;;  %v3253_v38 = vpop.f32.mrb[104].mxu1  ;;  %v4254_v40 = vmul.f32 %v6088_v33, %v6827_v21 }
 0x367   : > { %v5324_v34 = vadd.f32 %v5323_v30, %v3955_v19  ;;  %4561 = vst.msk [vmem:[%s7042_s26 + $0x58] sm:$0xff] %vm4549_vm0, %v4496_v31  ;;  %v6090_v35 = vpop.eup %6089  ;;  %6099 = vtanh.f32 %v5322_v32  ;;  %v3959_v39 = vpop.f32.mrb[104].mxu0  ;;  %v5325_v41 = vadd.f32 %v3253_v38, %v6791_v36 }
 0x368   : > { %4428 = vadd.xlane.f32.xlu1 %v4427_v24  ;;  %v3255_v43 = vpop.f32.mrb[105].mxu1  ;;  %v3961_v44 = vpop.f32.mrb[105].mxu0  ;;  %v4255_v45 = vmul.f32 %v6090_v35, %v6831_v23 }
 0x369   : > { %6101 = vtanh.f32 %v5324_v34  ;;  %v5327_v47 = vadd.f32 %v3255_v43, %v6795_v37  ;;  %v3963_v48 = vpop.f32.mrb[106].mxu0  ;;  %v4324_v49 = vpop.xlane.xlu0 %4323  ;;  %v5326_v51 = vadd.f32 %v5325_v41, %v3959_v39 }
 0x36a   : > { %v6092_v46 = vpop.eup %6091  ;;  %v4497_v52 = vadd.f32 %v7034_v42, %v4324_v49  ;;  %v3257_v53 = vpop.f32.mrb[106].mxu1  ;;  %v4430_v55 = vadd.f32 %v4255_v45, %v4254_v40 }
 0x36b   : > { %v6094_v50 = vpop.eup %6093  ;;  %v3965_v54 = vpop.f32.mrb[107].mxu0  ;;  %v4256_v56 = vmul.f32 %v6092_v46, %v6827_v21  ;;  %v5328_v57 = vadd.f32 %v5327_v47, %v3961_v44  ;;  %v5329_v58 = vadd.f32 %v3257_v53, %v6791_v36  ;;  %6103 = vtanh.f32 %v5326_v51 }
 0x36c   : > { %v3259_v59 = vpop.f32.mrb[107].mxu1  ;;  %v4327_v60 = vpop.xlane.xlu1 %4326  ;;  %v4257_v61 = vmul.f32 %v6094_v50, %v6831_v23  ;;  %4562 = vst.msk [vmem:[%s7042_s26 + $0x60] sm:$0xff] %vm4549_vm0, %v4497_v52  ;;  %4431 = vadd.xlane.f32.xlu0 %v4430_v55 }
 0x36d   : > { %v5331_v62 = vadd.f32 %v3259_v59, %v6795_v37  ;;  %v4498_v63 = vadd.f32 %v7034_v42, %v4327_v60  ;;  %6105 = vtanh.f32 %v5328_v57  ;;  %v5330_v0 = vadd.f32 %v5329_v58, %v3963_v48  ;;  %v6096_v2 = vpop.eup %6095 }
 0x36e   : > { %v4433_v1 = vadd.f32 %v4257_v61, %v4256_v56  ;;  %v3263_v5 = vpop.f32.mrb[108].mxu1  ;;  %v4258_v7 = vmul.f32 %v6096_v2, %v6827_v21 }
 0x36f   : > { %v5332_v3 = vadd.f32 %v5331_v62, %v3965_v54  ;;  %4563 = vst.msk [vmem:[%s7042_s26 + $0x68] sm:$0xff] %vm4549_vm0, %v4498_v63  ;;  %v6098_v4 = vpop.eup %6097  ;;  %6107 = vtanh.f32 %v5330_v0  ;;  %v3969_v6 = vpop.f32.mrb[108].mxu0  ;;  %v5333_v8 = vadd.f32 %v3263_v5, %v6791_v36 }
 0x370   : > { %4434 = vadd.xlane.f32.xlu1 %v4433_v1  ;;  %v3265_v9 = vpop.f32.mrb[109].mxu1  ;;  %v3971_v10 = vpop.f32.mrb[109].mxu0  ;;  %v4259_v11 = vmul.f32 %v6098_v4, %v6831_v23 }
 0x371   : > { %6109 = vtanh.f32 %v5332_v3  ;;  %v6100_v12 = vpop.eup %6099  ;;  %v5335_v13 = vadd.f32 %v3265_v9, %v6795_v37  ;;  %v3973_v14 = vpop.f32.mrb[110].mxu0  ;;  %v5334_v17 = vadd.f32 %v5333_v8, %v3969_v6 }
 0x372   : > { %v4330_v15 = vpop.xlane.xlu0 %4329  ;;  %v3267_v19 = vpop.f32.mrb[110].mxu1  ;;  %v4436_v22 = vadd.f32 %v4259_v11, %v4258_v7  ;;  %v4260_v25 = vmul.f32 %v6100_v12, %v6827_v21 }
 0x373   : > { %v6102_v16 = vpop.eup %6101  ;;  %v4499_v18 = vadd.f32 %v7034_v42, %v4330_v15  ;;  %v3975_v20 = vpop.f32.mrb[111].mxu0  ;;  %v5336_v26 = vadd.f32 %v5335_v13, %v3971_v10  ;;  %v5337_v27 = vadd.f32 %v3267_v19, %v6791_v36  ;;  %6111 = vtanh.f32 %v5334_v17 }
 0x374   : > { %v3269_v28 = vpop.f32.mrb[111].mxu1  ;;  %v4333_v29 = vpop.xlane.xlu1 %4332  ;;  %v4261_v30 = vmul.f32 %v6102_v16, %v6831_v23  ;;  %4437 = vadd.xlane.f32.xlu0 %v4436_v22 }
 0x375   : > { %4564 = vst.msk [vmem:[%s7042_s26 + $0x70] sm:$0xff] %vm4549_vm0, %v4499_v18  ;;  %v5339_v31 = vadd.f32 %v3269_v28, %v6795_v37  ;;  %v4500_v32 = vadd.f32 %v7034_v42, %v4333_v29  ;;  %6113 = vtanh.f32 %v5336_v26  ;;  %v5338_v24 = vadd.f32 %v5337_v27, %v3973_v14  ;;  %v6104_v34 = vpop.eup %6103 }
 0x376   : > { %v4439_v33 = vadd.f32 %v4261_v30, %v4260_v25  ;;  %v3273_v39 = vpop.f32.mrb[112].mxu1  ;;  %v4262_v41 = vmul.f32 %v6104_v34, %v6827_v21 }
 0x377   : > { %v5340_v35 = vadd.f32 %v5339_v31, %v3975_v20  ;;  %4565 = vst.msk [vmem:[%s7042_s26 + $0x78] sm:$0xff] %vm4549_vm0, %v4500_v32  ;;  %v6106_v38 = vpop.eup %6105  ;;  %6115 = vtanh.f32 %v5338_v24  ;;  %v3979_v40 = vpop.f32.mrb[112].mxu0  ;;  %v5341_v43 = vadd.f32 %v3273_v39, %v6791_v36 }
 0x378   : > { %4440 = vadd.xlane.f32.xlu1 %v4439_v33  ;;  %v3275_v44 = vpop.f32.mrb[113].mxu1  ;;  %v3981_v45 = vpop.f32.mrb[113].mxu0  ;;  %v4263_v46 = vmul.f32 %v6106_v38, %v6831_v23 }
 0x379   : > { %6117 = vtanh.f32 %v5340_v35  ;;  %v6108_v47 = vpop.eup %6107  ;;  %v5343_v48 = vadd.f32 %v3275_v44, %v6795_v37  ;;  %v3983_v49 = vpop.f32.mrb[114].mxu0  ;;  %v5342_v52 = vadd.f32 %v5341_v43, %v3979_v40 }
 0x37a   : > { %v4336_v50 = vpop.xlane.xlu0 %4335  ;;  %v3277_v54 = vpop.f32.mrb[114].mxu1  ;;  %v4442_v56 = vadd.f32 %v4263_v46, %v4262_v41  ;;  %v4264_v57 = vmul.f32 %v6108_v47, %v6827_v21 }
 0x37b   : > { %v6110_v51 = vpop.eup %6109  ;;  %v4501_v53 = vadd.f32 %v7034_v42, %v4336_v50  ;;  %v3985_v55 = vpop.f32.mrb[115].mxu0  ;;  %v5344_v58 = vadd.f32 %v5343_v48, %v3981_v45  ;;  %v5345_v59 = vadd.f32 %v3277_v54, %v6791_v36  ;;  %6119 = vtanh.f32 %v5342_v52 }
 0x37c   : > { %v3279_v60 = vpop.f32.mrb[115].mxu1  ;;  %v4339_v61 = vpop.xlane.xlu1 %4338  ;;  %v4265_v62 = vmul.f32 %v6110_v51, %v6831_v23  ;;  %4443 = vadd.xlane.f32.xlu0 %v4442_v56 }
 0x37d   : > { %4566 = vst.msk [vmem:[%s7042_s26 + $0x80] sm:$0xff] %vm4549_vm0, %v4501_v53  ;;  %v5347_v63 = vadd.f32 %v3279_v60, %v6795_v37  ;;  %v4502_v0 = vadd.f32 %v7034_v42, %v4339_v61  ;;  %6121 = vtanh.f32 %v5344_v58  ;;  %v5346_v1 = vadd.f32 %v5345_v59, %v3983_v49  ;;  %v6112_v3 = vpop.eup %6111 }
 0x37e   : > { %v4445_v2 = vadd.f32 %v4265_v62, %v4264_v57  ;;  %v3283_v6 = vpop.f32.mrb[116].mxu1  ;;  %v4266_v8 = vmul.f32 %v6112_v3, %v6827_v21 }
 0x37f   : > { %v5348_v4 = vadd.f32 %v5347_v63, %v3985_v55  ;;  %4567 = vst.msk [vmem:[%s7042_s26 + $0x88] sm:$0xff] %vm4549_vm0, %v4502_v0  ;;  %v6114_v5 = vpop.eup %6113  ;;  %6123 = vtanh.f32 %v5346_v1  ;;  %v3989_v7 = vpop.f32.mrb[116].mxu0  ;;  %v5349_v9 = vadd.f32 %v3283_v6, %v6791_v36 }
 0x380   : > { %4446 = vadd.xlane.f32.xlu1 %v4445_v2  ;;  %v3285_v10 = vpop.f32.mrb[117].mxu1  ;;  %v3991_v11 = vpop.f32.mrb[117].mxu0  ;;  %v4267_v12 = vmul.f32 %v6114_v5, %v6831_v23 }
 0x381   : > { %6125 = vtanh.f32 %v5348_v4  ;;  %v6116_v13 = vpop.eup %6115  ;;  %v5351_v14 = vadd.f32 %v3285_v10, %v6795_v37  ;;  %v3993_v15 = vpop.f32.mrb[118].mxu0  ;;  %v5350_v18 = vadd.f32 %v5349_v9, %v3989_v7 }
 0x382   : > { %v4342_v16 = vpop.xlane.xlu0 %4341  ;;  %v3287_v20 = vpop.f32.mrb[118].mxu1  ;;  %v4448_v25 = vadd.f32 %v4267_v12, %v4266_v8  ;;  %v4268_v26 = vmul.f32 %v6116_v13, %v6827_v21 }
 0x383   : > { %v6118_v17 = vpop.eup %6117  ;;  %v4503_v19 = vadd.f32 %v7034_v42, %v4342_v16  ;;  %v3995_v22 = vpop.f32.mrb[119].mxu0  ;;  %v5352_v27 = vadd.f32 %v5351_v14, %v3991_v11  ;;  %v5353_v28 = vadd.f32 %v3287_v20, %v6791_v36  ;;  %6127 = vtanh.f32 %v5350_v18 }
 0x384   : > { %v3289_v29 = vpop.f32.mrb[119].mxu1  ;;  %v4345_v30 = vpop.xlane.xlu1 %4344  ;;  %v4269_v31 = vmul.f32 %v6118_v17, %v6831_v23  ;;  %4449 = vadd.xlane.f32.xlu0 %v4448_v25 }
 0x385   : > { %4568 = vst.msk [vmem:[%s7042_s26 + $0x90] sm:$0xff] %vm4549_vm0, %v4503_v19  ;;  %v5355_v32 = vadd.f32 %v3289_v29, %v6795_v37  ;;  %v4504_v24 = vadd.f32 %v7034_v42, %v4345_v30  ;;  %6129 = vtanh.f32 %v5352_v27  ;;  %v5354_v33 = vadd.f32 %v5353_v28, %v3993_v15  ;;  %v6120_v35 = vpop.eup %6119 }
 0x386   : > { %v4451_v34 = vadd.f32 %v4269_v31, %v4268_v26  ;;  %v3293_v40 = vpop.f32.mrb[120].mxu1  ;;  %v4270_v43 = vmul.f32 %v6120_v35, %v6827_v21 }
 0x387   : > { %v5356_v38 = vadd.f32 %v5355_v32, %v3995_v22  ;;  %4569 = vst.msk [vmem:[%s7042_s26 + $0x98] sm:$0xff] %vm4549_vm0, %v4504_v24  ;;  %v6122_v39 = vpop.eup %6121  ;;  %6131 = vtanh.f32 %v5354_v33  ;;  %v3999_v41 = vpop.f32.mrb[120].mxu0  ;;  %v5357_v44 = vadd.f32 %v3293_v40, %v6791_v36 }
 0x388   : > { %4452 = vadd.xlane.f32.xlu1 %v4451_v34  ;;  %v3295_v45 = vpop.f32.mrb[121].mxu1  ;;  %v4001_v46 = vpop.f32.mrb[121].mxu0  ;;  %v4271_v47 = vmul.f32 %v6122_v39, %v6831_v23 }
 0x389   : > { %6133 = vtanh.f32 %v5356_v38  ;;  %v6124_v48 = vpop.eup %6123  ;;  %v5359_v49 = vadd.f32 %v3295_v45, %v6795_v37  ;;  %v4003_v50 = vpop.f32.mrb[122].mxu0  ;;  %v5358_v53 = vadd.f32 %v5357_v44, %v3999_v41 }
 0x38a   : > { %v4348_v51 = vpop.xlane.xlu0 %4347  ;;  %v3297_v55 = vpop.f32.mrb[122].mxu1  ;;  %v4454_v57 = vadd.f32 %v4271_v47, %v4270_v43  ;;  %v4272_v58 = vmul.f32 %v6124_v48, %v6827_v21 }
 0x38b   : > { %v6126_v52 = vpop.eup %6125  ;;  %v4505_v54 = vadd.f32 %v7034_v42, %v4348_v51  ;;  %v4005_v56 = vpop.f32.mrb[123].mxu0  ;;  %v5360_v59 = vadd.f32 %v5359_v49, %v4001_v46  ;;  %v5361_v60 = vadd.f32 %v3297_v55, %v6791_v36  ;;  %6135 = vtanh.f32 %v5358_v53 }
 0x38c   : > { %v3299_v61 = vpop.f32.mrb[123].mxu1  ;;  %v4351_v62 = vpop.xlane.xlu1 %4350  ;;  %v4273_v63 = vmul.f32 %v6126_v52, %v6831_v23  ;;  %4455 = vadd.xlane.f32.xlu0 %v4454_v57 }
 0x38d   : > { %4570 = vst.msk [vmem:[%s7042_s26 + $0xa0] sm:$0xff] %vm4549_vm0, %v4505_v54  ;;  %v5363_v0 = vadd.f32 %v3299_v61, %v6795_v37  ;;  %v4506_v1 = vadd.f32 %v7034_v42, %v4351_v62  ;;  %6137 = vtanh.f32 %v5360_v59  ;;  %v5362_v2 = vadd.f32 %v5361_v60, %v4003_v50  ;;  %v6128_v4 = vpop.eup %6127 }
 0x38e   : > { %v4457_v3 = vadd.f32 %v4273_v63, %v4272_v58  ;;  %v3303_v7 = vpop.f32.mrb[124].mxu1  ;;  %v4274_v9 = vmul.f32 %v6128_v4, %v6827_v21 }
 0x38f   : > { %v5364_v5 = vadd.f32 %v5363_v0, %v4005_v56  ;;  %4571 = vst.msk [vmem:[%s7042_s26 + $0xa8] sm:$0xff] %vm4549_vm0, %v4506_v1  ;;  %v6130_v6 = vpop.eup %6129  ;;  %6139 = vtanh.f32 %v5362_v2  ;;  %v4009_v8 = vpop.f32.mrb[124].mxu0  ;;  %v5365_v10 = vadd.f32 %v3303_v7, %v6791_v36 }
 0x390   : > { %4458 = vadd.xlane.f32.xlu1 %v4457_v3  ;;  %v3305_v11 = vpop.f32.mrb[125].mxu1  ;;  %v4011_v12 = vpop.f32.mrb[125].mxu0  ;;  %v4275_v13 = vmul.f32 %v6130_v6, %v6831_v23 }
 0x391   : > { %6141 = vtanh.f32 %v5364_v5  ;;  %v6132_v14 = vpop.eup %6131  ;;  %v5367_v15 = vadd.f32 %v3305_v11, %v6795_v37  ;;  %v4013_v16 = vpop.f32.mrb[126].mxu0  ;;  %v5366_v19 = vadd.f32 %v5365_v10, %v4009_v8 }
 0x392   : > { %v4354_v17 = vpop.xlane.xlu0 %4353  ;;  %v3307_v22 = vpop.f32.mrb[126].mxu1  ;;  %v4460_v26 = vadd.f32 %v4275_v13, %v4274_v9  ;;  %v4276_v27 = vmul.f32 %v6132_v14, %v6827_v21 }
 0x393   : > { %v6134_v18 = vpop.eup %6133  ;;  %v4507_v20 = vadd.f32 %v7034_v42, %v4354_v17  ;;  %v4015_v25 = vpop.f32.mrb[127].mxu0  ;;  %v5368_v28 = vadd.f32 %v5367_v15, %v4011_v12  ;;  %v5369_v29 = vadd.f32 %v3307_v22, %v6791_v36  ;;  %6143 = vtanh.f32 %v5366_v19  ;;  %v7254_v19 = vld [vmem:[#allocation2] ss:$0 sm:$0xff] }
 0x394   : > { %v3309_v30 = vpop.f32.mrb[127].mxu1  ;;  %v4357_v31 = vpop.xlane.xlu1 %4356  ;;  %v4277_v32 = vmul.f32 %v6134_v18, %v6831_v23  ;;  %4461 = vadd.xlane.f32.xlu0 %v4460_v26 }
 0x395   : > { %4572 = vst.msk [vmem:[%s7042_s26 + $0xb0] sm:$0xff] %vm4549_vm0, %v4507_v20  ;;  %v5371_v24 = vadd.f32 %v3309_v30, %v6795_v37  ;;  %v4508_v33 = vadd.f32 %v7034_v42, %v4357_v31  ;;  %6145 = vtanh.f32 %v5368_v28  ;;  %v5370_v34 = vadd.f32 %v5369_v29, %v4013_v16  ;;  %v6136_v38 = vpop.eup %6135 }
 0x396   : > { %v4463_v35 = vadd.f32 %v4277_v32, %v4276_v27  ;;  %v4278_v40 = vmul.f32 %v6136_v38, %v6827_v21 }
 0x397   : > { %v5372_v39 = vadd.f32 %v5371_v24, %v4015_v25  ;;  %4573 = vst.msk [vmem:[%s7042_s26 + $0xb8] sm:$0xff] %vm4549_vm0, %v4508_v33  ;;  %v6138_v36 = vpop.eup %6137  ;;  %6147 = vtanh.f32 %v5370_v34 }
 0x398   : > { %4464 = vadd.xlane.f32.xlu1 %v4463_v35  ;;  %v4279_v37 = vmul.f32 %v6138_v36, %v6831_v23  ;;  %v4360_v43 = vpop.xlane.xlu0 %4359 }
 0x399   : > { %6149 = vtanh.f32 %v5372_v39  ;;  %v6140_v41 = vpop.eup %6139  ;;  %v4509_v45 = vadd.f32 %v7034_v42, %v4360_v43 }
 0x39a   : > { %v4466_v46 = vadd.f32 %v4279_v37, %v4278_v40  ;;  %v4280_v47 = vmul.f32 %v6140_v41, %v6827_v21 }
 0x39b   : > { %v6142_v44 = vpop.eup %6141  ;;  %v4363_v48 = vpop.xlane.xlu1 %4362  ;;  %4574 = vst.msk [vmem:[%s7042_s26 + $0xc0] sm:$0xff] %vm4549_vm0, %v4509_v45 }
 0x39c   : > { %v4281_v49 = vmul.f32 %v6142_v44, %v6831_v23  ;;  %v4510_v50 = vadd.f32 %v7034_v42, %v4363_v48  ;;  %4467 = vadd.xlane.f32.xlu0 %v4466_v46 }
 0x39d   : > { %v6144_v52 = vpop.eup %6143 }
 0x39e   : > { %v4469_v51 = vadd.f32 %v4281_v49, %v4280_v47  ;;  %4575 = vst.msk [vmem:[%s7042_s26 + $0xc8] sm:$0xff] %vm4549_vm0, %v4510_v50  ;;  %v4282_v54 = vmul.f32 %v6144_v52, %v6827_v21 }
 0x39f   : > { %v6146_v53 = vpop.eup %6145 }
 0x3a0   : > { %4470 = vadd.xlane.f32.xlu1 %v4469_v51  ;;  %v4283_v55 = vmul.f32 %v6146_v53, %v6831_v23 }
 0x3a1   : > { %v6148_v56 = vpop.eup %6147  ;;  %v4366_v57 = vpop.xlane.xlu0 %4365 }
 0x3a2   : > { %v4511_v59 = vadd.f32 %v7034_v42, %v4366_v57  ;;  %v4472_v60 = vadd.f32 %v4283_v55, %v4282_v54  ;;  %v4284_v61 = vmul.f32 %v6148_v56, %v6827_v21 }
 0x3a3   : > { %v6150_v58 = vpop.eup %6149 }
 0x3a4   : > { %v4369_v62 = vpop.xlane.xlu1 %4368  ;;  %v4285_v63 = vmul.f32 %v6150_v58, %v6831_v23  ;;  %4576 = vst.msk [vmem:[%s7042_s26 + $0xd0] sm:$0xff] %vm4549_vm0, %v4511_v59  ;;  %4473 = vadd.xlane.f32.xlu0 %v4472_v60 }
 0x3a5   : > { %v4512_v0 = vadd.f32 %v7034_v42, %v4369_v62 }
 0x3a6   : > { %v4475_v1 = vadd.f32 %v4285_v63, %v4284_v61 }
 0x3a7   : > { %4577 = vst.msk [vmem:[%s7042_s26 + $0xd8] sm:$0xff] %vm4549_vm0, %v4512_v0 }
 0x3a8   : > { %4476 = vadd.xlane.f32.xlu1 %v4475_v1  ;;  %v4372_v2 = vpop.xlane.xlu0 %4371 }
 0x3a9   : > { %v4513_v3 = vadd.f32 %v7034_v42, %v4372_v2 }
 0x3ab   : > { %v4375_v21 = vpop.xlane.xlu1 %4374  ;;  %4578 = vst.msk [vmem:[%s7042_s26 + $0xe0] sm:$0xff] %vm4549_vm0, %v4513_v3 }
 0x3ac   : > { %v4514_v23 = vadd.f32 %v7034_v42, %v4375_v21 }
 0x3ae   : > { %4579 = vst.msk [vmem:[%s7042_s26 + $0xe8] sm:$0xff] %vm4549_vm0, %v4514_v23 }
 0x3b1   : > { %v4378_v4 = vpop.xlane.xlu0 %4377 }
 0x3b2   : > { %v4515_v5 = vadd.f32 %v7034_v42, %v4378_v4 }
 0x3b4   : > { %v4381_v6 = vpop.xlane.xlu1 %4380  ;;  %4580 = vst.msk [vmem:[%s7042_s26 + $0xf0] sm:$0xff] %vm4549_vm0, %v4515_v5 }
 0x3b5   : > { %v4516_v7 = vadd.f32 %v7034_v42, %v4381_v6 }
 0x3b7   : > { %4581 = vst.msk [vmem:[%s7042_s26 + $0xf8] sm:$0xff] %vm4549_vm0, %v4516_v7 }
 0x3b8   : > { %v4384_v8 = vpop.xlane.xlu0 %4383 }
 0x3b9   : > { %v4517_v9 = vadd.f32 %v7034_v42, %v4384_v8 }
 0x3bb   : > { %v4387_v10 = vpop.xlane.xlu1 %4386  ;;  %4582 = vst.msk [vmem:[%s7042_s26 + $0x100] sm:$0xff] %vm4549_vm0, %v4517_v9 }
 0x3bc   : > { %v4518_v11 = vadd.f32 %v7034_v42, %v4387_v10 }
 0x3be   : > { %4583 = vst.msk [vmem:[%s7042_s26 + $0x108] sm:$0xff] %vm4549_vm0, %v4518_v11 }
 0x3c1   : > { %v4390_v12 = vpop.xlane.xlu0 %4389 }
 0x3c2   : > { %v4519_v13 = vadd.f32 %v7034_v42, %v4390_v12 }
 0x3c4   : > { %v4393_v14 = vpop.xlane.xlu1 %4392  ;;  %4584 = vst.msk [vmem:[%s7042_s26 + $0x110] sm:$0xff] %vm4549_vm0, %v4519_v13 }
 0x3c5   : > { %v4520_v15 = vadd.f32 %v7034_v42, %v4393_v14 }
 0x3c7   : > { %4585 = vst.msk [vmem:[%s7042_s26 + $0x118] sm:$0xff] %vm4549_vm0, %v4520_v15 }
 0x3c8   : > { %v4396_v16 = vpop.xlane.xlu0 %4395 }
 0x3c9   : > { %v4521_v17 = vadd.f32 %v7034_v42, %v4396_v16 }
 0x3cb   : > { %v4399_v18 = vpop.xlane.xlu1 %4398  ;;  %4586 = vst.msk [vmem:[%s7042_s26 + $0x120] sm:$0xff] %vm4549_vm0, %v4521_v17 }
 0x3cc   : > { %v4522_v20 = vadd.f32 %v7254_v19, %v4399_v18 }
 0x3ce   : > { %4587 = vst.msk [vmem:[%s7042_s26 + $0x128] sm:$0xff] %vm4549_vm0, %v4522_v20 }
 0x3d1   : > { %v4402_v22 = vpop.xlane.xlu0 %4401 }
 0x3d2   : > { %v4523_v25 = vadd.f32 %v7254_v19, %v4402_v22 }
 0x3d4   : > { %v4405_v26 = vpop.xlane.xlu1 %4404  ;;  %4588 = vst.msk [vmem:[%s7042_s26 + $0x130] sm:$0xff] %vm4549_vm0, %v4523_v25 }
 0x3d5   : > { %v4524_v42 = vadd.f32 %v7254_v19, %v4405_v26 }
 0x3d7   : > { %4589 = vst.msk [vmem:[%s7042_s26 + $0x138] sm:$0xff] %vm4549_vm0, %v4524_v42 }
 0x3d8   : > { %v4408_v27 = vpop.xlane.xlu0 %4407 }
 0x3d9   : > { %v4525_v28 = vadd.f32 %v7254_v19, %v4408_v27 }
 0x3db   : > { %4590 = vst.msk [vmem:[%s7042_s26 + $0x140] sm:$0xff] %vm4549_vm0, %v4525_v28 }
 0x3dc   : > { %v4411_v29 = vpop.xlane.xlu1 %4410 }
 0x3dd   : > { %v4526_v30 = vadd.f32 %v7254_v19, %v4411_v29 }
 0x3df   : > { %4591 = vst.msk [vmem:[%s7042_s26 + $0x148] sm:$0xff] %vm4549_vm0, %v4526_v30 }
 0x3e1   : > { %v4414_v31 = vpop.xlane.xlu0 %4413 }
 0x3e2   : > { %v4527_v32 = vadd.f32 %v7254_v19, %v4414_v31 }
 0x3e4   : > { %v4417_v24 = vpop.xlane.xlu1 %4416  ;;  %4592 = vst.msk [vmem:[%s7042_s26 + $0x150] sm:$0xff] %vm4549_vm0, %v4527_v32 }
 0x3e5   : > { %v4528_v33 = vadd.f32 %v7254_v19, %v4417_v24 }
 0x3e7   : > { %4593 = vst.msk [vmem:[%s7042_s26 + $0x158] sm:$0xff] %vm4549_vm0, %v4528_v33 }
 0x3e9   : > { %v4420_v34 = vpop.xlane.xlu0 %4419 }
 0x3ea   : > { %v4529_v35 = vadd.f32 %v7254_v19, %v4420_v34 }
 0x3ec   : > { %v4423_v38 = vpop.xlane.xlu1 %4422  ;;  %4594 = vst.msk [vmem:[%s7042_s26 + $0x160] sm:$0xff] %vm4549_vm0, %v4529_v35 }
 0x3ed   : > { %v4530_v39 = vadd.f32 %v7254_v19, %v4423_v38 }
 0x3ef   : > { %4595 = vst.msk [vmem:[%s7042_s26 + $0x168] sm:$0xff] %vm4549_vm0, %v4530_v39 }
 0x3f1   : > { %v4426_v36 = vpop.xlane.xlu0 %4425 }
 0x3f2   : > { %v4531_v40 = vadd.f32 %v7254_v19, %v4426_v36 }
 0x3f4   : > { %4596 = vst.msk [vmem:[%s7042_s26 + $0x170] sm:$0xff] %vm4549_vm0, %v4531_v40 }
 0x3f5   : > { %v4429_v37 = vpop.xlane.xlu1 %4428 }
 0x3f6   : > { %v4532_v41 = vadd.f32 %v7254_v19, %v4429_v37 }
 0x3f8   : > { %4597 = vst.msk [vmem:[%s7042_s26 + $0x178] sm:$0xff] %vm4549_vm0, %v4532_v41 }
 0x3f9   : > { %v4432_v43 = vpop.xlane.xlu0 %4431 }
 0x3fa   : > { %v4533_v44 = vadd.f32 %v7254_v19, %v4432_v43 }
 0x3fc   : > { %4598 = vst.msk [vmem:[%s7042_s26 + $0x180] sm:$0xff] %vm4549_vm0, %v4533_v44 }
 0x3fd   : > { %v4435_v45 = vpop.xlane.xlu1 %4434 }
 0x3fe   : > { %v4534_v46 = vadd.f32 %v7254_v19, %v4435_v45 }
 0x400   : > { %4599 = vst.msk [vmem:[%s7042_s26 + $0x188] sm:$0xff] %vm4549_vm0, %v4534_v46 }
 0x401   : > { %v4438_v47 = vpop.xlane.xlu0 %4437 }
 0x402   : > { %v4535_v48 = vadd.f32 %v7254_v19, %v4438_v47 }
 0x404   : > { %4600 = vst.msk [vmem:[%s7042_s26 + $0x190] sm:$0xff] %vm4549_vm0, %v4535_v48 }
 0x405   : > { %v4441_v49 = vpop.xlane.xlu1 %4440 }
 0x406   : > { %v4536_v50 = vadd.f32 %v7254_v19, %v4441_v49 }
 0x408   : > { %4601 = vst.msk [vmem:[%s7042_s26 + $0x198] sm:$0xff] %vm4549_vm0, %v4536_v50 }
 0x409   : > { %v4444_v51 = vpop.xlane.xlu0 %4443 }
 0x40a   : > { %v4537_v52 = vadd.f32 %v7254_v19, %v4444_v51 }
 0x40c   : > { %4602 = vst.msk [vmem:[%s7042_s26 + $0x1a0] sm:$0xff] %vm4549_vm0, %v4537_v52 }
 0x40d   : > { %v4447_v53 = vpop.xlane.xlu1 %4446 }
 0x40e   : > { %v4538_v54 = vadd.f32 %v7254_v19, %v4447_v53 }
 0x410   : > { %4603 = vst.msk [vmem:[%s7042_s26 + $0x1a8] sm:$0xff] %vm4549_vm0, %v4538_v54 }
 0x411   : > { %v4450_v55 = vpop.xlane.xlu0 %4449 }
 0x412   : > { %v4539_v56 = vadd.f32 %v7254_v19, %v4450_v55 }
 0x414   : > { %4604 = vst.msk [vmem:[%s7042_s26 + $0x1b0] sm:$0xff] %vm4549_vm0, %v4539_v56 }
 0x415   : > { %v4453_v57 = vpop.xlane.xlu1 %4452 }
 0x416   : > { %v4540_v58 = vadd.f32 %v7254_v19, %v4453_v57 }
 0x418   : > { %4605 = vst.msk [vmem:[%s7042_s26 + $0x1b8] sm:$0xff] %vm4549_vm0, %v4540_v58 }
 0x419   : > { %v4456_v59 = vpop.xlane.xlu0 %4455 }
 0x41a   : > { %v4541_v60 = vadd.f32 %v7254_v19, %v4456_v59 }
 0x41c   : > { %4606 = vst.msk [vmem:[%s7042_s26 + $0x1c0] sm:$0xff] %vm4549_vm0, %v4541_v60 }
 0x41d   : > { %v4459_v61 = vpop.xlane.xlu1 %4458 }
 0x41e   : > { %v4542_v62 = vadd.f32 %v7254_v19, %v4459_v61 }
 0x420   : > { %4607 = vst.msk [vmem:[%s7042_s26 + $0x1c8] sm:$0xff] %vm4549_vm0, %v4542_v62 }
 0x421   : > { %v4462_v63 = vpop.xlane.xlu0 %4461 }
 0x422   : > { %v4543_v0 = vadd.f32 %v7254_v19, %v4462_v63 }
 0x424   : > { %4608 = vst.msk [vmem:[%s7042_s26 + $0x1d0] sm:$0xff] %vm4549_vm0, %v4543_v0 }
 0x425   : > { %v4465_v1 = vpop.xlane.xlu1 %4464 }
 0x426   : > { %v4544_v2 = vadd.f32 %v7254_v19, %v4465_v1 }
 0x428   : > { %4609 = vst.msk [vmem:[%s7042_s26 + $0x1d8] sm:$0xff] %vm4549_vm0, %v4544_v2 }
 0x429   : > { %v4468_v3 = vpop.xlane.xlu0 %4467 }
 0x42a   : > { %v4545_v21 = vadd.f32 %v7254_v19, %v4468_v3 }
 0x42c   : > { %4610 = vst.msk [vmem:[%s7042_s26 + $0x1e0] sm:$0xff] %vm4549_vm0, %v4545_v21 }
 0x42d   : > { %v4471_v23 = vpop.xlane.xlu1 %4470 }
 0x42e   : > { %v4546_v4 = vadd.f32 %v7254_v19, %v4471_v23 }
 0x430   : > { %4611 = vst.msk [vmem:[%s7042_s26 + $0x1e8] sm:$0xff] %vm4549_vm0, %v4546_v4 }
 0x431   : > { %v4474_v5 = vpop.xlane.xlu0 %4473 }
 0x432   : > { %v4547_v6 = vadd.f32 %v7254_v19, %v4474_v5 }
 0x434   : > { %4612 = vst.msk [vmem:[%s7042_s26 + $0x1f0] sm:$0xff] %vm4549_vm0, %v4547_v6 }
 0x435   : > { %v4477_v7 = vpop.xlane.xlu1 %4476 }
 0x436   : > { %v4548_v8 = vadd.f32 %v7254_v19, %v4477_v7 }
 0x438   : > { %4613 = vst.msk [vmem:[%s7042_s26 + $0x1f8] sm:$0xff] %vm4549_vm0, %v4548_v8 }
 0x439 PF: > { %p19_p11 = scmp.ge.s32.totalorder %s6475_s14, 4   ;;  %s7369_s20 = smov %s6300_s21 }
 0x43a   : > { %s7370_s21 = smov %s6304_s22  ;;  %s7371_s22 = smov %s6485_s29 }
 0x43b   : > { %s7372_s23 = smov %s6475_s14  ;;  %21 = sbr.rel (!%p19_p11) target bundleno = 8 (0x8), region = 92 }
 0x442   :  { %4636 = vsyncpa [#allocation4], 1 }
 0x443   :  { %4638 = vsyncpa [#allocation4 + $0x1], 1 }
 0x444   :  { %4639 = vsyncpa [#allocation6], 1 }
 0x445   :  { %4640 = vsyncpa [#allocation9], 1 }

</bundles_post_ra>
